<compile_context>
chip_gen: v6e
topology: v6e:2x2x1
jax: 0.10.0
libtpu: 0.0.40
codegen_flags: <defaults>
</compile_context>

<pallas_src>
from functools import partial

import jax
import jax.numpy as jnp
from jax.experimental import pallas as pl
from jax.experimental.pallas import tpu as pltpu


_PAR1 = pltpu.CompilerParams(dimension_semantics=("parallel",))
_PAR2 = pltpu.CompilerParams(dimension_semantics=("parallel", "parallel"))


def _round_up(x, m):
    return ((x + m - 1) // m) * m


def _pick_tm(M, tm_req):
    """Largest row tile <= tm_req; keep >= 2 tiles when M is big enough so both
    v7x TensorCores get work (harmless on single-core v5e/v6e)."""
    tm = min(tm_req, _round_up(M, 8))
    if M > 512 and 2 * tm > _round_up(M, 8):
        tm = _round_up(pl.cdiv(M, 2), 8)
    return max(tm, 8)


# ----------------------------------------------------------------------------
# Kernel 1: conv_offset_mask -- 3x3/s1/p1 conv on concat([inp, inter]) computed
# straight from halo'd NHWC row strips (no HBM im2col), + bias, + sigmoid on
# the mask lanes.
# ----------------------------------------------------------------------------
def _offset_mask_kernel(fa_ref, fb_ref, w_ref, b_ref, o_ref, *, rh, W, n_offset):
    # fa: (1, rh, W+2, 2C) padded rows for this strip
    # fb: (1, 2,  W+2, 2C) the two halo rows just below the strip
    f = jnp.concatenate([fa_ref[0], fb_ref[0]], axis=0)          # (rh+2, W+2, 2C)
    co = o_ref.shape[-1]
    acc = jnp.zeros((rh * W, co), jnp.float32)
    for kh in range(3):                                          # 9 shifted matmuls
        for kw in range(3):
            lhs = f[kh:kh + rh, kw:kw + W, :].reshape(rh * W, f.shape[-1])
            acc = acc + jnp.dot(lhs, w_ref[kh * 3 + kw],
                                preferred_element_type=jnp.float32)
    acc = acc + b_ref[...]                                       # (1, 27) bias
    # sigmoid on the mask lanes only; exp + approx reciprocal both hit the EUP.
    sig = pl.reciprocal(1.0 + jnp.exp(-acc), approx=True)
    ch = jax.lax.broadcasted_iota(jnp.int32, acc.shape, 1)
    o_ref[...] = jnp.where(ch >= n_offset, sig, acc).reshape(1, rh, W, co)


def offset_mask_conv(feat, w_om, b_om, *, n_offset=18, rh=8):
    """feat: (N, H, W, 2C) bf16 -> (N, H, W, 27) f32 (offsets raw, mask sigmoided)."""
    N, H, W, C2 = feat.shape
    Co = w_om.shape[-1]
    rh = min(rh, H)
    rh = max(2, rh + (rh & 1))              # even and >= 2 (two-block halo trick)
    nb = pl.cdiv(H, rh)                     # row strips per image
    Hpad = (nb + 1) * rh                    # halo block below the last strip is
                                            # always an in-bounds DMA
    # 1 zero halo row on top / 1 col left+right / extra zero rows at the bottom.
    featp = jnp.pad(feat, ((0, 0), (1, Hpad - 1 - H), (1, 1), (0, 0)))

    return pl.pallas_call(
        partial(_offset_mask_kernel, rh=rh, W=W, n_offset=n_offset),
        out_shape=jax.ShapeDtypeStruct((N, H, W, Co), jnp.float32),
        grid=(N, nb),
        in_specs=[
            # strip rows [hb*rh, hb*rh+rh) of the padded map
            pl.BlockSpec((1, rh, W + 2, C2), lambda n, hb: (n, hb, 0, 0)),
            # 2-row halo just below the strip (block height 2, shifted index)
            pl.BlockSpec((1, 2, W + 2, C2),
                         lambda n, hb: (n, (hb + 1) * (rh // 2), 0, 0)),
            pl.BlockSpec(w_om.shape, lambda n, hb: (0, 0, 0)),   # (9, 2C, 27)
            pl.BlockSpec(b_om.shape, lambda n, hb: (0, 0)),      # (1, 27)
        ],
        out_specs=pl.BlockSpec((1, rh, W, Co), lambda n, hb: (n, hb, 0, 0)),
        compiler_params=_PAR2,
    )(featp, featp, w_om, b_om)


# ----------------------------------------------------------------------------
# Kernel 2: fused SFT (merged branches) + DCN matmul + residual.
# ----------------------------------------------------------------------------
def _hpfb_fused_kernel(cols_ref, inp_ref, p_ref, wd_ref, w1_ref, w2_ref, o_ref):
    C = o_ref.shape[-1]
    p = p_ref[...]                                               # (tm, C) bf16
    # merged SFT: (C, 2C) first layer, block-diagonal (2C, 2C) second layer.
    h = jnp.dot(p, w1_ref[...], preferred_element_type=jnp.float32)
    h = jnp.where(h >= 0, h, 0.1 * h).astype(jnp.bfloat16)       # LeakyReLU(0.1)
    gb = jnp.dot(h, w2_ref[...], preferred_element_type=jnp.float32)
    gamma, beta = gb[:, :C], gb[:, C:]
    # modulated deformable conv as matmul over deformed columns (bias=False)
    dcn = jnp.dot(cols_ref[...], wd_ref[...], preferred_element_type=jnp.float32)
    x = inp_ref[...]                                             # (tm, C) f32
    o_ref[...] = x * gamma + beta + dcn + x


def hpfb_fused(cols, inp, p, wd, wg1, wg2, wb1, wb2, *, tm=2048):
    """cols: (M, 9C) bf16, inp: (M, C) f32, p: (M, C) bf16 -> (M, C) f32."""
    M, C = inp.shape
    K = cols.shape[1]
    # Pack the two SFT branches into two matmuls instead of four small ones.
    w1 = jnp.concatenate([wg1, wb1], axis=1)                     # (C, 2C)
    z = jnp.zeros_like(wg2)
    w2 = jnp.concatenate([jnp.concatenate([wg2, z], axis=1),
                          jnp.concatenate([z, wb2], axis=1)], axis=0)  # (2C, 2C)

    tm = _pick_tm(M, tm)

    def row_spec(last):
        return pl.BlockSpec((tm, last), lambda i: (i, 0))

    def full_spec(a):
        return pl.BlockSpec(a.shape, lambda i: (0, 0))

    return pl.pallas_call(
        _hpfb_fused_kernel,
        out_shape=jax.ShapeDtypeStruct((M, C), jnp.float32),
        grid=(pl.cdiv(M, tm),),          # ragged last tile handled by masking
        in_specs=[row_spec(K), row_spec(C), row_spec(C),
                  full_spec(wd), full_spec(w1), full_spec(w2)],
        out_specs=row_spec(C),
        compiler_params=_PAR1,
    )(cols, inp, p, wd, w1, w2)


# ----------------------------------------------------------------------------
# Glue: modulated-deformable bilinear sampling (data movement only, XLA).
# ----------------------------------------------------------------------------
def deform_im2col(x, dy, dx, mask):
    """Modulated deformable im2col (3x3, stride 1, pad 1, dilation 1).

    x: (N,H,W,C) f32; dy,dx,mask: (N,H,W,9).  Returns (N*H*W, 9*C) bf16.
    """
    # TODO(synk): longer term, keep x resident in VMEM and build these columns
    # inside the fused Pallas kernel (per-tile gather) to remove the (M, 9C)
    # HBM round trip; the per-pixel bilinear gather stays in XLA glue for now.
    N, H, W, C = x.shape
    kh = jnp.arange(3)
    kw = jnp.arange(3)
    base_y = (jnp.arange(H)[:, None] - 1 + kh[None, :])               # (H, 3)
    base_x = (jnp.arange(W)[:, None] - 1 + kw[None, :])               # (W, 3)
    base_y = jnp.broadcast_to(base_y[:, None, :, None], (H, W, 3, 3)).reshape(H, W, 9)
    base_x = jnp.broadcast_to(base_x[None, :, None, :], (H, W, 3, 3)).reshape(H, W, 9)
    py = base_y[None].astype(jnp.float32) + dy                        # (N,H,W,9)
    px = base_x[None].astype(jnp.float32) + dx
    y0f = jnp.floor(py)
    x0f = jnp.floor(px)
    ly = py - y0f
    lx = px - x0f
    y0 = y0f.astype(jnp.int32)
    x0 = x0f.astype(jnp.int32)

    x_flat = x.reshape(N, H * W, C)

    def corner(cy, cx, wgt):
        valid = (cy >= 0) & (cy < H) & (cx >= 0) & (cx < W)
        idx = jnp.clip(cy, 0, H - 1) * W + jnp.clip(cx, 0, W - 1)      # (N,H,W,9)
        g = jax.vmap(lambda xf, ix: xf[ix])(x_flat, idx.reshape(N, -1))
        g = g.reshape(N, H, W, 9, C)
        return g * (wgt * valid.astype(jnp.float32))[..., None]

    v = (corner(y0,     x0,     (1.0 - ly) * (1.0 - lx))
         + corner(y0,     x0 + 1, (1.0 - ly) * lx)
         + corner(y0 + 1, x0,     ly * (1.0 - lx))
         + corner(y0 + 1, x0 + 1, ly * lx))
    v = v * mask[..., None]                                            # modulation
    # bf16 at the source: halves the HBM bytes of the fused kernel's main input.
    return v.astype(jnp.bfloat16).reshape(N * H * W, 9 * C)


# ----------------------------------------------------------------------------
# HPFB forward
# ----------------------------------------------------------------------------
def hpfb_forward(inp_nchw, p_nchw, params):
    inp = jnp.transpose(inp_nchw, (0, 2, 3, 1)).astype(jnp.float32)    # NHWC
    inter = jnp.transpose(p_nchw, (0, 2, 3, 1)).astype(jnp.float32)
    N, H, W, C = inp.shape
    M = N * H * W

    # --- DCN_layer: offset / mask prediction (3x3 conv on concat, bias=True) --
    feat = jnp.concatenate([inp, inter], axis=-1).astype(jnp.bfloat16)  # (N,H,W,2C)
    om = offset_mask_conv(feat, params["w_om"], params["b_om"],
                          n_offset=18)                                  # (N,H,W,27)
    o1, o2, msk = om[..., 0:9], om[..., 9:18], om[..., 18:27]           # chunk(3)
    offset = jnp.concatenate([o1, o2], axis=-1)                         # (N,H,W,18)
    dy = offset[..., 0::2]                                              # delta-y per tap
    dx = offset[..., 1::2]                                              # delta-x per tap

    # --- modulated deformable im2col (bilinear gather, mask already sigmoided)
    cols_dcn = deform_im2col(inp, dy, dx, msk)                          # (M, 9C) bf16

    # --- fused SFT(inter) + DCN matmul + residual ----------------------------
    out = hpfb_fused(cols_dcn,
                     inp.reshape(M, C),
                     inter.astype(jnp.bfloat16).reshape(M, C),
                     params["w_dcn"], params["wg1"], params["wg2"],
                     params["wb1"], params["wb2"])
    return jnp.transpose(out.reshape(N, H, W, C), (0, 3, 1, 2))         # NCHW


# ----------------------------------------------------------------------------
# Parameter construction (deterministic, synthetic)
# ----------------------------------------------------------------------------
def make_hpfb_params(key, c):
    ks = jax.random.split(key, 7)

    def nrm(k, shape, s=0.05):
        return s * jax.random.normal(k, shape, jnp.float32)

    return dict(
        # conv_offset_mask: 3x3, in=2c, out=27 (=3*3*3*deformable_groups),
        # stored tap-major as (9, 2c, 27).
        # NOTE: PyTorch zero-inits this layer; small random values exercise the
        # deformable path while keeping the same forward semantics.
        w_om=nrm(ks[0], (9, 2 * c, 27)).astype(jnp.bfloat16),
        b_om=nrm(ks[1], (1, 27)),
        # DCN weight (bias=False); rows ordered (kh, kw, cin) to match the
        # deformed-column layout.
        w_dcn=nrm(ks[2], (9 * c, c)).astype(jnp.bfloat16),
        # SFT 1x1 convs (bias=False)
        wg1=nrm(ks[3], (c, c)).astype(jnp.bfloat16),
        wg2=nrm(ks[4], (c, c)).astype(jnp.bfloat16),
        wb1=nrm(ks[5], (c, c)).astype(jnp.bfloat16),
        wb2=nrm(ks[6], (c, c)).astype(jnp.bfloat16),
    )


# ----------------------------------------------------------------------------
if __name__ == "__main__":
    key = jax.random.PRNGKey(0)
    k_inp, k_p, k_par = jax.random.split(key, 3)

    N, C, H, W = 2, 32, 16, 16          # small, NCHW like the PyTorch module
    inp = jax.random.normal(k_inp, (N, C, H, W), jnp.float32)
    p = jax.random.normal(k_p, (N, C, H, W), jnp.float32)
    params = make_hpfb_params(k_par, C)

    fwd = jax.jit(hpfb_forward)
    out = fwd(inp, p, params)
    jax.block_until_ready(out)

    assert out.shape == (N, C, H, W)
    assert bool(jnp.isfinite(out).all())
    print("KERNEL_OK")
</pallas_src>

<mosaic_0001>
module attributes {stable_mosaic.version = 11 : i64} {
  func.func @_offset_mask_kernel(%arg0: i32, %arg1: i32, %arg2: memref<1x8x18x64xbf16, #tpu.memory_space<vmem>>, %arg3: memref<1x2x18x64xbf16, #tpu.memory_space<vmem>>, %arg4: memref<9x64x27xbf16, #tpu.memory_space<vmem>>, %arg5: memref<1x27xf32, #tpu.memory_space<vmem>>, %arg6: memref<1x8x16x27xf32, #tpu.memory_space<vmem>>) attributes {dimension_semantics = [#tpu.dimension_semantics<parallel>, #tpu.dimension_semantics<parallel>], iteration_bounds = array<i64: 2, 2>, scalar_prefetch = 0 : i64, scratch_operands = 0 : i64, tpu.core_type = #tpu.core_type<tc>, window_params = [{transform_indices = @transform_0, window_bounds = array<i64: 1, 8, 18, 64>}, {transform_indices = @transform_1, window_bounds = array<i64: 1, 2, 18, 64>}, {pipeline_mode = #tpu.pipeline_mode<synchronous>, transform_indices = @transform_2, window_bounds = array<i64: 9, 64, 27>}, {pipeline_mode = #tpu.pipeline_mode<synchronous>, transform_indices = @transform_3, window_bounds = array<i64: 1, 27>}, {transform_indices = @transform_4, window_bounds = array<i64: 1, 8, 16, 27>}]} {
    %c0 = arith.constant 0 : index
    %c0_0 = arith.constant 0 : index
    %c0_1 = arith.constant 0 : index
    %c0_2 = arith.constant 0 : index
    %0 = vector.load %arg2[%c0, %c0_0, %c0_1, %c0_2] : memref<1x8x18x64xbf16, #tpu.memory_space<vmem>>, vector<1x8x18x64xbf16>
    %1 = vector.shape_cast %0 : vector<1x8x18x64xbf16> to vector<8x18x64xbf16>
    %c0_3 = arith.constant 0 : index
    %c0_4 = arith.constant 0 : index
    %c0_5 = arith.constant 0 : index
    %c0_6 = arith.constant 0 : index
    %2 = vector.load %arg3[%c0_3, %c0_4, %c0_5, %c0_6] : memref<1x2x18x64xbf16, #tpu.memory_space<vmem>>, vector<1x2x18x64xbf16>
    %3 = vector.shape_cast %2 : vector<1x2x18x64xbf16> to vector<2x18x64xbf16>
    %4 = tpu.concatenate %1, %3 in 0 : vector<8x18x64xbf16>, vector<2x18x64xbf16> -> vector<10x18x64xbf16>
    %cst = arith.constant 0.000000e+00 : f32
    %5 = vector.broadcast %cst : f32 to vector<128x27xf32>
    %6 = vector.extract_strided_slice %4 {offsets = [0, 0, 0], sizes = [8, 16, 64], strides = [1, 1, 1]} : vector<10x18x64xbf16> to vector<8x16x64xbf16>
    %7 = vector.shape_cast %6 : vector<8x16x64xbf16> to vector<128x64xbf16>
    %c0_7 = arith.constant 0 : index
    %c0_8 = arith.constant 0 : index
    %c0_9 = arith.constant 0 : index
    %8 = vector.load %arg4[%c0_7, %c0_8, %c0_9] : memref<9x64x27xbf16, #tpu.memory_space<vmem>>, vector<1x64x27xbf16>
    %9 = vector.shape_cast %8 : vector<1x64x27xbf16> to vector<64x27xbf16>
    %cst_10 = arith.constant dense<0.000000e+00> : vector<128x27xf32>
    %10 = tpu.matmul %7, %9, %cst_10 {dimension_numbers = #tpu.dot_dimension_numbers<[1], [0], [0], [1], [0, 0, 1, 1], [], []>} : vector<128x64xbf16>, vector<64x27xbf16>, vector<128x27xf32> -> vector<128x27xf32>
    %11 = arith.addf %5, %10 : vector<128x27xf32>
    %12 = vector.extract_strided_slice %4 {offsets = [0, 1, 0], sizes = [8, 16, 64], strides = [1, 1, 1]} : vector<10x18x64xbf16> to vector<8x16x64xbf16>
    %13 = vector.shape_cast %12 : vector<8x16x64xbf16> to vector<128x64xbf16>
    %c1 = arith.constant 1 : index
    %c0_11 = arith.constant 0 : index
    %c0_12 = arith.constant 0 : index
    %14 = vector.load %arg4[%c1, %c0_11, %c0_12] : memref<9x64x27xbf16, #tpu.memory_space<vmem>>, vector<1x64x27xbf16>
    %15 = vector.shape_cast %14 : vector<1x64x27xbf16> to vector<64x27xbf16>
    %cst_13 = arith.constant dense<0.000000e+00> : vector<128x27xf32>
    %16 = tpu.matmul %13, %15, %cst_13 {dimension_numbers = #tpu.dot_dimension_numbers<[1], [0], [0], [1], [0, 0, 1, 1], [], []>} : vector<128x64xbf16>, vector<64x27xbf16>, vector<128x27xf32> -> vector<128x27xf32>
    %17 = arith.addf %11, %16 : vector<128x27xf32>
    %18 = vector.extract_strided_slice %4 {offsets = [0, 2, 0], sizes = [8, 16, 64], strides = [1, 1, 1]} : vector<10x18x64xbf16> to vector<8x16x64xbf16>
    %19 = vector.shape_cast %18 : vector<8x16x64xbf16> to vector<128x64xbf16>
    %c2 = arith.constant 2 : index
    %c0_14 = arith.constant 0 : index
    %c0_15 = arith.constant 0 : index
    %20 = vector.load %arg4[%c2, %c0_14, %c0_15] : memref<9x64x27xbf16, #tpu.memory_space<vmem>>, vector<1x64x27xbf16>
    %21 = vector.shape_cast %20 : vector<1x64x27xbf16> to vector<64x27xbf16>
    %cst_16 = arith.constant dense<0.000000e+00> : vector<128x27xf32>
    %22 = tpu.matmul %19, %21, %cst_16 {dimension_numbers = #tpu.dot_dimension_numbers<[1], [0], [0], [1], [0, 0, 1, 1], [], []>} : vector<128x64xbf16>, vector<64x27xbf16>, vector<128x27xf32> -> vector<128x27xf32>
    %23 = arith.addf %17, %22 : vector<128x27xf32>
    %24 = vector.extract_strided_slice %4 {offsets = [1, 0, 0], sizes = [8, 16, 64], strides = [1, 1, 1]} : vector<10x18x64xbf16> to vector<8x16x64xbf16>
    %25 = vector.shape_cast %24 : vector<8x16x64xbf16> to vector<128x64xbf16>
    %c3 = arith.constant 3 : index
    %c0_17 = arith.constant 0 : index
    %c0_18 = arith.constant 0 : index
    %26 = vector.load %arg4[%c3, %c0_17, %c0_18] : memref<9x64x27xbf16, #tpu.memory_space<vmem>>, vector<1x64x27xbf16>
    %27 = vector.shape_cast %26 : vector<1x64x27xbf16> to vector<64x27xbf16>
    %cst_19 = arith.constant dense<0.000000e+00> : vector<128x27xf32>
    %28 = tpu.matmul %25, %27, %cst_19 {dimension_numbers = #tpu.dot_dimension_numbers<[1], [0], [0], [1], [0, 0, 1, 1], [], []>} : vector<128x64xbf16>, vector<64x27xbf16>, vector<128x27xf32> -> vector<128x27xf32>
    %29 = arith.addf %23, %28 : vector<128x27xf32>
    %30 = vector.extract_strided_slice %4 {offsets = [1, 1, 0], sizes = [8, 16, 64], strides = [1, 1, 1]} : vector<10x18x64xbf16> to vector<8x16x64xbf16>
    %31 = vector.shape_cast %30 : vector<8x16x64xbf16> to vector<128x64xbf16>
    %c4 = arith.constant 4 : index
    %c0_20 = arith.constant 0 : index
    %c0_21 = arith.constant 0 : index
    %32 = vector.load %arg4[%c4, %c0_20, %c0_21] : memref<9x64x27xbf16, #tpu.memory_space<vmem>>, vector<1x64x27xbf16>
    %33 = vector.shape_cast %32 : vector<1x64x27xbf16> to vector<64x27xbf16>
    %cst_22 = arith.constant dense<0.000000e+00> : vector<128x27xf32>
    %34 = tpu.matmul %31, %33, %cst_22 {dimension_numbers = #tpu.dot_dimension_numbers<[1], [0], [0], [1], [0, 0, 1, 1], [], []>} : vector<128x64xbf16>, vector<64x27xbf16>, vector<128x27xf32> -> vector<128x27xf32>
    %35 = arith.addf %29, %34 : vector<128x27xf32>
    %36 = vector.extract_strided_slice %4 {offsets = [1, 2, 0], sizes = [8, 16, 64], strides = [1, 1, 1]} : vector<10x18x64xbf16> to vector<8x16x64xbf16>
    %37 = vector.shape_cast %36 : vector<8x16x64xbf16> to vector<128x64xbf16>
    %c5 = arith.constant 5 : index
    %c0_23 = arith.constant 0 : index
    %c0_24 = arith.constant 0 : index
    %38 = vector.load %arg4[%c5, %c0_23, %c0_24] : memref<9x64x27xbf16, #tpu.memory_space<vmem>>, vector<1x64x27xbf16>
    %39 = vector.shape_cast %38 : vector<1x64x27xbf16> to vector<64x27xbf16>
    %cst_25 = arith.constant dense<0.000000e+00> : vector<128x27xf32>
    %40 = tpu.matmul %37, %39, %cst_25 {dimension_numbers = #tpu.dot_dimension_numbers<[1], [0], [0], [1], [0, 0, 1, 1], [], []>} : vector<128x64xbf16>, vector<64x27xbf16>, vector<128x27xf32> -> vector<128x27xf32>
    %41 = arith.addf %35, %40 : vector<128x27xf32>
    %42 = vector.extract_strided_slice %4 {offsets = [2, 0, 0], sizes = [8, 16, 64], strides = [1, 1, 1]} : vector<10x18x64xbf16> to vector<8x16x64xbf16>
    %43 = vector.shape_cast %42 : vector<8x16x64xbf16> to vector<128x64xbf16>
    %c6 = arith.constant 6 : index
    %c0_26 = arith.constant 0 : index
    %c0_27 = arith.constant 0 : index
    %44 = vector.load %arg4[%c6, %c0_26, %c0_27] : memref<9x64x27xbf16, #tpu.memory_space<vmem>>, vector<1x64x27xbf16>
    %45 = vector.shape_cast %44 : vector<1x64x27xbf16> to vector<64x27xbf16>
    %cst_28 = arith.constant dense<0.000000e+00> : vector<128x27xf32>
    %46 = tpu.matmul %43, %45, %cst_28 {dimension_numbers = #tpu.dot_dimension_numbers<[1], [0], [0], [1], [0, 0, 1, 1], [], []>} : vector<128x64xbf16>, vector<64x27xbf16>, vector<128x27xf32> -> vector<128x27xf32>
    %47 = arith.addf %41, %46 : vector<128x27xf32>
    %48 = vector.extract_strided_slice %4 {offsets = [2, 1, 0], sizes = [8, 16, 64], strides = [1, 1, 1]} : vector<10x18x64xbf16> to vector<8x16x64xbf16>
    %49 = vector.shape_cast %48 : vector<8x16x64xbf16> to vector<128x64xbf16>
    %c7 = arith.constant 7 : index
    %c0_29 = arith.constant 0 : index
    %c0_30 = arith.constant 0 : index
    %50 = vector.load %arg4[%c7, %c0_29, %c0_30] : memref<9x64x27xbf16, #tpu.memory_space<vmem>>, vector<1x64x27xbf16>
    %51 = vector.shape_cast %50 : vector<1x64x27xbf16> to vector<64x27xbf16>
    %cst_31 = arith.constant dense<0.000000e+00> : vector<128x27xf32>
    %52 = tpu.matmul %49, %51, %cst_31 {dimension_numbers = #tpu.dot_dimension_numbers<[1], [0], [0], [1], [0, 0, 1, 1], [], []>} : vector<128x64xbf16>, vector<64x27xbf16>, vector<128x27xf32> -> vector<128x27xf32>
    %53 = arith.addf %47, %52 : vector<128x27xf32>
    %54 = vector.extract_strided_slice %4 {offsets = [2, 2, 0], sizes = [8, 16, 64], strides = [1, 1, 1]} : vector<10x18x64xbf16> to vector<8x16x64xbf16>
    %55 = vector.shape_cast %54 : vector<8x16x64xbf16> to vector<128x64xbf16>
    %c8 = arith.constant 8 : index
    %c0_32 = arith.constant 0 : index
    %c0_33 = arith.constant 0 : index
    %56 = vector.load %arg4[%c8, %c0_32, %c0_33] : memref<9x64x27xbf16, #tpu.memory_space<vmem>>, vector<1x64x27xbf16>
    %57 = vector.shape_cast %56 : vector<1x64x27xbf16> to vector<64x27xbf16>
    %cst_34 = arith.constant dense<0.000000e+00> : vector<128x27xf32>
    %58 = tpu.matmul %55, %57, %cst_34 {dimension_numbers = #tpu.dot_dimension_numbers<[1], [0], [0], [1], [0, 0, 1, 1], [], []>} : vector<128x64xbf16>, vector<64x27xbf16>, vector<128x27xf32> -> vector<128x27xf32>
    %59 = arith.addf %53, %58 : vector<128x27xf32>
    %c0_35 = arith.constant 0 : index
    %c0_36 = arith.constant 0 : index
    %60 = vector.load %arg5[%c0_35, %c0_36] : memref<1x27xf32, #tpu.memory_space<vmem>>, vector<1x27xf32>
    %61 = vector.broadcast %60 : vector<1x27xf32> to vector<128x27xf32>
    %62 = arith.addf %59, %61 : vector<128x27xf32>
    %cst_37 = arith.constant 0.000000e+00 : f32
    %63 = vector.broadcast %cst_37 : f32 to vector<128x27xf32>
    %64 = arith.subf %63, %62 : vector<128x27xf32>
    %65 = math.exp %64 : vector<128x27xf32>
    %cst_38 = arith.constant 1.000000e+00 : f32
    %66 = vector.broadcast %cst_38 : f32 to vector<128x27xf32>
    %67 = arith.addf %66, %65 : vector<128x27xf32>
    %68 = tpu.reciprocal %67 {approx = true} : vector<128x27xf32> -> vector<128x27xf32>
    %69 = tpu.iota {dimensions = array<i32: 1>} : vector<128x27xi32>
    %c18_i32 = arith.constant 18 : i32
    %70 = vector.broadcast %c18_i32 : i32 to vector<128x27xi32>
    %71 = arith.cmpi sge, %69, %70 : vector<128x27xi32>
    %72 = arith.select %71, %68, %62 : vector<128x27xi1>, vector<128x27xf32>
    %73 = vector.shape_cast %72 : vector<128x27xf32> to vector<1x8x16x27xf32>
    %c0_39 = arith.constant 0 : index
    %c0_40 = arith.constant 0 : index
    %c0_41 = arith.constant 0 : index
    %c0_42 = arith.constant 0 : index
    %74 = vector.load %arg6[%c0_39, %c0_40, %c0_41, %c0_42] : memref<1x8x16x27xf32, #tpu.memory_space<vmem>>, vector<1x8x16x27xf32>
    tpu.vector_store %arg6[%c0_39, %c0_40, %c0_41, %c0_42], %73 {strides = array<i32>} : memref<1x8x16x27xf32, #tpu.memory_space<vmem>>, vector<1x8x16x27xf32>,
    return
  }
  func.func @transform_0(%arg0: i32, %arg1: i32) -> (i32, i32, i32, i32) {
    %c0_i32 = arith.constant 0 : i32
    %c0_i32_0 = arith.constant 0 : i32
    %c0_i32_1 = arith.constant 0 : i32
    return %arg0, %arg1, %c0_i32, %c0_i32_0 : i32, i32, i32, i32
  }
  func.func @transform_1(%arg0: i32, %arg1: i32) -> (i32, i32, i32, i32) {
    %c1_i32 = arith.constant 1 : i32
    %0 = arith.addi %arg1, %c1_i32 : i32
    %c4_i32 = arith.constant 4 : i32
    %1 = arith.muli %0, %c4_i32 : i32
    %c0_i32 = arith.constant 0 : i32
    %c0_i32_0 = arith.constant 0 : i32
    %c0_i32_1 = arith.constant 0 : i32
    return %arg0, %1, %c0_i32, %c0_i32_0 : i32, i32, i32, i32
  }
  func.func @transform_2(%arg0: i32, %arg1: i32) -> (i32, i32, i32) {
    %c0_i32 = arith.constant 0 : i32
    %c0_i32_0 = arith.constant 0 : i32
    %c0_i32_1 = arith.constant 0 : i32
    %c0_i32_2 = arith.constant 0 : i32
    return %c0_i32, %c0_i32_0, %c0_i32_1 : i32, i32, i32
  }
  func.func @transform_3(%arg0: i32, %arg1: i32) -> (i32, i32) {
    %c0_i32 = arith.constant 0 : i32
    %c0_i32_0 = arith.constant 0 : i32
    %c0_i32_1 = arith.constant 0 : i32
    return %c0_i32, %c0_i32_0 : i32, i32
  }
  func.func @transform_4(%arg0: i32, %arg1: i32) -> (i32, i32, i32, i32) {
    %c0_i32 = arith.constant 0 : i32
    %c0_i32_0 = arith.constant 0 : i32
    %c0_i32_1 = arith.constant 0 : i32
    return %arg0, %arg1, %c0_i32, %c0_i32_0 : i32, i32, i32, i32
  }
}

module attributes {stable_mosaic.version = 11 : i64} {
  func.func @_hpfb_fused_kernel(%arg0: i32, %arg1: memref<512x288xbf16, #tpu.memory_space<vmem>>, %arg2: memref<512x32xf32, #tpu.memory_space<vmem>>, %arg3: memref<512x32xbf16, #tpu.memory_space<vmem>>, %arg4: memref<288x32xbf16, #tpu.memory_space<vmem>>, %arg5: memref<32x64xbf16, #tpu.memory_space<vmem>>, %arg6: memref<64x64xbf16, #tpu.memory_space<vmem>>, %arg7: memref<512x32xf32, #tpu.memory_space<vmem>>) attributes {dimension_semantics = [#tpu.dimension_semantics<parallel>], iteration_bounds = array<i64: 1>, scalar_prefetch = 0 : i64, scratch_operands = 0 : i64, tpu.core_type = #tpu.core_type<tc>, window_params = [{transform_indices = @transform_0, window_bounds = array<i64: 512, 288>}, {transform_indices = @transform_1, window_bounds = array<i64: 512, 32>}, {transform_indices = @transform_2, window_bounds = array<i64: 512, 32>}, {pipeline_mode = #tpu.pipeline_mode<synchronous>, transform_indices = @transform_3, window_bounds = array<i64: 288, 32>}, {pipeline_mode = #tpu.pipeline_mode<synchronous>, transform_indices = @transform_4, window_bounds = array<i64: 32, 64>}, {pipeline_mode = #tpu.pipeline_mode<synchronous>, transform_indices = @transform_5, window_bounds = array<i64: 64, 64>}, {transform_indices = @transform_6, window_bounds = array<i64: 512, 32>}]} {
    %c0 = arith.constant 0 : index
    %c0_0 = arith.constant 0 : index
    %0 = vector.load %arg3[%c0, %c0_0] : memref<512x32xbf16, #tpu.memory_space<vmem>>, vector<512x32xbf16>
    %c0_1 = arith.constant 0 : index
    %c0_2 = arith.constant 0 : index
    %1 = vector.load %arg5[%c0_1, %c0_2] : memref<32x64xbf16, #tpu.memory_space<vmem>>, vector<32x64xbf16>
    %cst = arith.constant dense<0.000000e+00> : vector<512x64xf32>
    %2 = tpu.matmul %0, %1, %cst {dimension_numbers = #tpu.dot_dimension_numbers<[1], [0], [0], [1], [0, 0, 1, 1], [], []>} : vector<512x32xbf16>, vector<32x64xbf16>, vector<512x64xf32> -> vector<512x64xf32>
    %cst_3 = arith.constant 0.000000e+00 : f32
    %3 = vector.broadcast %cst_3 : f32 to vector<512x64xf32>
    %4 = arith.cmpf oge, %2, %3 : vector<512x64xf32>
    %cst_4 = arith.constant 1.000000e-01 : f32
    %5 = vector.broadcast %cst_4 : f32 to vector<512x64xf32>
    %6 = arith.mulf %5, %2 : vector<512x64xf32>
    %7 = arith.select %4, %2, %6 : vector<512x64xi1>, vector<512x64xf32>
    %8 = arith.truncf %7 : vector<512x64xf32> to vector<512x64xbf16>
    %c0_5 = arith.constant 0 : index
    %c0_6 = arith.constant 0 : index
    %9 = vector.load %arg6[%c0_5, %c0_6] : memref<64x64xbf16, #tpu.memory_space<vmem>>, vector<64x64xbf16>
    %cst_7 = arith.constant dense<0.000000e+00> : vector<512x64xf32>
    %10 = tpu.matmul %8, %9, %cst_7 {dimension_numbers = #tpu.dot_dimension_numbers<[1], [0], [0], [1], [0, 0, 1, 1], [], []>} : vector<512x64xbf16>, vector<64x64xbf16>, vector<512x64xf32> -> vector<512x64xf32>
    %11 = vector.extract_strided_slice %10 {offsets = [0, 0], sizes = [512, 32], strides = [1, 1]} : vector<512x64xf32> to vector<512x32xf32>
    %12 = vector.extract_strided_slice %10 {offsets = [0, 32], sizes = [512, 32], strides = [1, 1]} : vector<512x64xf32> to vector<512x32xf32>
    %c0_8 = arith.constant 0 : index
    %c0_9 = arith.constant 0 : index
    %13 = vector.load %arg1[%c0_8, %c0_9] : memref<512x288xbf16, #tpu.memory_space<vmem>>, vector<512x288xbf16>
    %c0_10 = arith.constant 0 : index
    %c0_11 = arith.constant 0 : index
    %14 = vector.load %arg4[%c0_10, %c0_11] : memref<288x32xbf16, #tpu.memory_space<vmem>>, vector<288x32xbf16>
    %cst_12 = arith.constant dense<0.000000e+00> : vector<512x32xf32>
    %15 = tpu.matmul %13, %14, %cst_12 {dimension_numbers = #tpu.dot_dimension_numbers<[1], [0], [0], [1], [0, 0, 1, 1], [], []>} : vector<512x288xbf16>, vector<288x32xbf16>, vector<512x32xf32> -> vector<512x32xf32>
    %c0_13 = arith.constant 0 : index
    %c0_14 = arith.constant 0 : index
    %16 = vector.load %arg2[%c0_13, %c0_14] : memref<512x32xf32, #tpu.memory_space<vmem>>, vector<512x32xf32>
    %17 = arith.mulf %16, %11 : vector<512x32xf32>
    %18 = arith.addf %17, %12 : vector<512x32xf32>
    %19 = arith.addf %18, %15 : vector<512x32xf32>
    %20 = arith.addf %19, %16 : vector<512x32xf32>
    %c0_15 = arith.constant 0 : index
    %c0_16 = arith.constant 0 : index
    %21 = vector.load %arg7[%c0_15, %c0_16] : memref<512x32xf32, #tpu.memory_space<vmem>>, vector<512x32xf32>
    tpu.vector_store %arg7[%c0_15, %c0_16], %20 {strides = array<i32>} : memref<512x32xf32, #tpu.memory_space<vmem>>, vector<512x32xf32>,
    return
  }
  func.func @transform_0(%arg0: i32) -> (i32, i32) {
    %c0_i32 = arith.constant 0 : i32
    %c0_i32_0 = arith.constant 0 : i32
    return %arg0, %c0_i32 : i32, i32
  }
  func.func @transform_1(%arg0: i32) -> (i32, i32) {
    %c0_i32 = arith.constant 0 : i32
    %c0_i32_0 = arith.constant 0 : i32
    return %arg0, %c0_i32 : i32, i32
  }
  func.func @transform_2(%arg0: i32) -> (i32, i32) {
    %c0_i32 = arith.constant 0 : i32
    %c0_i32_0 = arith.constant 0 : i32
    return %arg0, %c0_i32 : i32, i32
  }
  func.func @transform_3(%arg0: i32) -> (i32, i32) {
    %c0_i32 = arith.constant 0 : i32
    %c0_i32_0 = arith.constant 0 : i32
    %c0_i32_1 = arith.constant 0 : i32
    return %c0_i32, %c0_i32_0 : i32, i32
  }
  func.func @transform_4(%arg0: i32) -> (i32, i32) {
    %c0_i32 = arith.constant 0 : i32
    %c0_i32_0 = arith.constant 0 : i32
    %c0_i32_1 = arith.constant 0 : i32
    return %c0_i32, %c0_i32_0 : i32, i32
  }
  func.func @transform_5(%arg0: i32) -> (i32, i32) {
    %c0_i32 = arith.constant 0 : i32
    %c0_i32_0 = arith.constant 0 : i32
    %c0_i32_1 = arith.constant 0 : i32
    return %c0_i32, %c0_i32_0 : i32, i32
  }
  func.func @transform_6(%arg0: i32) -> (i32, i32) {
    %c0_i32 = arith.constant 0 : i32
    %c0_i32_0 = arith.constant 0 : i32
    return %arg0, %c0_i32 : i32, i32
  }
}

</mosaic_0001>

<bundles_post_ra>
// kernel: hpfb_forward.2
= control target key start
LH: loop header
LB: loop body
LE: loop exit
PB: predicated region body
PF: predicated region fallthrough
CT: control target
= control target key end

     0   :  { %9 = vsyncpa [#allocation3], 0  ;;  %s3252_s15 = smov 0   ;;  %s3254_s16 = smov 0   ;;  %s4316_s0 = inlined_call_operand.vmem [shape: bf16[2,24,18,64], index: 0, kind: input, shape index: {}, may-alias: {0,1}]   ;;  %s4317_s1 = inlined_call_operand.vmem [shape: bf16[2,24,18,64], index: 1, kind: input, shape index: {}, may-alias: {0,1}]   ;;  %s4318_s2 = inlined_call_operand.vmem [shape: bf16[9,64,27], index: 2, kind: input, shape index: {}]   ;;  %s4319_s3 = inlined_call_operand.hbm [shape: f32[1,27], index: 3, kind: input, shape index: {}]   ;;  %s4320_s4 = inlined_call_operand.vmem [shape: f32[2,16,16,27], index: 4, kind: output, shape index: {}]  }
   0x1   :  { %s3256_s17 = smov 0   ;;  %s3258_s18 = smov 0  }
   0x2   :  { %s3260_s19 = smov 0  }
   0x3 LB: > { %s2418_s20 = sadd.s32 4294967295, %s3224_s19   ;;  %s24_s21 = sadd.s32 1, %s3216_s17  ;;  %s3224_s19 = sphi %s3260_s19, %s15_s19   ;;  %s3220_s18 = sphi %s3258_s18, %s4375_s18   ;;  %s3216_s17 = sphi %s3256_s17, %s4374_s17   ;;  %s3212_s16 = sphi %s3254_s16, %s4373_s16   ;;  %s3208_s15 = sphi %s3252_s15, %s4372_s15  }
   0x4   : > { %p25_p0 = scmp.ge.s32.totalorder %s24_s21, 2  ;;  %s27_s22 = sadd.s32 1, %s3220_s18 }
   0x5   : > { %p2422_p1 = scmp.ge.s32.totalorder %s3224_s19, 1  ;;  %p162_p2 = scmp.lt.s32.totalorder %s3224_s19, 5 }
   0x6   : > { %s4377_s21 = smov (%p25_p0, %s24_s21), 0  ;;  %s4379_s22 = smov (!%p25_p0, %s27_s22), %s3220_s18 }
   0x7   : > { %p3285_p3 = pnand %p2422_p1, %p162_p2  ;;  %p29_p4 = scmp.ge.s32.totalorder %s4379_s22, 2 }
   0x8   : > { %p3289_p5 = scmp.eq.s32.totalorder %s2418_s20, 0  ;;  %s3226_s25 = smov [#allocation2]  }
   0x9   : > { %p2999_p6 = pneg %p3285_p3  ;;  %s4381_s22 = smov (%p29_p4, %s4379_s22), 0 }
   0xa   : > { %s178_s26 = sshll.u32 %s3226_s25, 4  ;;  %s179_s26 = int_to_ptr.vmem [resolvable:$true] %s178_s26 }
   0xb   : > { %p3000_p7 = pnand %p3289_p5, %p2999_p6  ;;  %s3167_s27 = scalar_lea.vmem %s179_s26, 16 }
   0xc   : > { %p3168_p9 = scmp.ne.s32.totalorder %s179_s26, %s3167_s27  ;;  %s3174_s28 = scalar_lea.vmem %s179_s26, 32 }
   0xd   : > { %p3158_p8 = pneg %p3000_p7  ;;  %p3175_p12 = scmp.lt.s32.totalorder %s179_s26, %s179_s26 }
   0xe   : > { %p3176_p13 = scmp.lt.s32.totalorder %s3174_s28, %s3167_s27 }
   0xf   : > { %p3170_p10 = pnand %p3168_p9, %p3158_p8 }
  0x10   : > { %p3177_p0 = por %p3176_p13, %p3175_p12 }
  0x11   : > { %p3171_p11 = pneg %p3170_p10 }
  0x13   : > { %p3178_p1 = pnand %p3177_p0, %p3171_p11 }
  0x15   : > { %3181 = shalt.err (!%p3178_p1)
}
  0x16   : > { %3002 = dma.hbm_to_vmem [thread:$0]  (!%p3000_p7), %s4319_s3, 16, %s179_s26, [#allocation3]  }
  0x17   : > { %223 = sbr.rel (%p3285_p3) target bundleno = 452 (0x1c4), region = 36 }
  0x1c   : > { %3203 = dma.done.wait (%p3289_p5), [#allocation3], 16  }
  0x1d   : > { %3205 = vsyncadd (%p3289_p5), [#allocation3], 4294967280  ;;  %s3309_s5 = sshll.u32 %s3208_s15, 3  ;;  %p272_p2 = scmp.lt.s32.totalorder %s3212_s16, 1  ;;  %vm347_vm0 = vsmask.f32 3328 }
  0x1e   : > { %p274_p4 = scmp.lt.s32.totalorder %s3309_s5, 23  ;;  %v3046_v0 = vld [vmem:[%s4318_s2 + $0x38] sm:$0xff]   ;;  %v3047_v1 = vld [vmem:[%s4318_s2 + $0x30] sm:$0xff]   ;;  %vm348_vm1 = vsmask.f32 7440  ;;  %v3048_v2 = vld [vmem:[%s4318_s2 + $0x28] sm:$0xff]  }
  0x1f   : > { %s4383_s16 = smov (!%p272_p2, %s3212_s16), 1  ;;  %2768 = vmatprep.subr.bf16.mxu0 %v3046_v0  ;;  %2984 = vmatprep.subr.bf16.mxu1 %v3046_v0  ;;  %vm599_vm2 = vcmask 523264   ;;  %v3049_v18 = vld [vmem:[%s4318_s2 + $0x20] sm:$0xff]   ;;  %vm3373_vm3 = vmor %vm347_vm0, %vm348_vm1  ;;  %v3390_v44 = vld [vmem:[%s4318_s2 + $0x18] sm:$0xff]   ;;  %s2659_s10 = sadd.s32 8, %s3309_s5  ;;  %vm914_vm4 = vcmask 1042432  }
  0x20   : > { %s275_s6 = scalar_select %p274_p4, %s3309_s5, 23  ;;  %2769 = vmatpush3.bf16.msra.mxu0 %v3046_v0  ;;  %2988 = vmatpush3.bf16.msra.mxu1 %v3046_v0  ;;  %v3051_v50 = vld [vmem:[%s4318_s2 + $0x58] sm:$0xff]   ;;  %vm915_vm5 = vcmask 1046532   ;;  %v3076_v29 = vld [vmem:[%s4318_s2 + $0xb0] sm:$0xff]   ;;  %vm2269_vm8 = vcmask 220160  }
  0x21   : > { %s2993_s7 = smul.u32 72, %s4383_s16  ;;  %2770 = vmatprep.subr.bf16.mxu0 %v3047_v1  ;;  %2985 = vmatprep.subr.bf16.mxu1 %v3047_v1  ;;  %p3481_p3 = scmp.lt.s32.totalorder %s2659_s10, 23  ;;  %vm3543_vm6 = vmor %vm914_vm4, %vm915_vm5 }
  0x22   : > { %s2992_s8 = smul.u32 3, %s275_s6  ;;  %p300_p5 = scmp.lt.s32.totalorder %s3309_s5, 15 }
  0x23   : > { %s4385_s10 = smov (!%p3481_p3, %s2659_s10), 23 }
  0x24   : > { %s278_s11 = sadd.s32 %s2993_s7, %s2992_s8  ;;  %2771 = vmatpush3.bf16.msra.mxu0 %v3047_v1  ;;  %2989 = vmatpush3.bf16.msra.mxu1 %v3047_v1  ;;  %s4387_s5 = smov (!%p300_p5, %s3309_s5), 15 }
  0x25   : > { %s2428_s14 = sshll.u32 %s278_s11, 2  ;;  %2772 = vmatprep.subr.bf16.mxu0 %v3048_v2  ;;  %2986 = vmatprep.subr.bf16.mxu1 %v3048_v2  ;;  %s2994_s11 = smul.u32 3, %s4385_s10 }
  0x26   : > { %s3329_s23 = scalar_lea.vmem %s4316_s0, %s2428_s14 }
  0x27   : > { %v3335_v3 = vld [vmem:[%s3329_s23] sm:$0xf]  ;;  %v3338_v4 = vld [vmem:[%s3329_s23 + $0x4] sm:$0xf]  ;;  %v3341_v5 = vld [vmem:[%s3329_s23 + $0x8] sm:$0x1]  ;;  %s291_s15 = sadd.s32 %s2994_s11, %s2993_s7 }
  0x28   : > { %v351_v6 = vshrl.u32 %v3335_v3, 16  ;;  %v354_v7 = vshll.u32 %v3335_v3, 16  ;;  %v360_v8 = vshll.u32 %v3338_v4, 16  ;;  %v364_v9 = vshrl.u32 %v3338_v4, 16  ;;  %v3348_v10 = vld [vmem:[%s3329_s23 + $0x30] sm:$0xf]  ;;  %2773 = vmatpush3.bf16.msra.mxu0 %v3048_v2  ;;  %2990 = vmatpush3.bf16.msra.mxu1 %v3048_v2 }
  0x29   : > { %v370_v11 = vshll.u32 %v3341_v5, 16  ;;  %v3352_v12 = vld [vmem:[%s3329_s23 + $0x34] sm:$0xf]  ;;  %v3355_v13 = vld [vmem:[%s3329_s23 + $0x38] sm:$0x1]  ;;  %v447_v20 = vshrl.u32 %v3348_v10, 16  ;;  %2774 = vmatprep.subr.bf16.mxu0 %v3049_v18  ;;  %2987 = vmatprep.subr.bf16.mxu1 %v3049_v18 }
  0x2a   : > { %v353_v14 = vrot.slane %v351_v6, 4  ;;  %v356_v15 = vrot.slane %v354_v7, 5  ;;  %v362_v16 = vrot.slane %v360_v8, 5  ;;  %v366_v17 = vrot.slane %v364_v9, 4  ;;  %v3366_v27 = vld [vmem:[%s3329_s23 + $0xc] sm:$0xf] }
  0x2b   : > { %v372_v19 = vrot.slane %v370_v11, 5  ;;  %v450_v21 = vshll.u32 %v3348_v10, 16  ;;  %v456_v22 = vshll.u32 %v3352_v12, 16  ;;  %v460_v25 = vshrl.u32 %v3352_v12, 16  ;;  %v3369_v28 = vld [vmem:[%s3329_s23 + $0x10] sm:$0xf] }
  0x2c   : > { %v357_v23 = vor.u32 %v356_v15, %v353_v14  ;;  %v367_v24 = vor.u32 %v366_v17, %v362_v16  ;;  %v466_v26 = vshll.u32 %v3355_v13, 16  ;;  %v922_v30 = vrot.slane %v3341_v5, 5  ;;  %v3379_v38 = vld [vmem:[%s3329_s23 + $0x14] sm:$0x1]  ;;  %v3385_v43 = vld [vmem:[%s3329_s23 + $0x3c] sm:$0xf]  ;;  %2775 = vmatpush3.bf16.msra.mxu0 %v3049_v18  ;;  %2991 = vmatpush3.bf16.msra.mxu1 %v3049_v18 }
  0x2d   : > { %v449_v31 = vrot.slane %v447_v20, 4  ;;  %v452_v32 = vrot.slane %v450_v21, 5  ;;  %v458_v33 = vrot.slane %v456_v22, 5  ;;  %v462_v36 = vrot.slane %v460_v25, 4  ;;  %v3398_v49 = vld [vmem:[%s3329_s23 + $0x40] sm:$0xf]  ;;  %2792 = vmatprep.subr.bf16.mxu1 %v3390_v44  ;;  %2816 = vmatprep.subr.bf16.mxu0 %v3051_v50 }
  0x2e   : > { %v358_v34 = vrot.slane %v357_v23, 4  ;;  %v368_v35 = vrot.slane %v367_v24, 4  ;;  %v468_v37 = vrot.slane %v466_v26, 5  ;;  %v375_v40 = vshrl.u32 %v3366_v27, 16  ;;  %v3404_v55 = vld [vmem:[%s3329_s23 + $0x44] sm:$0x1] }
  0x2f   : > { %v453_v39 = vor.u32 %v452_v32, %v449_v31  ;;  %v378_v41 = vshll.u32 %v3366_v27, 16  ;;  %v384_v42 = vshll.u32 %v3369_v28, 16  ;;  %v463_v47 = vor.u32 %v462_v36, %v458_v33  ;;  %v3421_v14 = vld [vmem:[%s3329_s23 + $0x18] sm:$0xf]  ;;  %v3433_v23 = vld [vmem:[%s3329_s23 + $0x20] sm:$0x1] }
  0x30   : > { %v363_v45 = vsel %vm3373_vm3, %v358_v34, %v362_v16  ;;  %v373_v46 = vsel %vm3373_vm3, %v368_v35, %v372_v19  ;;  %v388_v48 = vshrl.u32 %v3369_v28, 16  ;;  %v377_v53 = vrot.slane %v375_v40, 4  ;;  %v3426_v19 = vld [vmem:[%s3329_s23 + $0x1c] sm:$0xf]  ;;  %v3053_v36 = vld [vmem:[%s4318_s2 + $0x50] sm:$0xff]   ;;  %s2431_s20 = sshll.u32 %s291_s15, 2 }
  0x31   : > { %v2444_v51 = vcombine.low %v363_v45, %v373_v46  ;;  %v454_v52 = vrot.slane %v453_v39, 4  ;;  %v380_v54 = vrot.slane %v378_v41, 5  ;;  %v464_v56 = vrot.slane %v463_v47, 4  ;;  %v3451_v46 = vld [vmem:[%s3329_s23 + $0x4c] sm:$0xf]  ;;  %s3665_s27 = scalar_lea.vmem %s4317_s1, %s2431_s20 }
  0x32   : > { %v386_v57 = vrot.slane %v384_v42, 5  ;;  %v390_v58 = vrot.slane %v388_v48, 4  ;;  %v394_v59 = vshll.u32 %v3379_v38, 16  ;;  %v926_v62 = vrot.slane %v3369_v28, 5 }
  0x33   : > { %2776 = vmatprep.mubr.msk.bf16.mxu0 %vm599_vm2, %v2444_v51  ;;  %v459_v60 = vsel %vm3373_vm3, %v454_v52, %v458_v33  ;;  %v381_v61 = vor.u32 %v380_v54, %v377_v53  ;;  %v929_v63 = vrot.slane %v3379_v38, 5  ;;  %v469_v0 = vsel %vm3373_vm3, %v464_v56, %v468_v37  ;;  %v3440_v33 = vld [vmem:[%s3329_s23 + $0x48] sm:$0xf] }
  0x34   : > { %v391_v1 = vor.u32 %v390_v58, %v386_v57  ;;  %v396_v2 = vrot.slane %v394_v59, 5  ;;  %v471_v6 = vshrl.u32 %v3385_v43, 16  ;;  %v3416_v7 = vcombine.low %v459_v60, %v469_v0  ;;  %v3459_v58 = vld [vmem:[%s3329_s23 + $0x50] sm:$0x1] }
  0x35   : > { %v382_v8 = vrot.slane %v381_v61, 4  ;;  %v474_v9 = vshll.u32 %v3385_v43, 16  ;;  %v480_v11 = vshll.u32 %v3398_v49, 16  ;;  %v484_v17 = vshrl.u32 %v3398_v49, 16 }
  0x36   : > { %v392_v15 = vrot.slane %v391_v1, 4  ;;  %v473_v16 = vrot.slane %v471_v6, 4  ;;  %v490_v18 = vshll.u32 %v3404_v55, 16  ;;  %2784 = vmatprep.mubr.msk.bf16.mxu1 %vm599_vm2, %v3416_v7  ;;  %v399_v24 = vshrl.u32 %v3421_v14, 16  ;;  %v3465_v1 = vld [vmem:[%s3329_s23 + $0x24] sm:$0xf] }
  0x37   : > { %v387_v20 = vsel %vm3373_vm3, %v382_v8, %v386_v57  ;;  %v476_v21 = vrot.slane %v474_v9, 5  ;;  %v482_v22 = vrot.slane %v480_v11, 5  ;;  %v486_v26 = vrot.slane %v484_v17, 4  ;;  %v3052_v6 = vld [vmem:[%s4318_s2 + $0x10] sm:$0xff]  }
  0x38   : > { %v397_v25 = vsel %vm3373_vm3, %v392_v15, %v396_v2  ;;  %v492_v31 = vrot.slane %v490_v18, 5  ;;  %v402_v32 = vshll.u32 %v3421_v14, 16  ;;  %v401_v37 = vrot.slane %v399_v24, 4  ;;  %v3477_v15 = vld [vmem:[%s3329_s23 + $0x28] sm:$0xf] }
  0x39   : > { %v3442_v34 = vcombine.low %v387_v20, %v397_v25  ;;  %v477_v35 = vor.u32 %v476_v21, %v473_v16  ;;  %v408_v39 = vshll.u32 %v3426_v19, 16  ;;  %v487_v40 = vor.u32 %v486_v26, %v482_v22  ;;  %v3489_v21 = vld [vmem:[%s3329_s23 + $0x2c] sm:$0x1] }
  0x3a   : > { %v404_v41 = vrot.slane %v402_v32, 5  ;;  %v412_v42 = vshrl.u32 %v3426_v19, 16  ;;  %v418_v45 = vshll.u32 %v3433_v23, 16  ;;  %v495_v51 = vshrl.u32 %v3440_v33, 16  ;;  %v3498_v32 = vld [vmem:[%s3329_s23 + $0x58] sm:$0xf] }
  0x3b   : > { %2777 = vmatmul.mubr.msk.bf16.vlgmr.msra.gmra.mxu0 %vm599_vm2, %v3442_v34  ;;  %v478_v47 = vrot.slane %v477_v35, 4  ;;  %v410_v48 = vrot.slane %v408_v39, 5  ;;  %v498_v52 = vshll.u32 %v3440_v33, 16  ;;  %v488_v53 = vrot.slane %v487_v40, 4  ;;  %v3057_v35 = vld [vmem:[%s4318_s2 + $0x40] sm:$0xff]  }
  0x3c   : > { %2817 = vmatpush3.bf16.msra.mxu0 %v3051_v50  ;;  %v405_v54 = vor.u32 %v404_v41, %v401_v37  ;;  %v414_v56 = vrot.slane %v412_v42, 4  ;;  %v420_v57 = vrot.slane %v418_v45, 5  ;;  %v497_v60 = vrot.slane %v495_v51, 4  ;;  %v3055_v50 = vld [vmem:[%s4318_s2 + $0x48] sm:$0xff]  }
  0x3d   : > { %v483_v59 = vsel %vm3373_vm3, %v478_v47, %v482_v22  ;;  %2818 = vmatprep.subr.bf16.mxu0 %v3053_v36  ;;  %v500_v61 = vrot.slane %v498_v52, 5  ;;  %v504_v0 = vshll.u32 %v3451_v46, 16  ;;  %v493_v2 = vsel %vm3373_vm3, %v488_v53, %v492_v31  ;;  %v3492_v22 = vld [vmem:[%s3329_s23 + $0x54] sm:$0xf]  ;;  %v3054_v41 = vld [vmem:[%s4318_s2 + $0x8] sm:$0xff]  }
  0x3e   : > { %v406_v8 = vrot.slane %v405_v54, 4  ;;  %v415_v9 = vor.u32 %v414_v56, %v410_v48  ;;  %v508_v11 = vshrl.u32 %v3451_v46, 16  ;;  %v3485_v16 = vcombine.low %v483_v59, %v493_v2  ;;  %v3519_v56 = vld [vmem:[%s3329_s23 + $0x5c] sm:$0x1]  ;;  %s2433_s23 = sshll.u32 %s4387_s5, 1 }
  0x3f   : > { %v501_v17 = vor.u32 %v500_v61, %v497_v60  ;;  %v506_v18 = vrot.slane %v504_v0, 5  ;;  %v514_v20 = vshll.u32 %v3459_v58, 16  ;;  %v423_v31 = vshrl.u32 %v3465_v1, 16 }
  0x40   : > { %2819 = vmatpush3.bf16.msra.mxu0 %v3053_v36  ;;  %v411_v24 = vsel %vm3373_vm3, %v406_v8, %v410_v48  ;;  %v416_v25 = vrot.slane %v415_v9, 4  ;;  %v510_v26 = vrot.slane %v508_v11, 4  ;;  %2785 = vmatmul.mubr.msk.bf16.vlgmr.msra.gmra.mxu1 %vm599_vm2, %v3485_v16  ;;  %v426_v36 = vshll.u32 %v3465_v1, 16  ;;  %v3531_v9 = vld [vmem:[%s4318_s2 + $0x98] sm:$0xff]  }
  0x41   : > { %v502_v37 = vrot.slane %v501_v17, 4  ;;  %v516_v39 = vrot.slane %v514_v20, 5  ;;  %v432_v40 = vshll.u32 %v3477_v15, 16  ;;  %2820 = vmatprep.subr.bf16.mxu0 %v3055_v50  ;;  %2793 = vmatpush3.bf16.msra.mxu1 %v3390_v44  ;;  %v425_v47 = vrot.slane %v423_v31, 4  ;;  %v3056_v31 = vld [vmem:[%s4318_s2] sm:$0xff]  }
  0x42   : > { %v421_v42 = vsel %vm3373_vm3, %v416_v25, %v420_v57  ;;  %v511_v45 = vor.u32 %v510_v26, %v506_v18  ;;  %v436_v48 = vshrl.u32 %v3477_v15, 16  ;;  %2794 = vmatprep.subr.bf16.mxu1 %v3052_v6  ;;  %v428_v53 = vrot.slane %v426_v36, 5 }
  0x43   : > { %v3514_v51 = vcombine.low %v411_v24, %v421_v42  ;;  %v507_v52 = vsel %vm3373_vm3, %v502_v37, %v506_v18  ;;  %v434_v54 = vrot.slane %v432_v40, 5  ;;  %v442_v44 = vshll.u32 %v3489_v21, 16 }
  0x44   : > { %v512_v59 = vrot.slane %v511_v45, 4  ;;  %v438_v60 = vrot.slane %v436_v48, 4  ;;  %v519_v57 = vshrl.u32 %v3492_v22, 16  ;;  %2821 = vmatpush3.bf16.msra.mxu0 %v3055_v50  ;;  %v429_v61 = vor.u32 %v428_v53, %v425_v47 }
  0x45   : > { %2780 = vmatprep.mubr.msk.bf16.mxu0 %vm599_vm2, %v3514_v51  ;;  %v522_v0 = vshll.u32 %v3492_v22, 16  ;;  %v528_v2 = vshll.u32 %v3498_v32, 16  ;;  %v532_v8 = vshrl.u32 %v3498_v32, 16  ;;  %2822 = vmatprep.subr.bf16.mxu0 %v3057_v35  ;;  %v444_v17 = vrot.slane %v442_v44, 5 }
  0x46   : > { %2795 = vmatpush3.bf16.msra.mxu1 %v3052_v6  ;;  %v517_v50 = vsel %vm3373_vm3, %v512_v59, %v516_v39  ;;  %v439_v11 = vor.u32 %v438_v60, %v434_v54  ;;  %v521_v18 = vrot.slane %v519_v57, 4  ;;  %v430_v24 = vrot.slane %v429_v61, 4 }
  0x47   : > { %v3535_v20 = vcombine.low %v507_v52, %v517_v50  ;;  %v524_v25 = vrot.slane %v522_v0, 5  ;;  %v530_v26 = vrot.slane %v528_v2, 5  ;;  %2796 = vmatprep.subr.bf16.mxu1 %v3054_v41  ;;  %v534_v36 = vrot.slane %v532_v8, 4 }
  0x48   : > { %v440_v37 = vrot.slane %v439_v11, 4  ;;  %v538_v6 = vshll.u32 %v3519_v56, 16  ;;  %2823 = vmatpush3.bf16.msra.mxu0 %v3057_v35  ;;  %v2484_v40 = vrot.slane %v3335_v3, 9  ;;  %v435_v42 = vsel %vm3373_vm3, %v430_v24, %v434_v54  ;;  %v3556_v35 = vld [vmem:[%s4318_s2 + $0x78] sm:$0xff]  }
  0x49   : > { %2788 = vmatprep.mubr.msk.bf16.mxu1 %vm599_vm2, %v3535_v20  ;;  %v525_v45 = vor.u32 %v524_v25, %v521_v18  ;;  %v919_v47 = vrot.slane %v3338_v4, 5  ;;  %2864 = vmatprep.subr.bf16.mxu0 %v3531_v9  ;;  %v535_v52 = vor.u32 %v534_v36, %v530_v26  ;;  %v2485_v59 = vrot.slane %v3366_v27, 9 }
  0x4a   : > { %v445_v48 = vsel %vm3373_vm3, %v440_v37, %v444_v17  ;;  %v540_v53 = vrot.slane %v538_v6, 5  ;;  %2797 = vmatpush3.bf16.msra.mxu1 %v3054_v41  ;;  %v2464_v0 = vcombine.low %v3335_v3, %v3338_v4  ;;  %v928_v41 = vrot.slane %v926_v62, 4 }
  0x4b   : > { %v3562_v60 = vcombine.low %v435_v42, %v445_v48  ;;  %v526_v54 = vrot.slane %v525_v45, 4  ;;  %2798 = vmatprep.subr.bf16.mxu1 %v3056_v31  ;;  %v920_v44 = vsel %vm3543_vm6, %v2484_v40, %v919_v47  ;;  %v921_v57 = vrot.slane %v919_v47, 4  ;;  %v3065_v42 = vld [vmem:[%s4318_s2 + $0x90] sm:$0xff]  }
  0x4c   : > { %v536_v61 = vrot.slane %v535_v52, 4  ;;  %v927_v2 = vsel %vm3543_vm6, %v2485_v59, %v926_v62  ;;  %v2486_v3 = vrot.slane %v3421_v14, 9  ;;  %v933_v4 = vrot.slane %v3426_v19, 5 }
  0x4d   : > { %2781 = vmatmul.mubr.msk.bf16.gmra.mxu0 %vm599_vm2, %v3562_v60  ;;  %v531_v8 = vsel %vm3373_vm3, %v526_v54, %v530_v26  ;;  %v923_v50 = vsel %vm3543_vm6, %v921_v57, %v922_v30  ;;  %v930_v17 = vsel %vm3543_vm6, %v928_v41, %v929_v63  ;;  %v936_v5 = vrot.slane %v3433_v23, 5  ;;  %v3069_v54 = vld [vmem:[%s4318_s2 + $0x88] sm:$0xff]  }
  0x4e   : > { %v541_v11 = vsel %vm3373_vm3, %v536_v61, %v540_v53  ;;  %2799 = vmatpush3.bf16.msra.mxu1 %v3056_v31  ;;  %v2500_v62 = vcombine.low %v920_v44, %v923_v50  ;;  %v934_v30 = vsel %vm3543_vm6, %v2486_v3, %v933_v4  ;;  %v935_v24 = vrot.slane %v933_v4, 4  ;;  %v3073_v50 = vld [vmem:[%s4318_s2 + $0x80] sm:$0xff]   ;;  %v335_v4 = vld [vmem:[%s3665_s27 + $0x8] sm:$0x1] }
  0x4f   : > { %v3591_v18 = vcombine.low %v531_v8, %v541_v11  ;;  %2840 = vmatprep.subr.bf16.mxu1 %v3556_v35  ;;  %v3597_v25 = vcombine.low %v927_v2, %v930_v17  ;;  %v940_v26 = vrot.slane %v3477_v15, 5  ;;  %v2487_v63 = vrot.slane %v3465_v1, 9  ;;  %v3684_v3 = vld [vmem:[%s3665_s27] sm:$0xf] }
  0x50   : > { %2824 = vmatprep.mubr.msk.bf16.mxu0 %vm599_vm2, %v2500_v62  ;;  %v937_v38 = vsel %vm3543_vm6, %v935_v24, %v936_v5  ;;  %v943_v23 = vrot.slane %v3489_v21, 5  ;;  %v947_v31 = vrot.slane %v3352_v12, 5  ;;  %v2488_v6 = vrot.slane %v3348_v10, 9 }
  0x51   : > { %2789 = vmatmul.mubr.msk.bf16.gmra.mxu1 %vm599_vm2, %v3591_v18  ;;  %v3612_v37 = vcombine.low %v934_v30, %v937_v38  ;;  %v942_v36 = vrot.slane %v940_v26, 4  ;;  %v950_v40 = vrot.slane %v3355_v13, 5  ;;  %v954_v21 = vrot.slane %v3398_v49, 5 }
  0x52   : > { %2800 = vmatprep.mubr.msk.bf16.mxu1 %vm599_vm2, %v2464_v0  ;;  %v949_v45 = vrot.slane %v947_v31, 4  ;;  %v3622_v47 = vcombine.low %v3366_v27, %v3369_v28  ;;  %v3628_v48 = vcombine.low %v3421_v14, %v3426_v19  ;;  %v941_v13 = vsel %vm3543_vm6, %v2487_v63, %v940_v26  ;;  %v3064_v28 = vld [vmem:[%s4318_s2 + $0x70] sm:$0xff]  }
  0x53   : > { %v944_v27 = vsel %vm3543_vm6, %v942_v36, %v943_v23  ;;  %v948_v14 = vsel %vm3543_vm6, %v2488_v6, %v947_v31  ;;  %v2489_v19 = vrot.slane %v3385_v43, 9  ;;  %v961_v52 = vrot.slane %v3451_v46, 5 }
  0x54   : > { %v956_v53 = vrot.slane %v954_v21, 4  ;;  %v957_v59 = vrot.slane %v3404_v55, 5  ;;  %v2490_v44 = vrot.slane %v3440_v33, 9  ;;  %v964_v57 = vrot.slane %v3459_v58, 5  ;;  %v3068_v55 = vld [vmem:[%s4318_s2 + $0x68] sm:$0xff]  }
  0x55   : > { %2825 = vmatmul.mubr.msk.bf16.vlgmr.msra.gmra.mxu0 %vm599_vm2, %v3597_v25  ;;  %v3656_v61 = vcombine.low %v941_v13, %v944_v27  ;;  %v963_v0 = vrot.slane %v961_v52, 4  ;;  %v2491_v2 = vrot.slane %v3492_v22, 9  ;;  %v3672_v58 = vcombine.low %v3465_v1, %v3477_v15 }
  0x56   : > { %2865 = vmatpush3.bf16.msra.mxu0 %v3531_v9  ;;  %2828 = vmatprep.mubr.msk.bf16.mxu0 %vm599_vm2, %v3612_v37  ;;  %v951_v9 = vsel %vm3543_vm6, %v949_v45, %v950_v40  ;;  %v3676_v41 = vcombine.low %v3348_v10, %v3352_v12  ;;  %v955_v1 = vsel %vm3543_vm6, %v2489_v19, %v954_v21  ;;  %v968_v12 = vrot.slane %v3498_v32, 5 }
  0x57   : > { %2866 = vmatprep.subr.bf16.mxu0 %v3065_v42  ;;  %v3678_v8 = vcombine.low %v948_v14, %v951_v9  ;;  %v958_v10 = vsel %vm3543_vm6, %v956_v53, %v957_v59  ;;  %v1322_v15 = vshrl.u32 %v3684_v3, 16  ;;  %v971_v11 = vrot.slane %v3519_v56, 5  ;;  %v3072_v56 = vld [vmem:[%s4318_s2 + $0x60] sm:$0xff]   ;;  %v3074_v9 = vld [vmem:[%s4318_s2 + $0xb8] sm:$0xff]  }
  0x58   : > { %v1325_v62 = vshll.u32 %v3684_v3, 16  ;;  %v3704_v30 = vcombine.low %v3385_v43, %v3398_v49  ;;  %v962_v24 = vsel %vm3543_vm6, %v2490_v44, %v961_v52  ;;  %v1341_v38 = vshll.u32 %v335_v4, 16  ;;  %v3718_v43 = vld [vmem:[%s4318_s2 + $0xd8] sm:$0xff]   ;;  %v3736_v52 = vld [vmem:[%s3665_s27 + $0x10] sm:$0xf] }
  0x59   : > { %2801 = vmatmul.mubr.msk.bf16.vlgmr.msra.gmra.mxu1 %vm599_vm2, %v3622_v47  ;;  %v1324_v26 = vrot.slane %v1322_v15, 4  ;;  %v965_v63 = vsel %vm3543_vm6, %v963_v0, %v964_v57  ;;  %v3720_v36 = vcombine.low %v955_v1, %v958_v10  ;;  %v3724_v6 = vcombine.low %v3440_v33, %v3451_v46 }
  0x5a   : > { %2841 = vmatpush3.bf16.msra.mxu1 %v3556_v35  ;;  %2804 = vmatprep.mubr.msk.bf16.mxu1 %vm599_vm2, %v3628_v48  ;;  %v3687_v35 = vld [vmem:[%s3665_s27 + $0x4] sm:$0xf]  ;;  %v1327_v49 = vrot.slane %v1325_v62, 5  ;;  %v970_v40 = vrot.slane %v968_v12, 4  ;;  %v2562_v13 = vrot.slane %v3684_v3, 9  ;;  %v3733_v14 = vcombine.low %v962_v24, %v965_v63 }
  0x5b   : > { %2842 = vmatprep.subr.bf16.mxu1 %v3064_v28  ;;  %2867 = vmatpush3.bf16.msra.mxu0 %v3065_v42  ;;  %v1335_v17 = vshrl.u32 %v3687_v35, 16  ;;  %v1331_v5 = vshll.u32 %v3687_v35, 16  ;;  %v1343_v42 = vrot.slane %v1341_v38, 5  ;;  %v1500_v27 = vrot.slane %v3687_v35, 5 }
  0x5c   : > { %2868 = vmatprep.subr.bf16.mxu0 %v3069_v54  ;;  %v1328_v45 = vor.u32 %v1327_v49, %v1324_v26  ;;  %v1503_v19 = vrot.slane %v335_v4, 5  ;;  %v969_v57 = vsel %vm3543_vm6, %v2491_v2, %v968_v12  ;;  %v972_v0 = vsel %vm3543_vm6, %v970_v40, %v971_v11  ;;  %v338_v2 = vld [vmem:[%s3665_s27 + $0x14] sm:$0x1] }
  0x5d   : > { %2829 = vmatmul.mubr.msk.bf16.gmra.mxu0 %vm599_vm2, %v3656_v61  ;;  %v1333_v23 = vrot.slane %v1331_v5, 5  ;;  %v1337_v31 = vrot.slane %v1335_v17, 4  ;;  %v1502_v44 = vrot.slane %v1500_v27, 4  ;;  %v1821_v62 = vshll.u32 %v3736_v52, 16 }
  0x5e   : > { %2843 = vmatpush3.bf16.msra.mxu1 %v3064_v28  ;;  %2832 = vmatprep.mubr.msk.bf16.mxu0 %vm599_vm2, %v3678_v8  ;;  %v3729_v28 = vld [vmem:[%s3665_s27 + $0xc] sm:$0xf]  ;;  %v1329_v53 = vrot.slane %v1328_v45, 4  ;;  %v1831_v24 = vshll.u32 %v338_v2, 16  ;;  %v1990_v38 = vrot.slane %v3736_v52, 5  ;;  %v1993_v49 = vrot.slane %v338_v2, 5 }
  0x5f   : > { %2844 = vmatprep.subr.bf16.mxu1 %v3068_v55  ;;  %2869 = vmatpush3.bf16.msra.mxu0 %v3069_v54  ;;  %v1338_v21 = vor.u32 %v1337_v31, %v1333_v23  ;;  %v1812_v33 = vshrl.u32 %v3729_v28, 16  ;;  %v1815_v46 = vshll.u32 %v3729_v28, 16  ;;  %v1501_v54 = vsel %vm3543_vm6, %v2562_v13, %v1500_v27  ;;  %s2434_s27 = sshll.u32 %s4383_s16, 5 }
  0x60   : > { %2870 = vmatprep.subr.bf16.mxu0 %v3073_v50  ;;  %v1334_v1 = vsel %vm3373_vm3, %v1329_v53, %v1333_v23  ;;  %v1504_v15 = vsel %vm3543_vm6, %v1502_v44, %v1503_v19  ;;  %v2626_v26 = vrot.slane %v3729_v28, 9  ;;  %v1823_v63 = vrot.slane %v1821_v62, 5  ;;  %v3083_v53 = vld [vmem:[%s4318_s2 + $0xf8] sm:$0xff]   ;;  %s304_s16 = sadd.s32 %s2434_s27, %s2433_s23 }
  0x61   : > { %2805 = vmatmul.mubr.msk.bf16.gmra.mxu1 %vm599_vm2, %v3672_v58  ;;  %v1339_v59 = vrot.slane %v1338_v21, 4  ;;  %v1814_v4 = vrot.slane %v1812_v33, 4  ;;  %v1817_v12 = vrot.slane %v1815_v46, 5  ;;  %v3764_v11 = vcombine.low %v1501_v54, %v1504_v15  ;;  %v3086_v54 = vld [vmem:[%s4318_s2 + $0x110] sm:$0xff]   ;;  %s2435_s5 = sshll.u32 %s304_s16, 3 }
  0x62   : > { %2808 = vmatprep.mubr.msk.bf16.mxu1 %vm599_vm2, %v3676_v41  ;;  %2845 = vmatpush3.bf16.msra.mxu1 %v3068_v55  ;;  %v1825_v55 = vshrl.u32 %v3736_v52, 16  ;;  %v3773_v31 = vsel %vm3543_vm6, %v2626_v26, %v1990_v38  ;;  %v1992_v40 = vrot.slane %v1990_v38, 4  ;;  %v1833_v45 = vrot.slane %v1831_v24, 5  ;;  %s4219_s29 = scalar_lea.vmem %s4320_s4, %s2435_s5 }
  0x63   : > { %2846 = vmatprep.subr.bf16.mxu1 %v3072_v56  ;;  %2871 = vmatpush3.bf16.msra.mxu0 %v3073_v50  ;;  %v1344_v10 = vsel %vm3373_vm3, %v1339_v59, %v1343_v42  ;;  %v1818_v5 = vor.u32 %v1817_v12, %v1814_v4  ;;  %v3777_v42 = vcombine.low %v969_v57, %v972_v0 }
  0x64   : > { %2912 = vmatprep.subr.bf16.mxu0 %v3718_v43  ;;  %v3762_v50 = vcombine.low %v1334_v1, %v1344_v10  ;;  %v1827_v17 = vrot.slane %v1825_v55, 4  ;;  %v3785_v13 = vsel %vm3543_vm6, %v1992_v40, %v1993_v49  ;;  %v3791_v33 = vcombine.low %v3492_v22, %v3498_v32  ;;  %v3077_v22 = vld [vmem:[%s4318_s2 + $0xd0] sm:$0xff]   ;;  %v3078_v32 = vld [vmem:[%s4318_s2 + $0xa8] sm:$0xff]  }
  0x65   : > { %2833 = vmatmul.mubr.msk.bf16.gmra.mxu0 %vm599_vm2, %v3720_v36  ;;  %v1819_v23 = vrot.slane %v1818_v5, 4  ;;  %v2635_v19 = vcombine.low %v3773_v31, %v3785_v13  ;;  %v2528_v59 = vcombine.low %v3684_v3, %v3687_v35  ;;  %v3090_v3 = vld [vmem:[%s4318_s2 + $0xe0] sm:$0xff]   ;;  %v2592_v35 = vcombine.low %v3729_v28, %v3736_v52 }
  0x66   : > { %2836 = vmatprep.mubr.msk.bf16.mxu0 %vm599_vm2, %v3733_v14  ;;  %2847 = vmatpush3.bf16.msra.mxu1 %v3072_v56  ;;  %v1828_v56 = vor.u32 %v1827_v17, %v1823_v63 }
  0x67   : > { %2888 = vmatprep.subr.bf16.mxu1 %v3074_v9  ;;  %v1824_v21 = vsel %vm3373_vm3, %v1819_v23, %v1823_v63 }
  0x68   : > { %v1829_v27 = vrot.slane %v1828_v56, 4 }
  0x69   : > { %2809 = vmatmul.mubr.msk.bf16.gmra.mxu1 %vm599_vm2, %v3704_v30 }
  0x6a   : > { %2812 = vmatprep.mubr.msk.bf16.mxu1 %vm599_vm2, %v3724_v6  ;;  %v1834_v46 = vsel %vm3373_vm3, %v1829_v27, %v1833_v45 }
  0x6b   : > { %v3799_v39 = vcombine.low %v1824_v21, %v1834_v46 }
  0x6d   : > { %2837 = vmatmul.mubr.msk.bf16.gmra.mxu0 %vm599_vm2, %v3777_v42 }
  0x6e   : > { %2872 = vmatprep.mubr.msk.bf16.mxu0 %vm599_vm2, %v3442_v34  ;;  %v3079_v34 = vld [vmem:[%s4318_s2 + $0xc8] sm:$0xff]  }
  0x71   : > { %2813 = vmatmul.mubr.msk.bf16.gmra.mxu1 %vm599_vm2, %v3791_v33 }
  0x72   : > { %2848 = vmatprep.mubr.msk.bf16.mxu1 %vm599_vm2, %v3622_v47  ;;  %v3082_v47 = vld [vmem:[%s4318_s2 + $0xc0] sm:$0xff]  }
  0x75   : > { %2873 = vmatmul.mubr.msk.bf16.vlgmr.msra.gmra.mxu0 %vm599_vm2, %v3514_v51 }
  0x76   : > { %2913 = vmatpush3.bf16.msra.mxu0 %v3718_v43  ;;  %2876 = vmatprep.mubr.msk.bf16.mxu0 %vm599_vm2, %v3562_v60  ;;  %v3081_v43 = vld [vmem:[%s4318_s2 + $0xa0] sm:$0xff]  }
  0x77   : > { %2914 = vmatprep.subr.bf16.mxu0 %v3077_v22 }
  0x79   : > { %2849 = vmatmul.mubr.msk.bf16.vlgmr.msra.gmra.mxu1 %vm599_vm2, %v3628_v48 }
  0x7a   : > { %2889 = vmatpush3.bf16.msra.mxu1 %v3074_v9  ;;  %2852 = vmatprep.mubr.msk.bf16.mxu1 %vm599_vm2, %v3672_v58  ;;  %v3084_v9 = vld [vmem:[%s4318_s2 + $0x118] sm:$0xff]  }
  0x7b   : > { %2890 = vmatprep.subr.bf16.mxu1 %v3076_v29  ;;  %2915 = vmatpush3.bf16.msra.mxu0 %v3077_v22 }
  0x7c   : > { %2916 = vmatprep.subr.bf16.mxu0 %v3079_v34 }
  0x7d   : > { %2877 = vmatmul.mubr.msk.bf16.gmra.mxu0 %vm599_vm2, %v3416_v7 }
  0x7e   : > { %2891 = vmatpush3.bf16.msra.mxu1 %v3076_v29  ;;  %2880 = vmatprep.mubr.msk.bf16.mxu0 %vm599_vm2, %v3485_v16 }
  0x7f   : > { %2892 = vmatprep.subr.bf16.mxu1 %v3078_v32  ;;  %2917 = vmatpush3.bf16.msra.mxu0 %v3079_v34 }
  0x80   : > { %2918 = vmatprep.subr.bf16.mxu0 %v3082_v47 }
  0x81   : > { %2853 = vmatmul.mubr.msk.bf16.gmra.mxu1 %vm599_vm2, %v3676_v41 }
  0x82   : > { %2856 = vmatprep.mubr.msk.bf16.mxu1 %vm599_vm2, %v3704_v30  ;;  %2893 = vmatpush3.bf16.msra.mxu1 %v3078_v32 }
  0x83   : > { %2894 = vmatprep.subr.bf16.mxu1 %v3081_v43  ;;  %2919 = vmatpush3.bf16.msra.mxu0 %v3082_v47 }
  0x84   : > { %2960 = vmatprep.subr.bf16.mxu0 %v3084_v9 }
  0x85   : > { %2881 = vmatmul.mubr.msk.bf16.gmra.mxu0 %vm599_vm2, %v3535_v20 }
  0x86   : > { %2884 = vmatprep.mubr.msk.bf16.mxu0 %vm599_vm2, %v3591_v18  ;;  %2895 = vmatpush3.bf16.msra.mxu1 %v3081_v43 }
  0x87   : > { %2936 = vmatprep.subr.bf16.mxu1 %v3083_v53 }
  0x89   : > { %2857 = vmatmul.mubr.msk.bf16.gmra.mxu1 %vm599_vm2, %v3724_v6 }
  0x8a   : > { %2860 = vmatprep.mubr.msk.bf16.mxu1 %vm599_vm2, %v3791_v33 }
  0x8d   : > { %2885 = vmatmul.mubr.msk.bf16.gmra.mxu0 %vm599_vm2, %v3762_v50 }
  0x8e   : > { %2920 = vmatprep.mubr.msk.bf16.mxu0 %vm599_vm2, %v3628_v48  ;;  %v3085_v48 = vld [vmem:[%s4318_s2 + $0xf0] sm:$0xff]  }
  0x91   : > { %2861 = vmatmul.mubr.msk.bf16.gmra.mxu1 %vm599_vm2, %v2528_v59 }
  0x92   : > { %2896 = vmatprep.mubr.msk.bf16.mxu1 %vm599_vm2, %v3597_v25  ;;  %v3088_v25 = vld [vmem:[%s4318_s2 + $0x108] sm:$0xff]  }
  0x95   : > { %2921 = vmatmul.mubr.msk.bf16.vlgmr.msra.gmra.mxu0 %vm599_vm2, %v3672_v58  ;;  %v3087_v58 = vld [vmem:[%s4318_s2 + $0xe8] sm:$0xff]  }
  0x96   : > { %2961 = vmatpush3.bf16.msra.mxu0 %v3084_v9  ;;  %2924 = vmatprep.mubr.msk.bf16.mxu0 %vm599_vm2, %v3676_v41  ;;  %v3091_v41 = vld [vmem:[%s4318_s2 + $0x100] sm:$0xff]  }
  0x97   : > { %2962 = vmatprep.subr.bf16.mxu0 %v3086_v54 }
  0x99   : > { %2897 = vmatmul.mubr.msk.bf16.vlgmr.msra.gmra.mxu1 %vm599_vm2, %v3612_v37 }
  0x9a   : > { %2937 = vmatpush3.bf16.msra.mxu1 %v3083_v53  ;;  %2900 = vmatprep.mubr.msk.bf16.mxu1 %vm599_vm2, %v3656_v61 }
  0x9b   : > { %2938 = vmatprep.subr.bf16.mxu1 %v3085_v48  ;;  %2963 = vmatpush3.bf16.msra.mxu0 %v3086_v54 }
  0x9c   : > { %2964 = vmatprep.subr.bf16.mxu0 %v3088_v25 }
  0x9d   : > { %2925 = vmatmul.mubr.msk.bf16.gmra.mxu0 %vm599_vm2, %v3704_v30 }
  0x9e   : > { %2939 = vmatpush3.bf16.msra.mxu1 %v3085_v48  ;;  %2928 = vmatprep.mubr.msk.bf16.mxu0 %vm599_vm2, %v3724_v6 }
  0x9f   : > { %2940 = vmatprep.subr.bf16.mxu1 %v3087_v58  ;;  %2965 = vmatpush3.bf16.msra.mxu0 %v3088_v25 }
  0xa0   : > { %2966 = vmatprep.subr.bf16.mxu0 %v3091_v41 }
  0xa1   : > { %2901 = vmatmul.mubr.msk.bf16.gmra.mxu1 %vm599_vm2, %v3678_v8 }
  0xa2   : > { %2904 = vmatprep.mubr.msk.bf16.mxu1 %vm599_vm2, %v3720_v36  ;;  %2941 = vmatpush3.bf16.msra.mxu1 %v3087_v58 }
  0xa3   : > { %2942 = vmatprep.subr.bf16.mxu1 %v3090_v3  ;;  %2967 = vmatpush3.bf16.msra.mxu0 %v3091_v41 }
  0xa5   : > { %2929 = vmatmul.mubr.msk.bf16.gmra.mxu0 %vm599_vm2, %v3791_v33 }
  0xa6   : > { %2932 = vmatprep.mubr.msk.bf16.mxu0 %vm599_vm2, %v2528_v59  ;;  %2943 = vmatpush3.bf16.msra.mxu1 %v3090_v3 }
  0xa9   : > { %2905 = vmatmul.mubr.msk.bf16.gmra.mxu1 %vm599_vm2, %v3733_v14 }
  0xaa   : > { %2908 = vmatprep.mubr.msk.bf16.mxu1 %vm599_vm2, %v3777_v42 }
  0xad   : > { %2933 = vmatmul.mubr.msk.bf16.gmra.mxu0 %vm599_vm2, %v2592_v35 }
  0xae   : > { %2968 = vmatprep.mubr.msk.bf16.mxu0 %vm599_vm2, %v3612_v37 }
  0xb1   : > { %2909 = vmatmul.mubr.msk.bf16.gmra.mxu1 %vm599_vm2, %v3764_v11 }
  0xb2   : > { %2944 = vmatprep.mubr.msk.bf16.mxu1 %vm599_vm2, %v3514_v51 }
  0xb5   : > { %2969 = vmatmul.mubr.msk.bf16.vlgmr.msra.gmra.mxu0 %vm599_vm2, %v3656_v61 }
  0xb6   : > { %2972 = vmatprep.mubr.msk.bf16.mxu0 %vm599_vm2, %v3678_v8 }
  0xb9   : > { %2945 = vmatmul.mubr.msk.bf16.vlgmr.msra.gmra.mxu1 %vm599_vm2, %v3562_v60 }
  0xba   : > { %2948 = vmatprep.mubr.msk.bf16.mxu1 %vm599_vm2, %v3416_v7 }
  0xbd   : > { %2973 = vmatmul.mubr.msk.bf16.gmra.mxu0 %vm599_vm2, %v3720_v36 }
  0xbe   : > { %2976 = vmatprep.mubr.msk.bf16.mxu0 %vm599_vm2, %v3733_v14 }
  0xc1   : > { %2949 = vmatmul.mubr.msk.bf16.gmra.mxu1 %vm599_vm2, %v3485_v16 }
  0xc2   : > { %2952 = vmatprep.mubr.msk.bf16.mxu1 %vm599_vm2, %v3535_v20 }
  0xc5   : > { %2977 = vmatmul.mubr.msk.bf16.gmra.mxu0 %vm599_vm2, %v3777_v42 }
  0xc6   : > { %2980 = vmatprep.mubr.msk.bf16.mxu0 %vm599_vm2, %v3764_v11 }
  0xc9   : > { %2953 = vmatmul.mubr.msk.bf16.gmra.mxu1 %vm599_vm2, %v3591_v18 }
  0xca   : > { %2956 = vmatprep.mubr.msk.bf16.mxu1 %vm599_vm2, %v3762_v50 }
  0xcd   : > { %2981 = vmatmul.mubr.msk.bf16.gmra.mxu0 %vm599_vm2, %v2635_v19 }
  0xd1   : > { %2957 = vmatmul.mubr.msk.bf16.gmra.mxu1 %vm599_vm2, %v3799_v39 }
  0xfb   : > { %v2778_v7 = vpop.f32.mrf.mxu0 }
  0xfd   : > { %v658_v51 = vpop.f32.mrf.mxu0 }
  0xff   : > { %v2779_v60 = vpop.f32.mrf.mxu0 }
 0x100   : > { %v2786_v16 = vpop.f32.mrf.mxu1 }
 0x101   : > { %v661_v61 = vpop.f32.mrf.mxu0 }
 0x102   : > { %v690_v20 = vpop.f32.mrf.mxu1 }
 0x104   : > { %v2787_v37 = vpop.f32.mrf.mxu1 }
 0x106   : > { %v693_v8 = vpop.f32.mrf.mxu1 }
 0x10d   : > { %v2782_v18 = vpop.f32.mrf.mxu0 }
 0x10f   : > { %v674_v30 = vpop.f32.mrf.mxu0 }
 0x111   : > { %v2790_v36 = vpop.f32.mrf.mxu1  ;;  %v2783_v6 = vpop.f32.mrf.mxu0 }
 0x113   : > { %v706_v28 = vpop.f32.mrf.mxu1  ;;  %v677_v14 = vpop.f32.mrf.mxu0 }
 0x115   : > { %v2791_v52 = vpop.f32.mrf.mxu1  ;;  %v2826_v44 = vpop.f32.mrf.mxu0 }
 0x117   : > { %v3943_v57 = vpop.f32.mrf.mxu1  ;;  %v1088_v0 = vpop.f32.mrf.mxu0 }
 0x119   : > { %v2802_v55 = vpop.f32.mrf.mxu1  ;;  %v2827_v4 = vpop.f32.mrf.mxu0 }
 0x11a   : > { %v852_v1 = vadd.f32 %v2802_v55, %v2778_v7 }
 0x11b   : > { %v843_v10 = vpop.f32.mrf.mxu1  ;;  %v1091_v15 = vpop.f32.mrf.mxu0 }
 0x11c   : > { %v3945_v2 = vadd.f32 %v2826_v44, %v852_v1  ;;  %v844_v12 = vadd.f32 %v843_v10, %v658_v51 }
 0x11d   : > { %v2803_v50 = vpop.f32.mrf.mxu1  ;;  %v2830_v11 = vpop.f32.mrf.mxu0 }
 0x11e   : > { %v3947_v62 = vadd.f32 %v1088_v0, %v844_v12  ;;  %v855_v17 = vadd.f32 %v2803_v50, %v2779_v60 }
 0x11f   : > { %v846_v5 = vpop.f32.mrf.mxu1  ;;  %v1104_v24 = vpop.f32.mrf.mxu0 }
 0x120   : > { %v3949_v26 = vadd.f32 %v2827_v4, %v855_v17  ;;  %v847_v38 = vadd.f32 %v846_v5, %v661_v61 }
 0x121   : > { %v2806_v63 = vpop.f32.mrf.mxu1  ;;  %v2831_v49 = vpop.f32.mrf.mxu0 }
 0x122   : > { %v3951_v23 = vadd.f32 %v1091_v15, %v847_v38  ;;  %v868_v31 = vadd.f32 %v2806_v63, %v2782_v18 }
 0x123   : > { %v859_v40 = vpop.f32.mrf.mxu1  ;;  %v1107_v42 = vpop.f32.mrf.mxu0 }
 0x124   : > { %v3953_v56 = vadd.f32 %v2830_v11, %v868_v31  ;;  %v860_v45 = vadd.f32 %v859_v40, %v674_v30 }
 0x125   : > { %v2807_v21 = vpop.f32.mrf.mxu1  ;;  %v2834_v13 = vpop.f32.mrf.mxu0 }
 0x126   : > { %v3955_v27 = vadd.f32 %v1104_v24, %v860_v45  ;;  %v871_v19 = vadd.f32 %v2807_v21, %v2783_v6 }
 0x127   : > { %v862_v33 = vpop.f32.mrf.mxu1  ;;  %v1120_v46 = vpop.f32.mrf.mxu0 }
 0x128   : > { %v3957_v39 = vadd.f32 %v2831_v49, %v871_v19  ;;  %v863_v22 = vadd.f32 %v862_v33, %v677_v14 }
 0x129   : > { %v2810_v29 = vpop.f32.mrf.mxu1  ;;  %v2835_v34 = vpop.f32.mrf.mxu0 }
 0x12a   : > { %v3959_v32 = vadd.f32 %v1107_v42, %v863_v22  ;;  %v884_v47 = vadd.f32 %v2810_v29, %v2786_v16 }
 0x12b   : > { %v875_v43 = vpop.f32.mrf.mxu1  ;;  %v1123_v9 = vpop.f32.mrf.mxu0 }
 0x12c   : > { %v3961_v53 = vadd.f32 %v2834_v13, %v884_v47  ;;  %v876_v59 = vadd.f32 %v875_v43, %v690_v20 }
 0x12d   : > { %v2811_v54 = vpop.f32.mrf.mxu1  ;;  %v2838_v48 = vpop.f32.mrf.mxu0 }
 0x12e   : > { %v3963_v25 = vadd.f32 %v1120_v46, %v876_v59  ;;  %v887_v58 = vadd.f32 %v2811_v54, %v2787_v37 }
 0x12f   : > { %v878_v41 = vpop.f32.mrf.mxu1  ;;  %v1136_v3 = vpop.f32.mrf.mxu0 }
 0x130   : > { %v3965_v35 = vadd.f32 %v2835_v34, %v887_v58  ;;  %v879_v7 = vadd.f32 %v878_v41, %v693_v8 }
 0x131   : > { %v2814_v51 = vpop.f32.mrf.mxu1  ;;  %v2839_v60 = vpop.f32.mrf.mxu0 }
 0x132   : > { %v3967_v61 = vadd.f32 %v1123_v9, %v879_v7  ;;  %v900_v16 = vadd.f32 %v2814_v51, %v2790_v36 }
 0x133   : > { %v891_v18 = vpop.f32.mrf.mxu1  ;;  %v1139_v30 = vpop.f32.mrf.mxu0 }
 0x134   : > { %v3969_v6 = vadd.f32 %v2838_v48, %v900_v16  ;;  %v892_v20 = vadd.f32 %v891_v18, %v706_v28 }
 0x135   : > { %v2815_v14 = vpop.f32.mrf.mxu1  ;;  %v3971_v44 = vpop.f32.mrf.mxu0 }
 0x136   : > { %v3973_v0 = vadd.f32 %v1136_v3, %v892_v20  ;;  %v903_v37 = vadd.f32 %v2815_v14, %v2791_v52 }
 0x137   : > { %v894_v55 = vpop.f32.mrf.mxu1  ;;  %v3975_v4 = vpop.f32.mrf.mxu0 }
 0x138   : > { %v3977_v8 = vadd.f32 %v2839_v60, %v903_v37  ;;  %v895_v1 = vadd.f32 %v894_v55, %v3943_v57 }
 0x139   : > { %v2850_v10 = vpop.f32.mrf.mxu1  ;;  %v3980_v36 = vpop.f32.mrf.mxu0 }
 0x13a   : > { %v3982_v15 = vadd.f32 %v1139_v30, %v895_v1 }
 0x13b   : > { %v1242_v12 = vpop.f32.mrf.mxu1  ;;  %v3984_v28 = vpop.f32.mrf.mxu0 }
 0x13d   : > { %v2851_v50 = vpop.f32.mrf.mxu1  ;;  %v3986_v11 = vpop.f32.mrf.mxu0 }
 0x13f   : > { %v1245_v17 = vpop.f32.mrf.mxu1  ;;  %v3988_v52 = vpop.f32.mrf.mxu0 }
 0x141   : > { %v2854_v5 = vpop.f32.mrf.mxu1  ;;  %v3990_v24 = vpop.f32.mrf.mxu0 }
 0x143   : > { %v1258_v38 = vpop.f32.mrf.mxu1  ;;  %v3992_v63 = vpop.f32.mrf.mxu0 }
 0x145   : > { %v2855_v57 = vpop.f32.mrf.mxu1  ;;  %v3994_v49 = vpop.f32.mrf.mxu0 }
 0x147   : > { %v1261_v31 = vpop.f32.mrf.mxu1  ;;  %v3996_v40 = vpop.f32.mrf.mxu0 }
 0x149   : > { %v2858_v42 = vpop.f32.mrf.mxu1  ;;  %v3998_v45 = vpop.f32.mrf.mxu0 }
 0x14b   : > { %v1274_v21 = vpop.f32.mrf.mxu1  ;;  %v4000_v13 = vpop.f32.mrf.mxu0 }
 0x14d   : > { %v2859_v19 = vpop.f32.mrf.mxu1  ;;  %v4002_v33 = vpop.f32.mrf.mxu0 }
 0x14e   : > { %4328 = vst [vmem:[#allocation5_spill] sm:$0xff] %v4002_v33 }
 0x14f   : > { %v1277_v46 = vpop.f32.mrf.mxu1  ;;  %v4004_v22 = vpop.f32.mrf.mxu0 }
 0x150   : > { %4329 = vst [vmem:[#allocation6_spill] sm:$0xff] %v4004_v22 }
 0x151   : > { %v4006_v29 = vpop.f32.mrf.mxu1  ;;  %v4008_v34 = vpop.f32.mrf.mxu0 }
 0x152   : > { %4330 = vst [vmem:[#allocation7_spill] sm:$0xff] %v4008_v34 }
 0x153   : > { %v4010_v47 = vpop.f32.mrf.mxu1  ;;  %v4012_v43 = vpop.f32.mrf.mxu0 }
 0x154   : > { %4331 = vst [vmem:[#allocation8_spill] sm:$0xff] %v4012_v43 }
 0x155   : > { %v4014_v9 = vpop.f32.mrf.mxu1  ;;  %v2922_v59 = vpop.f32.mrf.mxu0 }
 0x157   : > { %v4016_v54 = vpop.f32.mrf.mxu1  ;;  %v1732_v48 = vpop.f32.mrf.mxu0 }
 0x159   : > { %v2898_v58 = vpop.f32.mrf.mxu1  ;;  %v4018_v41 = vpop.f32.mrf.mxu0 }
 0x15b   : > { %v1578_v3 = vpop.f32.mrf.mxu1  ;;  %v4020_v7 = vpop.f32.mrf.mxu0 }
 0x15c   : > { %4332 = vst [vmem:[#allocation9_spill] sm:$0xff] %v4020_v7 }
 0x15d   : > { %v2899_v51 = vpop.f32.mrf.mxu1  ;;  %v4022_v60 = vpop.f32.mrf.mxu0 }
 0x15e   : > { %4333 = vst [vmem:[#allocation10_spill] sm:$0xff] %v4022_v60 }
 0x15f   : > { %v1581_v16 = vpop.f32.mrf.mxu1  ;;  %v4024_v18 = vpop.f32.mrf.mxu0 }
 0x160   : > { %4334 = vst [vmem:[#allocation11_spill] sm:$0xff] %v4024_v18 }
 0x161   : > { %v4026_v30 = vpop.f32.mrf.mxu1  ;;  %v4028_v20 = vpop.f32.mrf.mxu0 }
 0x162   : > { %4335 = vst [vmem:[#allocation12_spill] sm:$0xff] %v4028_v20 }
 0x163   : > { %v4030_v14 = vpop.f32.mrf.mxu1  ;;  %v4032_v37 = vpop.f32.mrf.mxu0 }
 0x164   : > { %4336 = vst [vmem:[#allocation13_spill] sm:$0xff] %v4032_v37  ;;  %v1307_v37 = vadd.f32 %v2850_v10, %v3945_v2  ;;  %v1306_v10 = vadd.f32 %v1245_v17, %v3951_v23  ;;  %v1316_v23 = vadd.f32 %v2859_v19, %v3965_v35 }
 0x165   : > { %v4034_v55 = vpop.f32.mrf.mxu1  ;;  %v4036_v1 = vpop.f32.mrf.mxu0 }
 0x166   : > { %4337 = vst [vmem:[#allocation14_spill] sm:$0xff] %v4034_v55  ;;  %4338 = vst [vmem:[#allocation15_spill] sm:$0xff] %v4036_v1 }
 0x167   : > { %v4038_v43 = vpop.f32.mrf.mxu1  ;;  %v4040_v34 = vpop.f32.mrf.mxu0 }
 0x168   : > { %4339 = vst [vmem:[#allocation16_spill] sm:$0xff] %v4038_v43  ;;  %4340 = vst [vmem:[#allocation17_spill] sm:$0xff] %v4040_v34  ;;  %v1305_v34 = vadd.f32 %v1242_v12, %v3947_v62  ;;  %v1309_v62 = vadd.f32 %v1258_v38, %v3955_v27  ;;  %v1312_v12 = vadd.f32 %v2855_v57, %v3957_v39 }
 0x169   : > { %v4042_v60 = vpop.f32.mrf.mxu1  ;;  %v4044_v22 = vpop.f32.mrf.mxu0  ;;  %v1482_v39 = vadd.f32 %v3984_v28, %v1306_v10 }
 0x16a   : > { %4341 = vst [vmem:[#allocation18_spill] sm:$0xff] %v4042_v60  ;;  %4342 = vst [vmem:[#allocation19_spill] sm:$0xff] %v4044_v22  ;;  %v1483_v22 = vadd.f32 %v3971_v44, %v1307_v37  ;;  %v1481_v2 = vadd.f32 %v3975_v4, %v1305_v34  ;;  %v1315_v37 = vadd.f32 %v2858_v42, %v3961_v53 }
 0x16b   : > { %v4046_v18 = vpop.f32.mrf.mxu1  ;;  %v4048_v33 = vpop.f32.mrf.mxu0  ;;  %v1313_v4 = vadd.f32 %v1274_v21, %v3963_v25  ;;  %v1488_v53 = vadd.f32 %v3990_v24, %v1312_v12  ;;  %v1642_v19 = vadd.f32 %v1581_v16, %v1482_v39  ;;  %v4097_v24 = vld [vmem:[#allocation2] ss:$0 sm:$0xff] }
 0x16c   : > { %4343 = vst [vmem:[#allocation20_spill] sm:$0xff] %v4046_v18  ;;  %4344 = vst [vmem:[#allocation21_spill] sm:$0xff] %v4048_v33  ;;  %v1308_v33 = vadd.f32 %v2851_v50, %v3949_v26  ;;  %v1491_v42 = vadd.f32 %v3994_v49, %v1315_v37  ;;  %v4357_v37 = vld [vmem:[#allocation10_spill] sm:$0xff] }
 0x16d   : > { %v4050_v20 = vpop.f32.mrf.mxu1  ;;  %v4052_v7 = vpop.f32.mrf.mxu0  ;;  %v1489_v28 = vadd.f32 %v3996_v40, %v1313_v4  ;;  %v1320_v40 = vadd.f32 %v4014_v9, %v3977_v8  ;;  %v4353_v9 = vld [vmem:[#allocation14_spill] sm:$0xff] }
 0x16e   : > { %4345 = vst [vmem:[#allocation22_spill] sm:$0xff] %v4050_v20  ;;  %4346 = vst [vmem:[#allocation23_spill] sm:$0xff] %v4052_v7  ;;  %v1643_v7 = vadd.f32 %v2898_v58, %v1483_v22  ;;  %v1484_v50 = vadd.f32 %v3980_v36, %v1308_v33  ;;  %v1485_v36 = vadd.f32 %v3988_v52, %v1309_v62  ;;  %v4355_v62 = vld [vmem:[#allocation7_spill] sm:$0xff] }
 0x16f   : > { %v4055_v55 = vpop.f32.mrf.mxu1  ;;  %v4057_v1 = vpop.f32.mrf.mxu0  ;;  %v1317_v52 = vadd.f32 %v4010_v47, %v3973_v0  ;;  %v1496_v12 = vadd.f32 %v4355_v62, %v1320_v40 }
 0x170   : > { %4347 = vst [vmem:[#allocation24_spill] sm:$0xff] %v4057_v1  ;;  %v1311_v1 = vadd.f32 %v2854_v5, %v3953_v56  ;;  %v2250_v56 = vlaneseq  ;;  %v1797_v5 = vadd.f32 %v2922_v59, %v1643_v7  ;;  %v1644_v38 = vadd.f32 %v2899_v51, %v1484_v50  ;;  %v4351_v7 = vld [vmem:[#allocation5_spill] sm:$0xff] }
 0x171   : > { %v4060_v43 = vpop.f32.mrf.mxu1  ;;  %v4062_v60 = vpop.f32.mrf.mxu0  ;;  %v1645_v0 = vadd.f32 %v4030_v14, %v1485_v36 }
 0x172   : > { %4348 = vst [vmem:[#allocation25_spill] sm:$0xff] %v4062_v60  ;;  %v1310_v60 = vadd.f32 %v1261_v31, %v3959_v32  ;;  %v1314_v32 = vadd.f32 %v1277_v46, %v3967_v61  ;;  %v1487_v57 = vadd.f32 %v3986_v11, %v1311_v1  ;;  %v1492_v61 = vadd.f32 %v3998_v45, %v1316_v23  ;;  %v4358_v23 = vld [vmem:[#allocation11_spill] sm:$0xff] }
 0x173   : > { %v4066_v18 = vpop.f32.mrf.mxu1  ;;  %v4068_v20 = vpop.f32.mrf.mxu0  ;;  %v1319_v11 = vadd.f32 %v4006_v29, %v3969_v6  ;;  %v1798_v49 = vadd.f32 %v4018_v41, %v1644_v38  ;;  %v1318_v45 = vadd.f32 %v4016_v54, %v3982_v15  ;;  %v1648_v15 = vadd.f32 %v4353_v9, %v1488_v53  ;;  %v4354_v54 = vld [vmem:[#allocation16_spill] sm:$0xff] }
 0x174   : > { %4349 = vst [vmem:[#allocation26_spill] sm:$0xff] %v4068_v20  ;;  %v1641_v20 = vadd.f32 %v1578_v3, %v1481_v2  ;;  %v1486_v25 = vadd.f32 %v3992_v63, %v1310_v60  ;;  %v1490_v22 = vadd.f32 %v4000_v13, %v1314_v32  ;;  %v1647_v6 = vadd.f32 %v4026_v30, %v1487_v57  ;;  %v4352_v60 = vld [vmem:[#allocation6_spill] sm:$0xff]  ;;  %v4359_v53 = vld [vmem:[#allocation12_spill] sm:$0xff] }
 0x175   : > { %v4076_v44 = vpop.f32.mrf.mxu1  ;;  %v2970_v26 = vpop.f32.mrf.mxu0  ;;  %v1495_v51 = vadd.f32 %v4351_v7, %v1319_v11  ;;  %v4113_v8 = vadd.f32 %v4352_v60, %v1317_v52 }
 0x176   : > { %v1795_v21 = vadd.f32 %v1732_v48, %v1641_v20  ;;  %v4350_v48 = vld [vmem:[#allocation9_spill] sm:$0xff]  ;;  %v1646_v16 = vadd.f32 %v4354_v54, %v1486_v25  ;;  %v1801_v4 = vadd.f32 %v4357_v37, %v1647_v6  ;;  %v1802_v25 = vadd.f32 %v4359_v53, %v1648_v15 }
 0x177   : > { %v4082_v17 = vpop.f32.mrf.mxu1  ;;  %v2068_v27 = vpop.f32.mrf.mxu0  ;;  %v1796_v58 = vadd.f32 %v4350_v48, %v1642_v19  ;;  %v1650_v60 = vadd.f32 %v4055_v55, %v1490_v22 }
 0x179   : > { %v2946_v31 = vpop.f32.mrf.mxu1  ;;  %v2971_v35 = vpop.f32.mrf.mxu0 }
 0x17a   : > { %v1973_v33 = vadd.f32 %v2946_v31, %v1797_v5  ;;  %v4360_v31 = vld [vmem:[#allocation13_spill] sm:$0xff] }
 0x17b   : > { %v1908_v63 = vpop.f32.mrf.mxu1  ;;  %v2071_v46 = vpop.f32.mrf.mxu0 }
 0x17c   : > { %v2133_v34 = vadd.f32 %v2970_v26, %v1973_v33  ;;  %v1971_v59 = vadd.f32 %v1908_v63, %v1795_v21  ;;  %v4356_v26 = vld [vmem:[#allocation8_spill] sm:$0xff]  ;;  %v4361_v21 = vld [vmem:[#allocation18_spill] sm:$0xff] }
 0x17d   : > { %v2947_v29 = vpop.f32.mrf.mxu1  ;;  %v2974_v47 = vpop.f32.mrf.mxu0  ;;  %v4123_v50 = vadd.f32 %v4356_v26, %v1318_v45  ;;  %v1651_v19 = vadd.f32 %v4361_v21, %v1491_v42  ;;  %v4363_v45 = vld [vmem:[#allocation22_spill] sm:$0xff]  ;;  %v1653_v21 = vadd.f32 %v4066_v18, %v4113_v8 }
 0x17e   : > { %v4109_v13 = vadd.f32 %v4097_v24, %v2133_v34  ;;  %v2131_v41 = vadd.f32 %v2068_v27, %v1971_v59  ;;  %v1974_v3 = vadd.f32 %v2947_v29, %v1798_v49  ;;  %v1799_v27 = vadd.f32 %v4358_v23, %v1645_v0  ;;  %v4362_v59 = vld [vmem:[#allocation20_spill] sm:$0xff]  ;;  %v4367_v23 = vld [vmem:[#allocation21_spill] sm:$0xff] }
 0x17f   : > { %v1911_v30 = vpop.f32.mrf.mxu1  ;;  %v2084_v20 = vpop.f32.mrf.mxu0  ;;  %v1649_v40 = vadd.f32 %v4362_v59, %v1489_v28  ;;  %v4368_v59 = vld [vmem:[#allocation23_spill] sm:$0xff] }
 0x180   : > { %v2172_v14 = vsub.f32 0.0, %v4109_v13  ;;  %v4119_v1 = vadd.f32 %v4097_v24, %v2131_v41  ;;  %v2134_v2 = vadd.f32 %v2971_v35, %v1974_v3  ;;  %v1972_v10 = vadd.f32 %v1911_v30, %v1796_v58  ;;  %v4364_v3 = vld [vmem:[#allocation15_spill] sm:$0xff]  ;;  %v4365_v30 = vld [vmem:[#allocation17_spill] sm:$0xff] }
 0x181   : > { %v2950_v39 = vpop.f32.mrf.mxu1  ;;  %v2975_v32 = vpop.f32.mrf.mxu0  ;;  %v1800_v35 = vadd.f32 %v4360_v31, %v1646_v16  ;;  %v1805_v7 = vadd.f32 %v4364_v3, %v1651_v19  ;;  %v1656_v19 = vadd.f32 %v4076_v44, %v1496_v12 }
 0x182   : > { %v2190_v5 = vmul.f32 1.442695, %v2172_v14  ;;  %v2170_v38 = vsub.f32 0.0, %v4119_v1  ;;  %v4129_v57 = vadd.f32 %v4097_v24, %v2134_v2  ;;  %v2132_v36 = vadd.f32 %v2071_v46, %v1972_v10  ;;  %v4366_v2 = vld [vmem:[#allocation19_spill] sm:$0xff] }
 0x183   : > { %v1977_v33 = vadd.f32 %v2950_v39, %v1801_v4  ;;  %v1924_v11 = vpop.f32.mrf.mxu1  ;;  %v2087_v52 = vpop.f32.mrf.mxu0  ;;  %v1652_v46 = vadd.f32 %v4363_v45, %v1492_v61  ;;  %v1803_v14 = vadd.f32 %v4365_v30, %v1649_v40  ;;  %v1655_v39 = vadd.f32 %v4060_v43, %v1495_v51 }
 0x184   : > { %3092 = vpow2.f32 %v2190_v5  ;;  %v2186_v63 = vmul.f32 1.442695, %v2170_v38  ;;  %v2173_v49 = vsub.f32 0.0, %v4129_v57  ;;  %v4136_v34 = vadd.f32 %v4097_v24, %v2132_v36 }
 0x185   : > { %v2137_v6 = vadd.f32 %v2974_v47, %v1977_v33  ;;  %v1975_v0 = vadd.f32 %v1924_v11, %v1799_v27  ;;  %v2951_v29 = vpop.f32.mrf.mxu1  ;;  %v2978_v48 = vpop.f32.mrf.mxu0  ;;  %v1806_v10 = vadd.f32 %v4366_v2, %v1652_v46  ;;  %v1804_v27 = vadd.f32 %v4367_v23, %v1650_v60 }
 0x186   : > { %3094 = vpow2.f32 %v2186_v63  ;;  %v2192_v42 = vmul.f32 1.442695, %v2173_v49  ;;  %v2171_v58 = vsub.f32 0.0, %v4136_v34  ;;  %v1978_v41 = vadd.f32 %v2951_v29, %v1802_v25 }
 0x187   : > { %v4144_v9 = vadd.f32 %v4097_v24, %v2137_v6  ;;  %v2135_v15 = vadd.f32 %v2084_v20, %v1975_v0  ;;  %v1927_v28 = vpop.f32.mrf.mxu1  ;;  %v2100_v54 = vpop.f32.mrf.mxu0  ;;  %v1809_v40 = vadd.f32 %v4368_v59, %v1655_v39  ;;  %v1654_v45 = vadd.f32 %v4082_v17, %v4123_v50  ;;  %v4369_v0 = vld [vmem:[#allocation24_spill] sm:$0xff] }
 0x188   : > { %3096 = vpow2.f32 %v2192_v42  ;;  %v2188_v61 = vmul.f32 1.442695, %v2171_v58  ;;  %v2138_v47 = vadd.f32 %v2975_v32, %v1978_v41  ;;  %v1976_v16 = vadd.f32 %v1927_v28, %v1800_v35  ;;  %v4371_v28 = vld [vmem:[#allocation26_spill] sm:$0xff] }
 0x189   : > { %v2176_v62 = vsub.f32 0.0, %v4144_v9  ;;  %v4150_v26 = vadd.f32 %v4097_v24, %v2135_v15  ;;  %v2954_v55 = vpop.f32.mrf.mxu1  ;;  %v2979_v22 = vpop.f32.mrf.mxu0  ;;  %v1807_v29 = vadd.f32 %v4369_v0, %v1653_v21 }
 0x18a   : > { %3098 = vpow2.f32 %v2188_v61  ;;  %v4153_v20 = vadd.f32 %v4097_v24, %v2138_v47  ;;  %v2136_v37 = vadd.f32 %v2087_v52, %v1976_v16  ;;  %v1981_v4 = vadd.f32 %v2954_v55, %v1805_v7 }
 0x18b   : > { %v2198_v32 = vmul.f32 1.442695, %v2176_v62  ;;  %v2174_v5 = vsub.f32 0.0, %v4150_v26  ;;  %v1940_v38 = vpop.f32.mrf.mxu1  ;;  %v2103_v36 = vpop.f32.mrf.mxu0 }
 0x18c   : > { %v2177_v53 = vsub.f32 0.0, %v4153_v20  ;;  %v4160_v25 = vadd.f32 %v4097_v24, %v2136_v37  ;;  %v2141_v31 = vadd.f32 %v2978_v48, %v1981_v4  ;;  %v1979_v35 = vadd.f32 %v1940_v38, %v1803_v14  ;;  %v4370_v48 = vld [vmem:[#allocation25_spill] sm:$0xff] }
 0x18d   : > { %3100 = vpow2.f32 %v2198_v32  ;;  %v2194_v43 = vmul.f32 1.442695, %v2174_v5  ;;  %v2955_v51 = vpop.f32.mrf.mxu1  ;;  %v2982_v49 = vpop.f32.mrf.mxu0  ;;  %v1810_v42 = vadd.f32 %v4370_v48, %v1656_v19 }
 0x18e   : > { %v2200_v33 = vmul.f32 1.442695, %v2177_v53  ;;  %v2175_v11 = vsub.f32 0.0, %v4160_v25  ;;  %v4167_v52 = vadd.f32 %v4097_v24, %v2141_v31  ;;  %v2139_v63 = vadd.f32 %v2100_v54, %v1979_v35 }
 0x18f   : > { %3102 = vpow2.f32 %v2194_v43  ;;  %v1982_v18 = vadd.f32 %v2955_v51, %v1806_v10  ;;  %v1943_v44 = vpop.f32.mrf.mxu1  ;;  %v2116_v60 = vpop.f32.mrf.mxu0  ;;  %v1808_v54 = vadd.f32 %v4371_v28, %v1654_v45 }
 0x190   : > { %3104 = vpow2.f32 %v2200_v33  ;;  %v2196_v8 = vmul.f32 1.442695, %v2175_v11  ;;  %v2180_v12 = vsub.f32 0.0, %v4167_v52  ;;  %v4175_v46 = vadd.f32 %v4097_v24, %v2139_v63 }
 0x191   : > { %v3093_v6 = vpop.eup %3092  ;;  %v2142_v58 = vadd.f32 %v2979_v22, %v1982_v18  ;;  %v1980_v17 = vadd.f32 %v1943_v44, %v1804_v27  ;;  %v2958_v50 = vpop.f32.mrf.mxu1  ;;  %v4204_v63 = vand.u32 127, %v2250_v56 }
 0x192   : > { %v2220_v41 = vadd.f32 1.0, %v3093_v6  ;;  %3106 = vpow2.f32 %v2196_v8  ;;  %v2206_v3 = vmul.f32 1.442695, %v2180_v12  ;;  %v2178_v7 = vsub.f32 0.0, %v4175_v46  ;;  %v2983_v32 = vpop.f32.mrf.mxu0 }
 0x193   : > { %v3095_v15 = vpop.eup %3094  ;;  %v4187_v61 = vadd.f32 %v4097_v24, %v2142_v58  ;;  %v2140_v47 = vadd.f32 %v2103_v36, %v1980_v17  ;;  %v1985_v16 = vadd.f32 %v2958_v50, %v1809_v40  ;;  %v1956_v30 = vpop.f32.mrf.mxu1  ;;  %vm2252_vm7 = vcmp.ge.s32.totalorder %v4204_v63, 18 }
 0x194   : > { %3108 = vrcp.f32 %v2220_v41  ;;  %v2218_v14 = vadd.f32 1.0, %v3095_v15  ;;  %v2202_v2 = vmul.f32 1.442695, %v2178_v7  ;;  %v1983_v10 = vadd.f32 %v1956_v30, %v1807_v29  ;;  %v2119_v40 = vpop.f32.mrf.mxu0 }
 0x195   : > { %v3097_v62 = vpop.eup %3096  ;;  %3110 = vpow2.f32 %v2206_v3  ;;  %v2181_v55 = vsub.f32 0.0, %v4187_v61  ;;  %v4191_v22 = vadd.f32 %v4097_v24, %v2140_v47  ;;  %v2145_v37 = vadd.f32 %v2982_v49, %v1985_v16  ;;  %v2959_v4 = vpop.f32.mrf.mxu1 }
 0x196   : > { %3112 = vrcp.f32 %v2218_v14  ;;  %v2221_v23 = vadd.f32 1.0, %v3097_v62  ;;  %v2143_v27 = vadd.f32 %v2116_v60, %v1983_v10  ;;  %v1986_v39 = vadd.f32 %v2959_v4, %v1810_v42 }
 0x197   : > { %v3099_v5 = vpop.eup %3098  ;;  %3114 = vpow2.f32 %v2202_v2  ;;  %v2208_v38 = vmul.f32 1.442695, %v2181_v55  ;;  %v2179_v36 = vsub.f32 0.0, %v4191_v22  ;;  %v4197_v53 = vadd.f32 %v4097_v24, %v2145_v37  ;;  %v1959_v31 = vpop.f32.mrf.mxu1 }
 0x198   : > { %3116 = vrcp.f32 %v2221_v23  ;;  %v2219_v35 = vadd.f32 1.0, %v3099_v5  ;;  %v4200_v21 = vadd.f32 %v4097_v24, %v2143_v27  ;;  %v2146_v19 = vadd.f32 %v2983_v32, %v1986_v39 }
 0x199   : > { %3118 = vpow2.f32 %v2208_v38  ;;  %v2204_v43 = vmul.f32 1.442695, %v2179_v36  ;;  %v2184_v51 = vsub.f32 0.0, %v4197_v53  ;;  %v1984_v33 = vadd.f32 %v1959_v31, %v1808_v54 }
 0x19a   : > { %v3101_v11 = vpop.eup %3100  ;;  %3120 = vrcp.f32 %v2219_v35  ;;  %v2182_v49 = vsub.f32 0.0, %v4200_v21  ;;  %v4208_v59 = vadd.f32 %v4097_v24, %v2146_v19 }
 0x19b   : > { %v2224_v45 = vadd.f32 1.0, %v3101_v11  ;;  %3122 = vpow2.f32 %v2204_v43  ;;  %v2214_v18 = vmul.f32 1.442695, %v2184_v51  ;;  %v2144_v44 = vadd.f32 %v2119_v40, %v1984_v33 }
 0x19c   : > { %v3103_v8 = vpop.eup %3102  ;;  %v2185_v12 = vsub.f32 0.0, %v4208_v59  ;;  %v2210_v56 = vmul.f32 1.442695, %v2182_v49 }
 0x19d   : > { %v3105_v6 = vpop.eup %3104  ;;  %3124 = vrcp.f32 %v2224_v45  ;;  %v2222_v0 = vadd.f32 1.0, %v3103_v8  ;;  %v4212_v29 = vadd.f32 %v4097_v24, %v2144_v44 }
 0x19e   : > { %v2225_v48 = vadd.f32 1.0, %v3105_v6  ;;  %3126 = vpow2.f32 %v2214_v18  ;;  %v2216_v58 = vmul.f32 1.442695, %v2185_v12 }
 0x19f   : > { %v3107_v42 = vpop.eup %3106  ;;  %3128 = vrcp.f32 %v2222_v0  ;;  %v2183_v17 = vsub.f32 0.0, %v4212_v29 }
 0x1a0   : > { %3130 = vrcp.f32 %v2225_v48  ;;  %v2223_v24 = vadd.f32 1.0, %v3107_v42 }
 0x1a1   : > { %v3109_v50 = vpop.eup %3108  ;;  %3132 = vpow2.f32 %v2210_v56  ;;  %v2212_v41 = vmul.f32 1.442695, %v2183_v17 }
 0x1a2   : > { %v3111_v3 = vpop.eup %3110  ;;  %v2255_v7 = vsel %vm2252_vm7, %v3109_v50, %v4109_v13  ;;  %3134 = vrcp.f32 %v2223_v24 }
 0x1a3   : > { %v3113_v60 = vpop.eup %3112  ;;  %2272 = vst.msk [vmem:[%s4219_s29 + $0x10] sm:$0xff] %vm2269_vm8, %v2255_v7  ;;  %v2228_v15 = vadd.f32 1.0, %v3111_v3  ;;  %3136 = vpow2.f32 %v2216_v58 }
 0x1a4   : > { %v3115_v28 = vpop.eup %3114  ;;  %v2253_v54 = vsel %vm2252_vm7, %v3113_v60, %v4119_v1  ;;  %3138 = vpow2.f32 %v2212_v41 }
 0x1a5   : > { %v3117_v47 = vpop.eup %3116  ;;  %2270 = vst.msk [vmem:[%s4219_s29] sm:$0xff] %vm2269_vm8, %v2253_v54  ;;  %3140 = vrcp.f32 %v2228_v15  ;;  %v2226_v16 = vadd.f32 1.0, %v3115_v28 }
 0x1a6   : > { %v3119_v13 = vpop.eup %3118  ;;  %v2256_v30 = vsel %vm2252_vm7, %v3117_v47, %v4129_v57 }
 0x1a7   : > { %v3121_v14 = vpop.eup %3120  ;;  %2273 = vst.msk [vmem:[%s4219_s29 + $0x18] sm:$0xff] %vm2269_vm8, %v2256_v30  ;;  %3142 = vrcp.f32 %v2226_v16  ;;  %v2229_v2 = vadd.f32 1.0, %v3119_v13 }
 0x1a8   : > { %v3123_v10 = vpop.eup %3122  ;;  %v2254_v1 = vsel %vm2252_vm7, %v3121_v14, %v4136_v34 }
 0x1a9   : > { %2271 = vst.msk [vmem:[%s4219_s29 + $0x8] sm:$0xff] %vm2269_vm8, %v2254_v1  ;;  %3144 = vrcp.f32 %v2229_v2  ;;  %v2227_v62 = vadd.f32 1.0, %v3123_v10 }
 0x1aa   : > { %v3125_v55 = vpop.eup %3124 }
 0x1ab   : > { %v3127_v37 = vpop.eup %3126  ;;  %v2259_v57 = vsel %vm2252_vm7, %v3125_v55, %v4144_v9  ;;  %3146 = vrcp.f32 %v2227_v62 }
 0x1ac   : > { %v3129_v4 = vpop.eup %3128  ;;  %2276 = vst.msk [vmem:[%s4219_s29 + $0x30] sm:$0xff] %vm2269_vm8, %v2259_v57  ;;  %v2232_v23 = vadd.f32 1.0, %v3127_v37 }
 0x1ad   : > { %v3131_v27 = vpop.eup %3130  ;;  %v2257_v34 = vsel %vm2252_vm7, %v3129_v4, %v4150_v26 }
 0x1ae   : > { %v3133_v39 = vpop.eup %3132  ;;  %2274 = vst.msk [vmem:[%s4219_s29 + $0x20] sm:$0xff] %vm2269_vm8, %v2257_v34  ;;  %v2260_v32 = vsel %vm2252_vm7, %v3131_v27, %v4153_v20  ;;  %3148 = vrcp.f32 %v2232_v23 }
 0x1af   : > { %v3135_v9 = vpop.eup %3134  ;;  %2277 = vst.msk [vmem:[%s4219_s29 + $0x38] sm:$0xff] %vm2269_vm8, %v2260_v32  ;;  %v2230_v5 = vadd.f32 1.0, %v3133_v39 }
 0x1b0   : > { %v3137_v38 = vpop.eup %3136  ;;  %v2258_v36 = vsel %vm2252_vm7, %v3135_v9, %v4160_v25 }
 0x1b1   : > { %v3139_v26 = vpop.eup %3138  ;;  %2275 = vst.msk [vmem:[%s4219_s29 + $0x28] sm:$0xff] %vm2269_vm8, %v2258_v36  ;;  %3150 = vrcp.f32 %v2230_v5  ;;  %v2233_v31 = vadd.f32 1.0, %v3137_v38 }
 0x1b2   : > { %v3141_v20 = vpop.eup %3140  ;;  %v2231_v35 = vadd.f32 1.0, %v3139_v26 }
 0x1b3   : > { %v2263_v19 = vsel %vm2252_vm7, %v3141_v20, %v4167_v52  ;;  %3152 = vrcp.f32 %v2233_v31 }
 0x1b4   : > { %v3143_v43 = vpop.eup %3142  ;;  %2280 = vst.msk [vmem:[%s4219_s29 + $0x50] sm:$0xff] %vm2269_vm8, %v2263_v19  ;;  %3154 = vrcp.f32 %v2231_v35 }
 0x1b5   : > { %v2261_v25 = vsel %vm2252_vm7, %v3143_v43, %v4175_v46 }
 0x1b6   : > { %v3145_v51 = vpop.eup %3144  ;;  %2278 = vst.msk [vmem:[%s4219_s29 + $0x40] sm:$0xff] %vm2269_vm8, %v2261_v25 }
 0x1b7   : > { %v2264_v33 = vsel %vm2252_vm7, %v3145_v51, %v4187_v61 }
 0x1b8   : > { %v3147_v52 = vpop.eup %3146  ;;  %2281 = vst.msk [vmem:[%s4219_s29 + $0x58] sm:$0xff] %vm2269_vm8, %v2264_v33 }
 0x1b9   : > { %v2262_v11 = vsel %vm2252_vm7, %v3147_v52, %v4191_v22 }
 0x1ba   : > { %2279 = vst.msk [vmem:[%s4219_s29 + $0x48] sm:$0xff] %vm2269_vm8, %v2262_v11 }
 0x1bb   : > { %v3149_v49 = vpop.eup %3148 }
 0x1bc   : > { %v2267_v46 = vsel %vm2252_vm7, %v3149_v49, %v4197_v53 }
 0x1bd   : > { %2284 = vst.msk [vmem:[%s4219_s29 + $0x70] sm:$0xff] %vm2269_vm8, %v2267_v46 }
 0x1be   : > { %v3151_v40 = vpop.eup %3150 }
 0x1bf   : > { %v2265_v61 = vsel %vm2252_vm7, %v3151_v40, %v4200_v21 }
 0x1c0   : > { %v3153_v45 = vpop.eup %3152  ;;  %2282 = vst.msk [vmem:[%s4219_s29 + $0x60] sm:$0xff] %vm2269_vm8, %v2265_v61 }
 0x1c1   : > { %v3155_v18 = vpop.eup %3154  ;;  %v2268_v22 = vsel %vm2252_vm7, %v3153_v45, %v4208_v59 }
 0x1c2   : > { %2285 = vst.msk [vmem:[%s4219_s29 + $0x78] sm:$0xff] %vm2269_vm8, %v2268_v22  ;;  %v2266_v53 = vsel %vm2252_vm7, %v3155_v18, %v4212_v29 }
 0x1c3   : > { %2283 = vst.msk [vmem:[%s4219_s29 + $0x68] sm:$0xff] %vm2269_vm8, %v2266_v53 }
 0x1c4 PF: > { %s15_s19 = sadd.s32 1, %s3224_s19   ;;  %s4372_s15 = smov %s3216_s17 }
 0x1c5   : > { %p12_p6 = scmp.ge.s32.totalorder %s15_s19, 6   ;;  %s4373_s16 = smov %s3220_s18 }
 0x1c6   : > { %s4374_s17 = smov %s4377_s21  ;;  %s4375_s18 = smov %s4381_s22 }
 0x1c7   :  { %14 = sbr.rel (!%p12_p6) target bundleno = 3 (0x3), region = 82 }
 0x1cc   :  { %2318 = vsyncpa [#allocation3], 1 }
 0x1cd   :  { %2320 = vsyncpa [#allocation3 + $0x1], 1 }

// kernel: hpfb_forward.3
= control target key start
LH: loop header
LB: loop body
LE: loop exit
PB: predicated region body
PF: predicated region fallthrough
CT: control target
= control target key end

     0   :  { %vm265_vm0 = vcmask 261120   ;;  %v4150_v5 = vmov 0   ;;  %s5683_s0 = inlined_call_operand.vmem [shape: bf16[512,288], index: 0, kind: input, shape index: {}]   ;;  %s5684_s1 = inlined_call_operand.vmem [shape: f32[512,32], index: 1, kind: input, shape index: {}]   ;;  %s5685_s2 = inlined_call_operand.vmem [shape: bf16[512,32], index: 2, kind: input, shape index: {}]   ;;  %s5686_s3 = inlined_call_operand.vmem [shape: bf16[288,32], index: 3, kind: input, shape index: {}]   ;;  %s5687_s4 = inlined_call_operand.vmem [shape: bf16[32,64], index: 4, kind: input, shape index: {}]   ;;  %s5688_s5 = inlined_call_operand.vmem [shape: bf16[64,64], index: 5, kind: input, shape index: {}]   ;;  %s5689_s6 = inlined_call_operand.hbm [shape: f32[512,32], index: 6, kind: output, shape index: {}]  }
   0x1   :  { %v3944_v0 = vld [vmem:[%s5687_s4 + $0x8] sm:$0xff]   ;;  %v3945_v1 = vld [vmem:[%s5687_s4] sm:$0xff]   ;;  %v3948_v4 = vld [vmem:[%s5685_s2 + $0x10] sm:$0xff]  }
   0x2   :  { %3727 = vmatprep.subr.bf16.mxu0 %v3944_v0  ;;  %v3946_v2 = vld [vmem:[%s5685_s2] sm:$0xff]   ;;  %3935 = vmatprep.subr.bf16.mxu1 %v3944_v0  ;;  %v3947_v3 = vld [vmem:[%s5685_s2 + $0x8] sm:$0xff]   ;;  %v3949_v6 = vld [vmem:[%s5685_s2 + $0x18] sm:$0xff]  }
   0x3   :  { %3728 = vmatpush3.bf16.msra.mxu0 %v3944_v0  ;;  %3937 = vmatpush3.bf16.msra.mxu1 %v3944_v0  ;;  %v3950_v7 = vld [vmem:[%s5685_s2 + $0x20] sm:$0xff]   ;;  %v3963_v9 = vld [vmem:[%s5685_s2 + $0x88] sm:$0xff]   ;;  %v3964_v10 = vld [vmem:[%s5685_s2 + $0x90] sm:$0xff]  }
   0x4   :  { %3729 = vmatprep.subr.bf16.mxu0 %v3945_v1  ;;  %3731 = vmatprep.mubr.msk.bf16.mxu0 %vm265_vm0, %v3946_v2  ;;  %v3961_v8 = vld [vmem:[%s5685_s2 + $0x80] sm:$0xff]   ;;  %v3951_v11 = vld [vmem:[%s5685_s2 + $0x28] sm:$0xff]   ;;  %v3952_v12 = vld [vmem:[%s5685_s2 + $0x30] sm:$0xff]  }
   0x5   :  { %3936 = vmatprep.subr.bf16.mxu1 %v3945_v1  ;;  %3763 = vmatprep.mubr.msk.bf16.mxu1 %vm265_vm0, %v3961_v8  ;;  %v3965_v13 = vld [vmem:[%s5685_s2 + $0x98] sm:$0xff]   ;;  %v3966_v14 = vld [vmem:[%s5685_s2 + $0xa0] sm:$0xff]   ;;  %v3967_v17 = vld [vmem:[%s5685_s2 + $0xa8] sm:$0xff]  }
   0x6   :  { %v3953_v15 = vld [vmem:[%s5685_s2 + $0x38] sm:$0xff]   ;;  %v3954_v16 = vld [vmem:[%s5685_s2 + $0x40] sm:$0xff]   ;;  %v3968_v18 = vld [vmem:[%s5685_s2 + $0xb0] sm:$0xff]  }
   0x7   :  { %3730 = vmatpush3.bf16.msra.mxu0 %v3945_v1  ;;  %3938 = vmatpush3.bf16.msra.mxu1 %v3945_v1  ;;  %v3978_v19 = vld [vmem:[%s5686_s3 + $0x38] sm:$0xff]   ;;  %v3980_v21 = vld [vmem:[%s5686_s3 + $0x30] sm:$0xff]   ;;  %v3955_v22 = vld [vmem:[%s5685_s2 + $0x48] sm:$0xff]  }
   0x8   :  { %2141 = vmatprep.subr.bf16.mxu0 %v4150_v5  ;;  %v3979_v20 = vld [vmem:[%s5688_s5 + $0x18] sm:$0xff]   ;;  %v3956_v23 = vld [vmem:[%s5685_s2 + $0x50] sm:$0xff]   ;;  %v3981_v24 = vld [vmem:[%s5686_s3 + $0x28] sm:$0xff]  }
   0x9   :  { %3795 = vmatprep.subr.bf16.mxu1 %v3979_v20  ;;  %v3984_v25 = vld [vmem:[%s5688_s5 + $0x10] sm:$0xff]   ;;  %v3969_v26 = vld [vmem:[%s5685_s2 + $0xb8] sm:$0xff]   ;;  %v3970_v27 = vld [vmem:[%s5685_s2 + $0xc0] sm:$0xff]  }
   0xa   :  { %3732 = vmatmul.mubr.msk.bf16.vlgmr.msra.gmra.mxu0 %vm265_vm0, %v3947_v3  ;;  %3764 = vmatmul.mubr.msk.bf16.vlgmr.msra.gmra.mxu1 %vm265_vm0, %v3963_v9  ;;  %v3957_v28 = vld [vmem:[%s5685_s2 + $0x58] sm:$0xff]   ;;  %v3982_v29 = vld [vmem:[%s5686_s3 + $0x20] sm:$0xff]   ;;  %v3989_v30 = vld [vmem:[%s5688_s5 + $0x8] sm:$0xff]  }
   0xb   :  { %3735 = vmatprep.mubr.msk.bf16.mxu0 %vm265_vm0, %v3948_v4  ;;  %3767 = vmatprep.mubr.msk.bf16.mxu1 %vm265_vm0, %v3964_v10  ;;  %v3958_v31 = vld [vmem:[%s5685_s2 + $0x60] sm:$0xff]   ;;  %v3971_v32 = vld [vmem:[%s5685_s2 + $0xc8] sm:$0xff]   ;;  %v3983_v33 = vld [vmem:[%s5686_s3 + $0x18] sm:$0xff]  }
   0xc   :  { %2142 = vmatpush1.bf16.msra.mxu0 %v3978_v19  ;;  %3796 = vmatpush3.bf16.msra.mxu1 %v3979_v20  ;;  %v3972_v34 = vld [vmem:[%s5685_s2 + $0xd0] sm:$0xff]   ;;  %v3994_v35 = vld [vmem:[%s5688_s5] sm:$0xff]   ;;  %v3959_v37 = vld [vmem:[%s5685_s2 + $0x68] sm:$0xff]  }
   0xd   :  { %2143 = vmatprep.subr.bf16.mxu0 %v4150_v5  ;;  %3797 = vmatprep.subr.bf16.mxu1 %v3984_v25  ;;  %v3985_v36 = vld [vmem:[%s5686_s3 + $0x10] sm:$0xff]   ;;  %v3986_v39 = vld [vmem:[%s5686_s3 + $0x8] sm:$0xff]   ;;  %v3973_v40 = vld [vmem:[%s5685_s2 + $0xd8] sm:$0xff]  }
   0xe   :  { %v3960_v38 = vld [vmem:[%s5685_s2 + $0x70] sm:$0xff]   ;;  %v3974_v41 = vld [vmem:[%s5685_s2 + $0xe0] sm:$0xff]   ;;  %v3962_v43 = vld [vmem:[%s5685_s2 + $0x78] sm:$0xff]  }
   0xf   :  { %v3987_v42 = vld [vmem:[%s5686_s3] sm:$0xff]   ;;  %v3988_v44 = vld [vmem:[%s5686_s3 + $0x78] sm:$0xff]   ;;  %v3975_v45 = vld [vmem:[%s5685_s2 + $0xe8] sm:$0xff]  }
  0x10   :  { %2144 = vmatpush1.bf16.msra.mxu0 %v3980_v21  ;;  %3798 = vmatpush3.bf16.msra.mxu1 %v3984_v25  ;;  %v3976_v46 = vld [vmem:[%s5685_s2 + $0xf0] sm:$0xff]   ;;  %v3991_v48 = vld [vmem:[%s5686_s3 + $0x68] sm:$0xff]   ;;  %v3977_v49 = vld [vmem:[%s5685_s2 + $0xf8] sm:$0xff]  }
  0x11   :  { %2145 = vmatprep.subr.bf16.mxu0 %v4150_v5  ;;  %3799 = vmatprep.subr.bf16.mxu1 %v3989_v30  ;;  %v3990_v47 = vld [vmem:[%s5686_s3 + $0x70] sm:$0xff]   ;;  %v3992_v50 = vld [vmem:[%s5686_s3 + $0x60] sm:$0xff]   ;;  %v3993_v51 = vld [vmem:[%s5686_s3 + $0x58] sm:$0xff]  }
  0x12   :  { %3736 = vmatmul.mubr.msk.bf16.gmra.mxu0 %vm265_vm0, %v3949_v6  ;;  %3768 = vmatmul.mubr.msk.bf16.gmra.mxu1 %vm265_vm0, %v3965_v13  ;;  %v4000_v52 = vld [vmem:[%s5683_s0 + $0x4] ss:$12 sps:$4 sm:$0xff]   ;;  %v3996_v54 = vld [vmem:[%s5686_s3 + $0x48] sm:$0xff]  }
  0x13   :  { %3739 = vmatprep.mubr.msk.bf16.mxu0 %vm265_vm0, %v3950_v7  ;;  %3771 = vmatprep.mubr.msk.bf16.mxu1 %vm265_vm0, %v3966_v14  ;;  %v3995_v53 = vld [vmem:[%s5686_s3 + $0x50] sm:$0xff]   ;;  %v3997_v55 = vld [vmem:[%s5686_s3 + $0x40] sm:$0xff]   ;;  %v4405_v56 = vld [vmem:[%s5686_s3 + $0x88] sm:$0xff]  }
  0x14   :  { %2146 = vmatpush1.bf16.msra.mxu0 %v3981_v24  ;;  %3800 = vmatpush3.bf16.msra.mxu1 %v3989_v30  ;;  %v3998_v57 = vld [vmem:[%s5683_s0] ss:$12 sps:$4 sm:$0xff]   ;;  %v4002_v58 = vld [vmem:[%s5683_s0 + $0x1c] ss:$12 sps:$4 sm:$0xff]  }
  0x15   :  { %2147 = vmatprep.subr.bf16.mxu0 %v4150_v5  ;;  %3801 = vmatprep.subr.bf16.mxu1 %v3994_v35 }
  0x18   :  { %2148 = vmatpush1.bf16.msra.mxu0 %v3982_v29  ;;  %3802 = vmatpush3.bf16.msra.mxu1 %v3994_v35 }
  0x19   :  { %2149 = vmatprep.subr.bf16.mxu0 %v4150_v5  ;;  %3867 = vmatprep.subr.bf16.mxu1 %v4405_v56 }
  0x1a   :  { %3740 = vmatmul.mubr.msk.bf16.gmra.mxu0 %vm265_vm0, %v3951_v11  ;;  %3772 = vmatmul.mubr.msk.bf16.gmra.mxu1 %vm265_vm0, %v3967_v17 }
  0x1b   :  { %3743 = vmatprep.mubr.msk.bf16.mxu0 %vm265_vm0, %v3952_v12  ;;  %3775 = vmatprep.mubr.msk.bf16.mxu1 %vm265_vm0, %v3968_v18 }
  0x1c   :  { %2150 = vmatpush1.bf16.msra.mxu0 %v3983_v33 }
  0x1d   :  { %2151 = vmatprep.subr.bf16.mxu0 %v4150_v5 }
  0x20   :  { %2152 = vmatpush1.bf16.msra.mxu0 %v3985_v36 }
  0x21   :  { %2153 = vmatprep.subr.bf16.mxu0 %v4150_v5 }
  0x22   :  { %3744 = vmatmul.mubr.msk.bf16.gmra.mxu0 %vm265_vm0, %v3953_v15  ;;  %3776 = vmatmul.mubr.msk.bf16.gmra.mxu1 %vm265_vm0, %v3969_v26 }
  0x23   :  { %3747 = vmatprep.mubr.msk.bf16.mxu0 %vm265_vm0, %v3954_v16  ;;  %3779 = vmatprep.mubr.msk.bf16.mxu1 %vm265_vm0, %v3970_v27 }
  0x24   :  { %2154 = vmatpush1.bf16.msra.mxu0 %v3986_v39 }
  0x25   :  { %2155 = vmatprep.subr.bf16.mxu0 %v4150_v5 }
  0x28   :  { %2156 = vmatpush1.bf16.msra.mxu0 %v3987_v42 }
  0x29   :  { %2157 = vmatprep.subr.bf16.mxu0 %v4150_v5 }
  0x2a   :  { %3748 = vmatmul.mubr.msk.bf16.gmra.mxu0 %vm265_vm0, %v3955_v22  ;;  %3780 = vmatmul.mubr.msk.bf16.gmra.mxu1 %vm265_vm0, %v3971_v32 }
  0x2b   :  { %3751 = vmatprep.mubr.msk.bf16.mxu0 %vm265_vm0, %v3956_v23  ;;  %3783 = vmatprep.mubr.msk.bf16.mxu1 %vm265_vm0, %v3972_v34 }
  0x2c   :  { %2158 = vmatpush2.bf16.msra.mxu0 %v3988_v44 }
  0x2d   :  { %2159 = vmatprep.subr.bf16.mxu0 %v4150_v5 }
  0x30   :  { %2160 = vmatpush2.bf16.msra.mxu0 %v3990_v47 }
  0x31   :  { %2161 = vmatprep.subr.bf16.mxu0 %v4150_v5 }
  0x32   :  { %3752 = vmatmul.mubr.msk.bf16.gmra.mxu0 %vm265_vm0, %v3957_v28  ;;  %3784 = vmatmul.mubr.msk.bf16.gmra.mxu1 %vm265_vm0, %v3973_v40 }
  0x33   :  { %3755 = vmatprep.mubr.msk.bf16.mxu0 %vm265_vm0, %v3958_v31  ;;  %3787 = vmatprep.mubr.msk.bf16.mxu1 %vm265_vm0, %v3974_v41 }
  0x34   :  { %2162 = vmatpush2.bf16.msra.mxu0 %v3991_v48 }
  0x35   :  { %2163 = vmatprep.subr.bf16.mxu0 %v4150_v5 }
  0x38   :  { %2164 = vmatpush2.bf16.msra.mxu0 %v3992_v50 }
  0x39   :  { %2165 = vmatprep.subr.bf16.mxu0 %v4150_v5 }
  0x3a   :  { %3756 = vmatmul.mubr.msk.bf16.gmra.mxu0 %vm265_vm0, %v3959_v37  ;;  %3788 = vmatmul.mubr.msk.bf16.gmra.mxu1 %vm265_vm0, %v3975_v45 }
  0x3b   :  { %3759 = vmatprep.mubr.msk.bf16.mxu0 %vm265_vm0, %v3960_v38  ;;  %3791 = vmatprep.mubr.msk.bf16.mxu1 %vm265_vm0, %v3976_v46 }
  0x3c   :  { %2166 = vmatpush2.bf16.msra.mxu0 %v3993_v51 }
  0x3d   :  { %2167 = vmatprep.subr.bf16.mxu0 %v4150_v5 }
  0x40   :  { %2168 = vmatpush2.bf16.msra.mxu0 %v3995_v53 }
  0x41   :  { %2169 = vmatprep.subr.bf16.mxu0 %v4150_v5 }
  0x42   :  { %3760 = vmatmul.mubr.msk.bf16.gmra.mxu0 %vm265_vm0, %v3962_v43  ;;  %3792 = vmatmul.mubr.msk.bf16.gmra.mxu1 %vm265_vm0, %v3977_v49 }
  0x43   :  { %2173 = vmatprep.mubr.bf16.mxu0 %v4000_v52 }
  0x44   :  { %2170 = vmatpush2.bf16.msra.mxu0 %v3996_v54 }
  0x45   :  { %2171 = vmatprep.subr.bf16.mxu0 %v4150_v5 }
  0x48   :  { %2172 = vmatpush2.bf16.msra.mxu0 %v3997_v55 }
  0x4b   :  { %2174 = vmatmul.mubr.bf16.vlgmr.msra.gmra.mxu0 %v3998_v57 }
  0x4c   :  { %2181 = vmatprep.mubr.bf16.mxu0 %v4002_v58 }
  0x4d   :  { %11 = vsyncpa [#allocation3], 0  ;;  %v4004_v59 = vld [vmem:[%s5683_s0 + $0x18] ss:$12 sps:$4 sm:$0xff]   ;;  %v4005_v60 = vld [vmem:[%s5683_s0 + $0x34] ss:$12 sps:$4 sm:$0xff]  }
  0x4e   :  { %v4007_v61 = vld [vmem:[%s5683_s0 + $0x30] ss:$12 sps:$4 sm:$0xff]   ;;  %v4008_v62 = vld [vmem:[%s5683_s0 + $0x4c] ss:$12 sps:$4 sm:$0xff]   ;;  %v4010_v63 = vld [vmem:[%s5683_s0 + $0x48] ss:$12 sps:$4 sm:$0xff]  }
  0x4f   :  { %v4011_v0 = vld [vmem:[%s5683_s0 + $0x64] ss:$12 sps:$4 sm:$0xff]   ;;  %v4013_v1 = vld [vmem:[%s5683_s0 + $0x60] ss:$12 sps:$4 sm:$0xff]   ;;  %v4014_v2 = vld [vmem:[%s5683_s0 + $0x7c] ss:$12 sps:$4 sm:$0xff]  }
  0x50   :  { %v4016_v3 = vld [vmem:[%s5683_s0 + $0x78] ss:$12 sps:$4 sm:$0xff]   ;;  %v4017_v4 = vld [vmem:[%s5683_s0 + $0x94] ss:$12 sps:$4 sm:$0xff]   ;;  %v4019_v5 = vld [vmem:[%s5683_s0 + $0x90] ss:$12 sps:$4 sm:$0xff]  }
  0x51   :  { %v4020_v6 = vld [vmem:[%s5683_s0 + $0xac] ss:$12 sps:$4 sm:$0xff]   ;;  %v4022_v7 = vld [vmem:[%s5683_s0 + $0xa8] ss:$12 sps:$4 sm:$0xff]   ;;  %v4023_v8 = vld [vmem:[%s5683_s0 + $0xc4] ss:$12 sps:$4 sm:$0xff]  }
  0x52   :  { %v4025_v9 = vld [vmem:[%s5683_s0 + $0xc0] ss:$12 sps:$4 sm:$0xff]   ;;  %v4027_v10 = vld [vmem:[%s5683_s0 + $0xdc] ss:$12 sps:$4 sm:$0xff]   ;;  %v4029_v11 = vld [vmem:[%s5683_s0 + $0xd8] ss:$12 sps:$4 sm:$0xff]  }
  0x53   :  { %2182 = vmatmul.mubr.bf16.gmra.mxu0 %v4004_v59  ;;  %v4030_v12 = vld [vmem:[%s5683_s0 + $0xf4] ss:$12 sps:$4 sm:$0xff]   ;;  %v4032_v13 = vld [vmem:[%s5683_s0 + $0xf0] ss:$12 sps:$4 sm:$0xff]   ;;  %v4033_v14 = vld [vmem:[%s5683_s0 + $0x10c] ss:$12 sps:$4 sm:$0xff]  }
  0x54   :  { %2189 = vmatprep.mubr.bf16.mxu0 %v4005_v60  ;;  %v4035_v15 = vld [vmem:[%s5683_s0 + $0x108] ss:$12 sps:$4 sm:$0xff]   ;;  %v4036_v16 = vld [vmem:[%s5683_s0 + $0x124] ss:$12 sps:$4 sm:$0xff]   ;;  %v4038_v17 = vld [vmem:[%s5683_s0 + $0x120] ss:$12 sps:$4 sm:$0xff]  }
  0x55   :  { %v4039_v18 = vld [vmem:[%s5683_s0 + $0x13c] ss:$12 sps:$4 sm:$0xff]   ;;  %v4041_v19 = vld [vmem:[%s5683_s0 + $0x138] ss:$12 sps:$4 sm:$0xff]   ;;  %v4042_v20 = vld [vmem:[%s5683_s0 + $0x154] ss:$12 sps:$4 sm:$0xff]  }
  0x56   :  { %v4044_v24 = vld [vmem:[%s5683_s0 + $0x150] ss:$12 sps:$4 sm:$0xff]   ;;  %v4045_v29 = vld [vmem:[%s5683_s0 + $0x16c] ss:$12 sps:$4 sm:$0xff]   ;;  %vm907_vm5 = vcmask 523264   ;;  %v4026_v40 = vld [vmem:[%s5686_s3 + $0x80] sm:$0xff]  }
  0x57   :  { %v4047_v42 = vld [vmem:[%s5683_s0 + $0x168] ss:$12 sps:$4 sm:$0xff]   ;;  %v4048_v48 = vld [vmem:[%s5683_s0 + $0x184] ss:$12 sps:$4 sm:$0xff]   ;;  %s4151_s4 = smov 96  }
  0x5b   :  { %2190 = vmatmul.mubr.bf16.gmra.mxu0 %v4007_v61 }
  0x5c   :  { %2197 = vmatprep.mubr.bf16.mxu0 %v4008_v62  ;;  %v4050_v62 = vld [vmem:[%s5683_s0 + $0x180] ss:$12 sps:$4 sm:$0xff]  }
  0x63   :  { %2198 = vmatmul.mubr.bf16.gmra.mxu0 %v4010_v63 }
  0x64   :  { %2205 = vmatprep.mubr.bf16.mxu0 %v4011_v0 }
  0x6b   :  { %2206 = vmatmul.mubr.bf16.gmra.mxu0 %v4013_v1 }
  0x6c   :  { %2213 = vmatprep.mubr.bf16.mxu0 %v4014_v2 }
  0x73   :  { %2214 = vmatmul.mubr.bf16.gmra.mxu0 %v4016_v3 }
  0x74   :  { %2221 = vmatprep.mubr.bf16.mxu0 %v4017_v4  ;;  %v4053_v4 = vld [vmem:[%s5683_s0 + $0x19c] ss:$12 sps:$4 sm:$0xff]  }
  0x7b   :  { %2222 = vmatmul.mubr.bf16.gmra.mxu0 %v4019_v5 }
  0x7c   :  { %2229 = vmatprep.mubr.bf16.mxu0 %v4020_v6 }
  0x83   :  { %2230 = vmatmul.mubr.bf16.gmra.mxu0 %v4022_v7 }
  0x84   :  { %2237 = vmatprep.mubr.bf16.mxu0 %v4023_v8 }
  0x8b   :  { %2238 = vmatmul.mubr.bf16.gmra.mxu0 %v4025_v9 }
  0x8c   :  { %2245 = vmatprep.mubr.bf16.mxu0 %v4027_v10 }
  0x93   :  { %2246 = vmatmul.mubr.bf16.gmra.mxu0 %v4029_v11 }
  0x94   :  { %2253 = vmatprep.mubr.bf16.mxu0 %v4030_v12 }
  0x9b   :  { %2254 = vmatmul.mubr.bf16.gmra.mxu0 %v4032_v13 }
  0x9c   :  { %2261 = vmatprep.mubr.bf16.mxu0 %v4033_v14 }
  0xa3   :  { %2262 = vmatmul.mubr.bf16.gmra.mxu0 %v4035_v15 }
  0xa4   :  { %2269 = vmatprep.mubr.bf16.mxu0 %v4036_v16 }
  0xab   :  { %2270 = vmatmul.mubr.bf16.gmra.mxu0 %v4038_v17 }
  0xac   :  { %2277 = vmatprep.mubr.bf16.mxu0 %v4039_v18  ;;  %v4055_v18 = vld [vmem:[%s5683_s0 + $0x198] ss:$12 sps:$4 sm:$0xff]  }
  0xb3   :  { %2278 = vmatmul.mubr.bf16.gmra.mxu0 %v4041_v19 }
  0xb4   :  { %2285 = vmatprep.mubr.bf16.mxu0 %v4042_v20 }
  0xbb   :  { %2286 = vmatmul.mubr.bf16.gmra.mxu0 %v4044_v24  ;;  %v4058_v24 = vld [vmem:[%s5683_s0 + $0x1b4] ss:$12 sps:$4 sm:$0xff]  }
  0xbc   :  { %2293 = vmatprep.mubr.bf16.mxu0 %v4045_v29 }
  0xc3   :  { %2294 = vmatmul.mubr.bf16.gmra.mxu0 %v4047_v42 }
  0xc4   :  { %2301 = vmatprep.mubr.bf16.mxu0 %v4048_v48 }
  0xca   :  { %v3733_v21 = vpop.f32.mrf.mxu0  ;;  %v4499_v39 = vpop.f32.mrf.mxu1 }
  0xcb   :  { %v717_v27 = vmul.f32 0.1, %v3733_v21  ;;  %vm653_vm3 = vcmp.ge.f32.partialorder %v3733_v21, 0.0  ;;  %2302 = vmatmul.mubr.bf16.gmra.mxu0 %v4050_v62 }
  0xcc   :  { %v396_v22 = vpop.f32.mrf.mxu0  ;;  %v4509_v45 = vpop.f32.mrf.mxu1  ;;  %2309 = vmatprep.mubr.bf16.mxu0 %v4053_v4 }
  0xcd   :  { %v715_v25 = vmul.f32 0.1, %v396_v22  ;;  %vm651_vm2 = vcmp.ge.f32.partialorder %v396_v22, 0.0  ;;  %v781_v35 = vsel %vm653_vm3, %v3733_v21, %v717_v27 }
  0xce   :  { %v3734_v23 = vpop.f32.mrf.mxu0  ;;  %v4515_v50 = vpop.f32.mrf.mxu1 }
  0xcf   :  { %vm654_vm1 = vcmp.ge.f32.partialorder %v3734_v23, 0.0  ;;  %v718_v26 = vmul.f32 0.1, %v3734_v23  ;;  %v779_v33 = vsel %vm651_vm2, %v396_v22, %v715_v25 }
  0xd0   :  { %v399_v28 = vpop.f32.mrf.mxu0  ;;  %v4517_v55 = vpop.f32.mrf.mxu1 }
  0xd1   :  { %vm652_vm4 = vcmp.ge.f32.partialorder %v399_v28, 0.0  ;;  %v716_v30 = vmul.f32 0.1, %v399_v28  ;;  %v782_v31 = vsel %vm654_vm1, %v3734_v23, %v718_v26 }
  0xd2   :  { %v3737_v32 = vpop.f32.mrf.mxu0  ;;  %v844_v38 = vpack.c.bf16 %v782_v31, %v781_v35  ;;  %v4519_v60 = vpop.f32.mrf.mxu1 }
  0xd3   :  { %v780_v34 = vsel %vm652_vm4, %v399_v28, %v716_v30  ;;  %v721_v46 = vmul.f32 0.1, %v3737_v32  ;;  %vm657_vm8 = vcmp.ge.f32.partialorder %v3737_v32, 0.0  ;;  %2310 = vmatmul.mubr.bf16.gmra.mxu0 %v4055_v18  ;;  %v4068_v18 = vld [vmem:[%s5683_s0 + $0x1e0] ss:$12 sps:$4 sm:$0xff]  }
  0xd4   :  { %v843_v36 = vpack.c.bf16 %v780_v34, %v779_v33  ;;  %v412_v37 = vpop.f32.mrf.mxu0  ;;  %v4526_v1 = vpop.f32.mrf.mxu1  ;;  %2317 = vmatprep.mubr.bf16.mxu0 %v4058_v24 }
  0xd5   :  { %v719_v43 = vmul.f32 0.1, %v412_v37  ;;  %vm655_vm7 = vcmp.ge.f32.partialorder %v412_v37, 0.0  ;;  %v785_v57 = vsel %vm657_vm8, %v3737_v32, %v721_v46 }
  0xd6   :  { %v3738_v41 = vpop.f32.mrf.mxu0  ;;  %3803 = vmatprep.mubr.msk.bf16.mxu1 %vm907_vm5, %v843_v36  ;;  %v4531_v6 = vpop.f32.mrf.mxu1 }
  0xd7   :  { %vm658_vm6 = vcmp.ge.f32.partialorder %v3738_v41, 0.0  ;;  %v722_v44 = vmul.f32 0.1, %v3738_v41  ;;  %3804 = vmatmul.mubr.msk.bf16.vlgmr.msra.gmra.mxu1 %vm907_vm5, %v844_v38  ;;  %v783_v53 = vsel %vm655_vm7, %v412_v37, %v719_v43  ;;  %v4060_v37 = vld [vmem:[%s5683_s0 + $0x1b0] ss:$12 sps:$4 sm:$0xff]  }
  0xd8   :  { %3868 = vmatpush3.bf16.msra.mxu1 %v4405_v56  ;;  %v415_v47 = vpop.f32.mrf.mxu0  ;;  %v4533_v11 = vpop.f32.mrf.mxu1 }
  0xd9   :  { %vm656_vm9 = vcmp.ge.f32.partialorder %v415_v47, 0.0  ;;  %v720_v49 = vmul.f32 0.1, %v415_v47  ;;  %3869 = vmatprep.subr.bf16.mxu1 %v4026_v40  ;;  %v786_v51 = vsel %vm658_vm6, %v3738_v41, %v722_v44  ;;  %v4063_v44 = vld [vmem:[%s5683_s0 + $0x1cc] ss:$12 sps:$4 sm:$0xff]  }
  0xda   :  { %v3741_v52 = vpop.f32.mrf.mxu0  ;;  %v846_v59 = vpack.c.bf16 %v786_v51, %v785_v57  ;;  %v4535_v16 = vpop.f32.mrf.mxu1 }
  0xdb   :  { %v784_v54 = vsel %vm656_vm9, %v415_v47, %v720_v49  ;;  %v725_v2 = vmul.f32 0.1, %v3741_v52  ;;  %vm661_vm12 = vcmp.ge.f32.partialorder %v3741_v52, 0.0  ;;  %2318 = vmatmul.mubr.bf16.gmra.mxu0 %v4060_v37 }
  0xdc   :  { %v845_v56 = vpack.c.bf16 %v784_v54, %v783_v53  ;;  %v428_v58 = vpop.f32.mrf.mxu0  ;;  %3870 = vmatpush3.bf16.msra.mxu1 %v4026_v40  ;;  %v4542_v21 = vpop.f32.mrf.mxu1  ;;  %2325 = vmatprep.mubr.bf16.mxu0 %v4063_v44 }
  0xdd   :  { %v723_v63 = vmul.f32 0.1, %v428_v58  ;;  %vm659_vm11 = vcmp.ge.f32.partialorder %v428_v58, 0.0  ;;  %v789_v12 = vsel %vm661_vm12, %v3741_v52, %v725_v2 }
  0xde   :  { %v3742_v61 = vpop.f32.mrf.mxu0  ;;  %3807 = vmatprep.mubr.msk.bf16.mxu1 %vm907_vm5, %v845_v56  ;;  %v4547_v26 = vpop.f32.mrf.mxu1 }
  0xdf   :  { %vm662_vm10 = vcmp.ge.f32.partialorder %v3742_v61, 0.0  ;;  %v726_v0 = vmul.f32 0.1, %v3742_v61  ;;  %3808 = vmatmul.mubr.msk.bf16.gmra.mxu1 %vm907_vm5, %v846_v59  ;;  %v787_v9 = vsel %vm659_vm11, %v428_v58, %v723_v63  ;;  %v4065_v59 = vld [vmem:[%s5683_s0 + $0x1c8] ss:$12 sps:$4 sm:$0xff]  }
  0xe0   :  { %v431_v3 = vpop.f32.mrf.mxu0  ;;  %v4549_v34 = vpop.f32.mrf.mxu1 }
  0xe1   :  { %vm660_vm13 = vcmp.ge.f32.partialorder %v431_v3, 0.0  ;;  %v724_v5 = vmul.f32 0.1, %v431_v3  ;;  %v790_v7 = vsel %vm662_vm10, %v3742_v61, %v726_v0 }
  0xe2   :  { %v3745_v8 = vpop.f32.mrf.mxu0  ;;  %v848_v15 = vpack.c.bf16 %v790_v7, %v789_v12  ;;  %v4556_v43 = vpop.f32.mrf.mxu1 }
  0xe3   :  { %v788_v10 = vsel %vm660_vm13, %v431_v3, %v724_v5  ;;  %v729_v22 = vmul.f32 0.1, %v3745_v8  ;;  %vm665_vm1 = vcmp.ge.f32.partialorder %v3745_v8, 0.0  ;;  %v4070_v3 = vld [vmem:[%s5683_s0 + $0x1e4] ss:$12 sps:$4 sm:$0xff]   ;;  %2326 = vmatmul.mubr.bf16.gmra.mxu0 %v4065_v59 }
  0xe4   :  { %v847_v13 = vpack.c.bf16 %v788_v10, %v787_v9  ;;  %v444_v14 = vpop.f32.mrf.mxu0  ;;  %v4561_v57 = vpop.f32.mrf.mxu1  ;;  %2333 = vmatprep.mubr.bf16.mxu0 %v4070_v3  ;;  %v749_v3 = vmul.f32 0.1, %v4499_v39 }
  0xe5   :  { %v727_v19 = vmul.f32 0.1, %v444_v14  ;;  %vm663_vm15 = vcmp.ge.f32.partialorder %v444_v14, 0.0  ;;  %v793_v31 = vsel %vm665_vm1, %v3745_v8, %v729_v22  ;;  %vm683_vm1 = vcmp.ge.f32.partialorder %v4509_v45, 0.0 }
  0xe6   :  { %v3746_v17 = vpop.f32.mrf.mxu0  ;;  %3811 = vmatprep.mubr.msk.bf16.mxu1 %vm907_vm5, %v847_v13  ;;  %v4568_v2 = vpop.f32.mrf.mxu1 }
  0xe7   :  { %vm666_vm14 = vcmp.ge.f32.partialorder %v3746_v17, 0.0  ;;  %v730_v20 = vmul.f32 0.1, %v3746_v17  ;;  %3812 = vmatmul.mubr.msk.bf16.gmra.mxu1 %vm907_vm5, %v848_v15  ;;  %v791_v29 = vsel %vm663_vm15, %v444_v14, %v727_v19 }
  0xe8   :  { %v447_v23 = vpop.f32.mrf.mxu0  ;;  %v4573_v14 = vpop.f32.mrf.mxu1 }
  0xe9   :  { %vm664_vm2 = vcmp.ge.f32.partialorder %v447_v23, 0.0  ;;  %v728_v25 = vmul.f32 0.1, %v447_v23  ;;  %v794_v27 = vsel %vm666_vm14, %v3746_v17, %v730_v20 }
  0xea   :  { %v3749_v28 = vpop.f32.mrf.mxu0  ;;  %v850_v35 = vpack.c.bf16 %v794_v27, %v793_v31  ;;  %v4580_v24 = vpop.f32.mrf.mxu1 }
  0xeb   :  { %v792_v30 = vsel %vm664_vm2, %v447_v23, %v728_v25  ;;  %v733_v41 = vmul.f32 0.1, %v3749_v28  ;;  %vm669_vm6 = vcmp.ge.f32.partialorder %v3749_v28, 0.0  ;;  %v4075_v25 = vld [vmem:[%s5683_s0 + $0x1fc] ss:$12 sps:$4 sm:$0xff]   ;;  %2334 = vmatmul.mubr.bf16.gmra.mxu0 %v4068_v18 }
  0xec   :  { %v849_v32 = vpack.c.bf16 %v792_v30, %v791_v29  ;;  %v460_v33 = vpop.f32.mrf.mxu0  ;;  %2341 = vmatprep.mubr.bf16.mxu0 %v4075_v25 }
  0xed   :  { %v731_v38 = vmul.f32 0.1, %v460_v33  ;;  %vm667_vm4 = vcmp.ge.f32.partialorder %v460_v33, 0.0  ;;  %v797_v52 = vsel %vm669_vm6, %v3749_v28, %v733_v41  ;;  %v748_v41 = vmul.f32 0.1, %v4517_v55 }
  0xee   :  { %v3750_v36 = vpop.f32.mrf.mxu0  ;;  %3815 = vmatprep.mubr.msk.bf16.mxu1 %vm907_vm5, %v849_v32 }
  0xef   :  { %vm670_vm3 = vcmp.ge.f32.partialorder %v3750_v36, 0.0  ;;  %v734_v40 = vmul.f32 0.1, %v3750_v36  ;;  %3816 = vmatmul.mubr.msk.bf16.gmra.mxu1 %vm907_vm5, %v850_v35  ;;  %v795_v49 = vsel %vm667_vm4, %v460_v33, %v731_v38  ;;  %v747_v38 = vmul.f32 0.1, %v4509_v45 }
  0xf0   :  { %v463_v42 = vpop.f32.mrf.mxu0  ;;  %vm684_vm4 = vcmp.ge.f32.partialorder %v4517_v55, 0.0 }
  0xf1   :  { %vm668_vm7 = vcmp.ge.f32.partialorder %v463_v42, 0.0  ;;  %v732_v46 = vmul.f32 0.1, %v463_v42  ;;  %v798_v47 = vsel %vm670_vm3, %v3750_v36, %v734_v40  ;;  %v4585_v36 = vpop.f32.mrf.mxu1  ;;  %v812_v59 = vsel %vm684_vm4, %v4517_v55, %v748_v41 }
  0xf2   :  { %v3753_v48 = vpop.f32.mrf.mxu0  ;;  %v852_v56 = vpack.c.bf16 %v798_v47, %v797_v52  ;;  %v752_v55 = vmul.f32 0.1, %v4533_v11  ;;  %vm696_vm4 = vcmp.ge.f32.partialorder %v4573_v14, 0.0 }
  0xf3   :  { %v796_v51 = vsel %vm668_vm7, %v463_v42, %v732_v46  ;;  %v737_v63 = vmul.f32 0.1, %v3753_v48  ;;  %vm673_vm10 = vcmp.ge.f32.partialorder %v3753_v48, 0.0  ;;  %v4073_v42 = vld [vmem:[%s5683_s0 + $0x1f8] ss:$12 sps:$4 sm:$0xff]  }
  0xf4   :  { %v851_v53 = vpack.c.bf16 %v796_v51, %v795_v49  ;;  %v476_v54 = vpop.f32.mrf.mxu0  ;;  %v4596_v49 = vpop.f32.mrf.mxu1  ;;  %v4080_v51 = vld [vmem:[%s5683_s0 + $0x214] ss:$12 sps:$4 sm:$0xff]   ;;  %2342 = vmatmul.mubr.bf16.gmra.mxu0 %v4073_v42 }
  0xf5   :  { %v735_v61 = vmul.f32 0.1, %v476_v54  ;;  %vm671_vm9 = vcmp.ge.f32.partialorder %v476_v54, 0.0  ;;  %v801_v10 = vsel %vm673_vm10, %v3753_v48, %v737_v63  ;;  %2349 = vmatprep.mubr.bf16.mxu0 %v4080_v51  ;;  %vm687_vm10 = vcmp.ge.f32.partialorder %v4526_v1, 0.0 }
  0xf6   :  { %v3754_v58 = vpop.f32.mrf.mxu0  ;;  %3819 = vmatprep.mubr.msk.bf16.mxu1 %vm907_vm5, %v851_v53  ;;  %v4603_v63 = vpop.f32.mrf.mxu1  ;;  %v761_v51 = vmul.f32 0.1, %v4556_v43 }
  0xf7   :  { %vm674_vm8 = vcmp.ge.f32.partialorder %v3754_v58, 0.0  ;;  %v738_v62 = vmul.f32 0.1, %v3754_v58  ;;  %3820 = vmatmul.mubr.msk.bf16.gmra.mxu1 %vm907_vm5, %v852_v56  ;;  %v799_v8 = vsel %vm671_vm9, %v476_v54, %v735_v61  ;;  %v811_v56 = vsel %vm683_vm1, %v4509_v45, %v747_v38 }
  0xf8   :  { %v479_v0 = vpop.f32.mrf.mxu0  ;;  %vm686_vm9 = vcmp.ge.f32.partialorder %v4515_v50, 0.0  ;;  %v751_v45 = vmul.f32 0.1, %v4526_v1  ;;  %vm693_vm1 = vcmp.ge.f32.partialorder %v4535_v16, 0.0 }
  0xf9   :  { %vm672_vm11 = vcmp.ge.f32.partialorder %v479_v0, 0.0  ;;  %v736_v4 = vmul.f32 0.1, %v479_v0  ;;  %v802_v5 = vsel %vm674_vm8, %v3754_v58, %v738_v62  ;;  %vm685_vm8 = vcmp.ge.f32.partialorder %v4499_v39, 0.0 }
  0xfa   :  { %v3757_v7 = vpop.f32.mrf.mxu0  ;;  %v854_v15 = vpack.c.bf16 %v802_v5, %v801_v10  ;;  %v859_v5 = vpack.c.bf16 %v812_v59, %v811_v56  ;;  %v813_v10 = vsel %vm685_vm8, %v4499_v39, %v749_v3  ;;  %vm699_vm8 = vcmp.ge.f32.partialorder %v4585_v36, 0.0  ;;  %v4100_v56 = vld [vmem:[%s5683_s0 + $0x274] ss:$12 sps:$4 sm:$0xff]  }
  0xfb   :  { %v800_v9 = vsel %vm672_vm11, %v479_v0, %v736_v4  ;;  %v741_v22 = vmul.f32 0.1, %v3757_v7  ;;  %vm677_vm14 = vcmp.ge.f32.partialorder %v3757_v7, 0.0  ;;  %v750_v4 = vmul.f32 0.1, %v4515_v50 }
  0xfc   :  { %v853_v12 = vpack.c.bf16 %v800_v9, %v799_v8  ;;  %v492_v13 = vpop.f32.mrf.mxu0  ;;  %vm688_vm11 = vcmp.ge.f32.partialorder %v4533_v11, 0.0  ;;  %v4619_v8 = vpop.f32.mrf.mxu1  ;;  %v4085_v9 = vld [vmem:[%s5683_s0 + $0x22c] ss:$12 sps:$4 sm:$0xff]  }
  0xfd   :  { %v739_v19 = vmul.f32 0.1, %v492_v13  ;;  %vm675_vm13 = vcmp.ge.f32.partialorder %v492_v13, 0.0  ;;  %v805_v32 = vsel %vm677_vm14, %v3757_v7, %v741_v22  ;;  %v4078_v7 = vld [vmem:[%s5683_s0 + $0x210] ss:$12 sps:$4 sm:$0xff]   ;;  %vm691_vm14 = vcmp.ge.f32.partialorder %v4542_v21, 0.0 }
  0xfe   :  { %v3758_v17 = vpop.f32.mrf.mxu0  ;;  %3823 = vmatprep.mubr.msk.bf16.mxu1 %vm907_vm5, %v853_v12  ;;  %v814_v12 = vsel %vm686_vm9, %v4515_v50, %v750_v4  ;;  %2350 = vmatmul.mubr.bf16.gmra.mxu0 %v4078_v7  ;;  %v755_v50 = vmul.f32 0.1, %v4542_v21  ;;  %vm700_vm9 = vcmp.ge.f32.partialorder %v4603_v63, 0.0 }
  0xff   :  { %vm678_vm12 = vcmp.ge.f32.partialorder %v3758_v17, 0.0  ;;  %v742_v20 = vmul.f32 0.1, %v3758_v17  ;;  %3824 = vmatmul.mubr.msk.bf16.gmra.mxu1 %vm907_vm5, %v854_v15  ;;  %v803_v30 = vsel %vm675_vm13, %v492_v13, %v739_v19  ;;  %v815_v13 = vsel %vm687_vm10, %v4526_v1, %v751_v45  ;;  %2357 = vmatprep.mubr.bf16.mxu0 %v4085_v9  ;;  %v4098_v9 = vld [vmem:[%s5683_s0 + $0x270] ss:$12 sps:$4 sm:$0xff]  }
 0x100   :  { %v495_v23 = vpop.f32.mrf.mxu0  ;;  %v816_v15 = vsel %vm688_vm11, %v4533_v11, %v752_v55  ;;  %v860_v18 = vpack.c.bf16 %v814_v12, %v813_v10  ;;  %v753_v19 = vmul.f32 0.1, %v4519_v60  ;;  %vm690_vm13 = vcmp.ge.f32.partialorder %v4531_v6, 0.0  ;;  %v4083_v11 = vld [vmem:[%s5683_s0 + $0x228] ss:$12 sps:$4 sm:$0xff]  }
 0x101   :  { %vm676_vm15 = vcmp.ge.f32.partialorder %v495_v23, 0.0  ;;  %v740_v27 = vmul.f32 0.1, %v495_v23  ;;  %v806_v28 = vsel %vm678_vm12, %v3758_v17, %v742_v20  ;;  %v4630_v17 = vpop.f32.mrf.mxu1  ;;  %vm689_vm12 = vcmp.ge.f32.partialorder %v4519_v60, 0.0  ;;  %v4105_v12 = vld [vmem:[%s5683_s0 + $0x28c] ss:$12 sps:$4 sm:$0xff]  }
 0x102   :  { %v3761_v29 = vpop.f32.mrf.mxu0  ;;  %v856_v37 = vpack.c.bf16 %v806_v28, %v805_v32  ;;  %v754_v20 = vmul.f32 0.1, %v4531_v6  ;;  %v861_v39 = vpack.c.bf16 %v816_v15, %v815_v13  ;;  %v756_v1 = vmul.f32 0.1, %v4549_v34 }
 0x103   :  { %v804_v31 = vsel %vm676_vm15, %v495_v23, %v740_v27  ;;  %v745_v47 = vmul.f32 0.1, %v3761_v29  ;;  %vm681_vm6 = vcmp.ge.f32.partialorder %v3761_v29, 0.0  ;;  %vm692_vm15 = vcmp.ge.f32.partialorder %v4549_v34, 0.0  ;;  %v4645_v22 = vpop.f32.mrf.mxu1  ;;  %v4090_v23 = vld [vmem:[%s5683_s0 + $0x244] ss:$12 sps:$4 sm:$0xff]  }
 0x104   :  { %v855_v33 = vpack.c.bf16 %v804_v31, %v803_v30  ;;  %v508_v35 = vpop.f32.mrf.mxu0  ;;  %v817_v25 = vsel %vm689_vm12, %v4519_v60, %v753_v19  ;;  %v818_v27 = vsel %vm690_vm13, %v4531_v6, %v754_v20  ;;  %v819_v28 = vsel %vm691_vm14, %v4542_v21, %v755_v50 }
 0x105   :  { %v743_v44 = vmul.f32 0.1, %v508_v35  ;;  %vm679_vm3 = vcmp.ge.f32.partialorder %v508_v35, 0.0  ;;  %v809_v61 = vsel %vm681_vm6, %v3761_v29, %v745_v47  ;;  %v820_v29 = vsel %vm692_vm15, %v4549_v34, %v756_v1  ;;  %v4654_v30 = vpop.f32.mrf.mxu1  ;;  %v4088_v34 = vld [vmem:[%s5683_s0 + $0x240] ss:$12 sps:$4 sm:$0xff]  }
 0x106   :  { %v3762_v40 = vpop.f32.mrf.mxu0  ;;  %3827 = vmatprep.mubr.msk.bf16.mxu1 %vm907_vm5, %v855_v33  ;;  %2358 = vmatmul.mubr.bf16.gmra.mxu0 %v4083_v11  ;;  %v862_v31 = vpack.c.bf16 %v818_v27, %v817_v25  ;;  %v757_v32 = vmul.f32 0.1, %v4535_v16  ;;  %v758_v33 = vmul.f32 0.1, %v4547_v26  ;;  %v863_v60 = vpack.c.bf16 %v820_v29, %v819_v28  ;;  %v4103_v28 = vld [vmem:[%s5683_s0 + $0x288] ss:$12 sps:$4 sm:$0xff]  }
 0x107   :  { %vm682_vm2 = vcmp.ge.f32.partialorder %v3762_v40, 0.0  ;;  %v746_v46 = vmul.f32 0.1, %v3762_v40  ;;  %3828 = vmatmul.mubr.msk.bf16.gmra.mxu1 %vm907_vm5, %v856_v37  ;;  %v807_v54 = vsel %vm679_vm3, %v508_v35, %v743_v44  ;;  %2365 = vmatprep.mubr.bf16.mxu0 %v4090_v23  ;;  %v759_v6 = vmul.f32 0.1, %v4561_v57  ;;  %v4669_v35 = vpop.f32.mrf.mxu1 }
 0x108   :  { %v511_v48 = vpop.f32.mrf.mxu0  ;;  %v760_v21 = vmul.f32 0.1, %v4573_v14  ;;  %vm695_vm3 = vcmp.ge.f32.partialorder %v4561_v57, 0.0  ;;  %v4095_v37 = vld [vmem:[%s5683_s0 + $0x25c] ss:$12 sps:$4 sm:$0xff]   ;;  %v821_v38 = vsel %vm693_vm1, %v4535_v16, %v757_v32  ;;  %vm697_vm6 = vcmp.ge.f32.partialorder %v4556_v43, 0.0 }
 0x109   :  { %vm680_vm7 = vcmp.ge.f32.partialorder %v511_v48, 0.0  ;;  %v744_v52 = vmul.f32 0.1, %v511_v48  ;;  %v810_v53 = vsel %vm682_vm2, %v3762_v40, %v746_v46  ;;  %vm694_vm2 = vcmp.ge.f32.partialorder %v4547_v26, 0.0  ;;  %v4680_v46 = vpop.f32.mrf.mxu1 }
 0x10a   :  { %v858_v0 = vpack.c.bf16 %v810_v53, %v809_v61  ;;  %v822_v40 = vsel %vm694_vm2, %v4547_v26, %v758_v33  ;;  %v823_v41 = vsel %vm695_vm3, %v4561_v57, %v759_v6  ;;  %v824_v42 = vsel %vm696_vm4, %v4573_v14, %v760_v21  ;;  %v4093_v53 = vld [vmem:[%s5683_s0 + $0x258] ss:$12 sps:$4 sm:$0xff]  }
 0x10b   :  { %v808_v58 = vsel %vm680_vm7, %v511_v48, %v744_v52  ;;  %v4678_v44 = vpop.f32.mrf.mxu0  ;;  %v864_v47 = vpack.c.bf16 %v822_v40, %v821_v38  ;;  %vm698_vm7 = vcmp.ge.f32.partialorder %v4568_v2, 0.0  ;;  %v762_v16 = vmul.f32 0.1, %v4568_v2 }
 0x10c   :  { %v857_v62 = vpack.c.bf16 %v808_v58, %v807_v54  ;;  %v865_v26 = vpack.c.bf16 %v824_v42, %v823_v41  ;;  %v763_v57 = vmul.f32 0.1, %v4585_v36  ;;  %v764_v14 = vmul.f32 0.1, %v4603_v63  ;;  %v4697_v54 = vpop.f32.mrf.mxu1 }
 0x10d   :  { %v2177_v48 = vpop.f32.mrf.mxu0  ;;  %v825_v59 = vsel %vm697_vm6, %v4556_v43, %v761_v51  ;;  %v826_v61 = vsel %vm698_vm7, %v4568_v2, %v762_v16  ;;  %vm701_vm10 = vcmp.ge.f32.partialorder %v4580_v24, 0.0  ;;  %v765_v55 = vmul.f32 0.1, %v4580_v24 }
 0x10e   :  { %3831 = vmatprep.mubr.msk.bf16.mxu1 %vm907_vm5, %v857_v62  ;;  %2366 = vmatmul.mubr.bf16.gmra.mxu0 %v4088_v34  ;;  %v827_v62 = vsel %vm699_vm8, %v4585_v36, %v763_v57  ;;  %v623_v4 = vpop.f32.mrf.mxu1  ;;  %vm702_vm11 = vcmp.ge.f32.partialorder %v4596_v49, 0.0  ;;  %v766_v43 = vmul.f32 0.1, %v4596_v49  ;;  %v767_v36 = vmul.f32 0.1, %v4630_v17 }
 0x10f   :  { %3832 = vmatmul.mubr.msk.bf16.gmra.mxu1 %vm907_vm5, %v858_v0  ;;  %2373 = vmatprep.mubr.bf16.mxu0 %v4095_v37  ;;  %v4689_v52 = vpop.f32.mrf.mxu0  ;;  %v828_v0 = vsel %vm700_vm9, %v4603_v63, %v764_v14  ;;  %v768_v63 = vmul.f32 0.1, %v4654_v30  ;;  %vm703_vm12 = vcmp.ge.f32.partialorder %v4630_v17, 0.0  ;;  %vm704_vm13 = vcmp.ge.f32.partialorder %v4654_v30, 0.0  ;;  %v4115_v48 = vld [vmem:[%s5683_s0 + $0x2bc] ss:$12 sps:$4 sm:$0xff]  }
 0x110   :  { %3835 = vmatprep.mubr.msk.bf16.mxu1 %vm907_vm5, %v859_v5  ;;  %v866_v5 = vpack.c.bf16 %v826_v61, %v825_v59  ;;  %v867_v2 = vpack.c.bf16 %v828_v0, %v827_v62  ;;  %v4725_v10 = vpop.f32.mrf.mxu1  ;;  %v829_v15 = vsel %vm701_vm10, %v4580_v24, %v765_v55  ;;  %v831_v19 = vsel %vm703_vm12, %v4630_v17, %v767_v36  ;;  %v4120_v0 = vld [vmem:[%s5683_s0 + $0x2d4] ss:$12 sps:$4 sm:$0xff]  }
 0x111   :  { %v2180_v58 = vpop.f32.mrf.mxu0  ;;  %v832_v20 = vsel %vm704_vm13, %v4654_v30, %v768_v63  ;;  %vm705_vm14 = vcmp.ge.f32.partialorder %v4619_v8, 0.0  ;;  %v769_v23 = vmul.f32 0.1, %v4619_v8  ;;  %vm706_vm15 = vcmp.ge.f32.partialorder %v4645_v22, 0.0  ;;  %v4110_v30 = vld [vmem:[%s5683_s0 + $0x2a4] ss:$12 sps:$4 sm:$0xff]  }
 0x112   :  { %v636_v50 = vpop.f32.mrf.mxu1  ;;  %v770_v24 = vmul.f32 0.1, %v4645_v22  ;;  %v771_v17 = vmul.f32 0.1, %v4680_v46  ;;  %v772_v25 = vmul.f32 0.1, %v623_v4 }
 0x113   :  { %v4708_v3 = vpop.f32.mrf.mxu0  ;;  %vm707_vm1 = vcmp.ge.f32.partialorder %v4680_v46, 0.0  ;;  %vm708_vm2 = vcmp.ge.f32.partialorder %v623_v4, 0.0  ;;  %v833_v32 = vsel %vm705_vm14, %v4619_v8, %v769_v23  ;;  %vm709_vm3 = vcmp.ge.f32.partialorder %v4669_v35, 0.0 }
 0x114   :  { %v3794_v29 = vpop.f32.mrf.mxu1  ;;  %v834_v33 = vsel %vm706_vm15, %v4645_v22, %v770_v24  ;;  %v836_v6 = vsel %vm708_vm2, %v623_v4, %v772_v25  ;;  %v773_v40 = vmul.f32 0.1, %v4669_v35  ;;  %vm710_vm4 = vcmp.ge.f32.partialorder %v4697_v54, 0.0  ;;  %v4061_v24 = vld [vmem:[%s5683_s0 + $0x68] ss:$12 sps:$4 sm:$0xff]  }
 0x115   :  { %v2185_v45 = vpop.f32.mrf.mxu0  ;;  %v870_v37 = vpack.c.bf16 %v834_v33, %v833_v32  ;;  %v774_v8 = vmul.f32 0.1, %v4697_v54  ;;  %v775_v22 = vmul.f32 0.1, %v636_v50  ;;  %vm711_vm6 = vcmp.ge.f32.partialorder %v636_v50, 0.0 }
 0x116   :  { %2374 = vmatmul.mubr.bf16.gmra.mxu0 %v4093_v53  ;;  %v639_v34 = vpop.f32.mrf.mxu1  ;;  %v837_v16 = vsel %vm709_vm3, %v4669_v35, %v773_v40  ;;  %v777_v59 = vmul.f32 0.1, %v4725_v10  ;;  %v778_v61 = vmul.f32 0.1, %v3794_v29  ;;  %vm713_vm8 = vcmp.ge.f32.partialorder %v4725_v10, 0.0 }
 0x117   :  { %3836 = vmatmul.mubr.msk.bf16.gmra.mxu1 %vm907_vm5, %v860_v18  ;;  %2381 = vmatprep.mubr.bf16.mxu0 %v4100_v56  ;;  %v4717_v7 = vpop.f32.mrf.mxu0  ;;  %v830_v18 = vsel %vm702_vm11, %v4596_v49, %v766_v43  ;;  %v869_v49 = vpack.c.bf16 %v832_v20, %v831_v19  ;;  %v776_v42 = vmul.f32 0.1, %v639_v34  ;;  %vm712_vm7 = vcmp.ge.f32.partialorder %v639_v34, 0.0  ;;  %v4051_v43 = vld [vmem:[%s5683_s0 + $0x8] ss:$12 sps:$4 sm:$0xff]  }
 0x118   :  { %3839 = vmatprep.mubr.msk.bf16.mxu1 %vm907_vm5, %v861_v39  ;;  %v868_v1 = vpack.c.bf16 %v830_v18, %v829_v15  ;;  %v839_v57 = vsel %vm711_vm6, %v636_v50, %v775_v22  ;;  %vm714_vm9 = vcmp.ge.f32.partialorder %v3794_v29, 0.0  ;;  %v4056_v18 = vld [vmem:[%s5683_s0 + $0x38] ss:$12 sps:$4 sm:$0xff]   ;;  %v4123_v50 = vld [vmem:[%s5683_s0 + $0x2e8] ss:$12 sps:$4 sm:$0xff]  }
 0x119   :  { %v2188_v13 = vpop.f32.mrf.mxu0  ;;  %v840_v14 = vsel %vm712_vm7, %v639_v34, %v776_v42  ;;  %v842_v45 = vsel %vm714_vm9, %v3794_v29, %v778_v61  ;;  %v4071_v34 = vld [vmem:[%s5683_s0 + $0xc8] ss:$12 sps:$4 sm:$0xff]   ;;  %v4076_v22 = vld [vmem:[%s5683_s0 + $0xf8] ss:$12 sps:$4 sm:$0xff]  }
 0x11a   :  { %v873_v62 = vpack.c.bf16 %v840_v14, %v839_v57  ;;  %v4052_v13 = vld [vmem:[%s5683_s0 + $0x20] ss:$12 sps:$4 sm:$0xff]   ;;  %v4086_v61 = vld [vmem:[%s5683_s0 + $0x158] ss:$12 sps:$4 sm:$0xff]  }
 0x11b   :  { %v4736_v39 = vpop.f32.mrf.mxu0 }
 0x11d   :  { %v2193_v11 = vpop.f32.mrf.mxu0 }
 0x11e   :  { %2382 = vmatmul.mubr.bf16.gmra.mxu0 %v4098_v9  ;;  %v4118_v9 = vld [vmem:[%s5683_s0 + $0x2d0] ss:$12 sps:$4 sm:$0xff]  }
 0x11f   :  { %3840 = vmatmul.mubr.msk.bf16.gmra.mxu1 %vm907_vm5, %v862_v31  ;;  %2389 = vmatprep.mubr.bf16.mxu0 %v4105_v12  ;;  %v4744_v27 = vpop.f32.mrf.mxu0  ;;  %v4057_v11 = vld [vmem:[%s5683_s0 + $0x50] ss:$12 sps:$4 sm:$0xff]  }
 0x120   :  { %3843 = vmatprep.mubr.msk.bf16.mxu1 %vm907_vm5, %v863_v60  ;;  %v835_v60 = vsel %vm707_vm1, %v4680_v46, %v771_v17 }
 0x121   :  { %v2196_v31 = vpop.f32.mrf.mxu0  ;;  %v871_v41 = vpack.c.bf16 %v836_v6, %v835_v60  ;;  %v4067_v60 = vld [vmem:[%s5683_s0 + $0xb0] ss:$12 sps:$4 sm:$0xff]  }
 0x123   :  { %v4759_v21 = vpop.f32.mrf.mxu0 }
 0x125   :  { %v2201_v38 = vpop.f32.mrf.mxu0 }
 0x126   :  { %2390 = vmatmul.mubr.bf16.gmra.mxu0 %v4103_v28  ;;  %v4062_v28 = vld [vmem:[%s5683_s0 + $0x80] ss:$12 sps:$4 sm:$0xff]  }
 0x127   :  { %3844 = vmatmul.mubr.msk.bf16.gmra.mxu1 %vm907_vm5, %v864_v47  ;;  %2397 = vmatprep.mubr.bf16.mxu0 %v4110_v30  ;;  %v4766_v46 = vpop.f32.mrf.mxu0  ;;  %v4108_v47 = vld [vmem:[%s5683_s0 + $0x2a0] ss:$12 sps:$4 sm:$0xff]   ;;  %v4066_v30 = vld [vmem:[%s5683_s0 + $0x98] ss:$12 sps:$4 sm:$0xff]  }
 0x128   :  { %3847 = vmatprep.mubr.msk.bf16.mxu1 %vm907_vm5, %v865_v26  ;;  %v838_v26 = vsel %vm710_vm4, %v4697_v54, %v774_v8  ;;  %v4113_v54 = vld [vmem:[%s5683_s0 + $0x2b8] ss:$12 sps:$4 sm:$0xff]   ;;  %v4072_v8 = vld [vmem:[%s5683_s0 + $0xe0] ss:$12 sps:$4 sm:$0xff]  }
 0x129   :  { %v2204_v51 = vpop.f32.mrf.mxu0  ;;  %v872_v56 = vpack.c.bf16 %v838_v26, %v837_v16  ;;  %v4081_v26 = vld [vmem:[%s5683_s0 + $0x128] ss:$12 sps:$4 sm:$0xff]  }
 0x12a   :  { %v4077_v51 = vld [vmem:[%s5683_s0 + $0x110] ss:$12 sps:$4 sm:$0xff]  }
 0x12b   :  { %v4779_v53 = vpop.f32.mrf.mxu0 }
 0x12d   :  { %v2209_v58 = vpop.f32.mrf.mxu0 }
 0x12e   :  { %2398 = vmatmul.mubr.bf16.gmra.mxu0 %v4108_v47  ;;  %v4082_v58 = vld [vmem:[%s5683_s0 + $0x140] ss:$12 sps:$4 sm:$0xff]  }
 0x12f   :  { %3848 = vmatmul.mubr.msk.bf16.gmra.mxu1 %vm907_vm5, %v866_v5  ;;  %2405 = vmatprep.mubr.bf16.mxu0 %v4115_v48  ;;  %v4784_v35 = vpop.f32.mrf.mxu0  ;;  %v841_v5 = vsel %vm713_vm8, %v4725_v10, %v777_v59  ;;  %v4125_v10 = vld [vmem:[%s5683_s0 + $0x2ec] ss:$12 sps:$4 sm:$0xff]  }
 0x130   :  { %3851 = vmatprep.mubr.msk.bf16.mxu1 %vm907_vm5, %v867_v2  ;;  %v874_v2 = vpack.c.bf16 %v842_v45, %v841_v5  ;;  %v4091_v45 = vld [vmem:[%s5683_s0 + $0x188] ss:$12 sps:$4 sm:$0xff]  }
 0x131   :  { %v2212_v4 = vpop.f32.mrf.mxu0 }
 0x132   :  { %v4087_v4 = vld [vmem:[%s5683_s0 + $0x170] ss:$12 sps:$4 sm:$0xff]  }
 0x133   :  { %v4794_v55 = vpop.f32.mrf.mxu0 }
 0x135   :  { %v2217_v36 = vpop.f32.mrf.mxu0 }
 0x136   :  { %2406 = vmatmul.mubr.bf16.gmra.mxu0 %v4113_v54 }
 0x137   :  { %3852 = vmatmul.mubr.msk.bf16.gmra.mxu1 %vm907_vm5, %v868_v1  ;;  %2413 = vmatprep.mubr.bf16.mxu0 %v4120_v0  ;;  %v4800_v63 = vpop.f32.mrf.mxu0 }
 0x138   :  { %3855 = vmatprep.mubr.msk.bf16.mxu1 %vm907_vm5, %v869_v49 }
 0x139   :  { %v2220_v12 = vpop.f32.mrf.mxu0 }
 0x13a   :  { %v4096_v12 = vld [vmem:[%s5683_s0 + $0x1b8] ss:$12 sps:$4 sm:$0xff]  }
 0x13b   :  { %v4812_v15 = vpop.f32.mrf.mxu0 }
 0x13d   :  { %v2225_v19 = vpop.f32.mrf.mxu0 }
 0x13e   :  { %2414 = vmatmul.mubr.bf16.gmra.mxu0 %v4118_v9  ;;  %v4092_v9 = vld [vmem:[%s5683_s0 + $0x1a0] ss:$12 sps:$4 sm:$0xff]  }
 0x13f   :  { %3856 = vmatmul.mubr.msk.bf16.gmra.mxu1 %vm907_vm5, %v870_v37  ;;  %2421 = vmatprep.mubr.bf16.mxu0 %v4125_v10  ;;  %v4818_v20 = vpop.f32.mrf.mxu0 }
 0x140   :  { %3859 = vmatprep.mubr.msk.bf16.mxu1 %vm907_vm5, %v871_v41 }
 0x141   :  { %v2228_v1 = vpop.f32.mrf.mxu0 }
 0x143   :  { %v4827_v23 = vpop.f32.mrf.mxu0 }
 0x145   :  { %v2233_v49 = vpop.f32.mrf.mxu0 }
 0x146   :  { %2422 = vmatmul.mubr.bf16.gmra.mxu0 %v4123_v50 }
 0x147   :  { %3860 = vmatmul.mubr.msk.bf16.gmra.mxu1 %vm907_vm5, %v872_v56  ;;  %v4833_v17 = vpop.f32.mrf.mxu0 }
 0x148   :  { %3863 = vmatprep.mubr.msk.bf16.mxu1 %vm907_vm5, %v873_v62 }
 0x149   :  { %v2236_v25 = vpop.f32.mrf.mxu0 }
 0x14a   :  { %v4101_v25 = vld [vmem:[%s5683_s0 + $0x1e8] ss:$12 sps:$4 sm:$0xff]  }
 0x14b   :  { %v4839_v29 = vpop.f32.mrf.mxu0 }
 0x14d   :  { %v2241_v31 = vpop.f32.mrf.mxu0 }
 0x14f   :  { %3864 = vmatmul.mubr.msk.bf16.gmra.mxu1 %vm907_vm5, %v874_v2  ;;  %v4845_v32 = vpop.f32.mrf.mxu0 }
 0x150   :  { %3871 = vmatprep.mubr.msk.bf16.mxu1 %vm265_vm0, %v4051_v43  ;;  %5733 = vst [vmem:[#allocation5_spill] sm:$0xff] %v4845_v32 }
 0x151   :  { %v2244_v33 = vpop.f32.mrf.mxu0 }
 0x153   :  { %v4851_v6 = vpop.f32.mrf.mxu0 }
 0x155   :  { %v2249_v37 = vpop.f32.mrf.mxu0 }
 0x157   :  { %3872 = vmatmul.mubr.msk.bf16.vlgmr.msra.gmra.mxu1 %vm265_vm0, %v4052_v13  ;;  %v4857_v38 = vpop.f32.mrf.mxu0 }
 0x158   :  { %3875 = vmatprep.mubr.msk.bf16.mxu1 %vm265_vm0, %v4056_v18 }
 0x159   :  { %v2252_v40 = vpop.f32.mrf.mxu0 }
 0x15a   :  { %v4102_v40 = vld [vmem:[%s5683_s0 + $0x200] ss:$12 sps:$4 sm:$0xff]  }
 0x15b   :  { %v4863_v41 = vpop.f32.mrf.mxu0 }
 0x15c   :  { %5734 = vst [vmem:[#allocation6_spill] sm:$0xff] %v4863_v41 }
 0x15d   :  { %v2257_v42 = vpop.f32.mrf.mxu0 }
 0x15f   :  { %3876 = vmatmul.mubr.msk.bf16.gmra.mxu1 %vm265_vm0, %v4057_v11  ;;  %v4869_v47 = vpop.f32.mrf.mxu0 }
 0x160   :  { %3879 = vmatprep.mubr.msk.bf16.mxu1 %vm265_vm0, %v4061_v24  ;;  %5735 = vst [vmem:[#allocation7_spill] sm:$0xff] %v4869_v47  ;;  %v4097_v24 = vld [vmem:[%s5683_s0 + $0x1d0] ss:$12 sps:$4 sm:$0xff]  }
 0x161   :  { %v2260_v48 = vpop.f32.mrf.mxu0 }
 0x163   :  { %v4875_v16 = vpop.f32.mrf.mxu0 }
 0x164   :  { %5736 = vst [vmem:[#allocation8_spill] sm:$0xff] %v4875_v16 }
 0x165   :  { %v2265_v57 = vpop.f32.mrf.mxu0 }
 0x167   :  { %3880 = vmatmul.mubr.msk.bf16.gmra.mxu1 %vm265_vm0, %v4062_v28  ;;  %v4881_v14 = vpop.f32.mrf.mxu0 }
 0x168   :  { %3883 = vmatprep.mubr.msk.bf16.mxu1 %vm265_vm0, %v4066_v30  ;;  %5737 = vst [vmem:[#allocation9_spill] sm:$0xff] %v4881_v14 }
 0x169   :  { %v2268_v56 = vpop.f32.mrf.mxu0 }
 0x16b   :  { %v4887_v59 = vpop.f32.mrf.mxu0 }
 0x16c   :  { %5738 = vst [vmem:[#allocation10_spill] sm:$0xff] %v4887_v59 }
 0x16d   :  { %v2273_v62 = vpop.f32.mrf.mxu0 }
 0x16f   :  { %3884 = vmatmul.mubr.msk.bf16.gmra.mxu1 %vm265_vm0, %v4067_v60  ;;  %v4893_v54 = vpop.f32.mrf.mxu0 }
 0x170   :  { %3887 = vmatprep.mubr.msk.bf16.mxu1 %vm265_vm0, %v4071_v34  ;;  %5739 = vst [vmem:[#allocation11_spill] sm:$0xff] %v4893_v54 }
 0x171   :  { %v2276_v0 = vpop.f32.mrf.mxu0 }
 0x172   :  { %v4111_v0 = vld [vmem:[%s5683_s0 + $0x248] ss:$12 sps:$4 sm:$0xff]  }
 0x173   :  { %v4899_v5 = vpop.f32.mrf.mxu0 }
 0x174   :  { %5740 = vst [vmem:[#allocation12_spill] sm:$0xff] %v4899_v5 }
 0x175   :  { %v2281_v43 = vpop.f32.mrf.mxu0 }
 0x177   :  { %3888 = vmatmul.mubr.msk.bf16.gmra.mxu1 %vm265_vm0, %v4072_v8  ;;  %v4905_v2 = vpop.f32.mrf.mxu0 }
 0x178   :  { %3891 = vmatprep.mubr.msk.bf16.mxu1 %vm265_vm0, %v4076_v22  ;;  %5741 = vst [vmem:[#allocation13_spill] sm:$0xff] %v4905_v2  ;;  %v4106_v22 = vld [vmem:[%s5683_s0 + $0x218] ss:$12 sps:$4 sm:$0xff]  }
 0x179   :  { %v2284_v36 = vpop.f32.mrf.mxu0 }
 0x17b   :  { %v4911_v10 = vpop.f32.mrf.mxu0 }
 0x17c   :  { %5742 = vst [vmem:[#allocation14_spill] sm:$0xff] %v4911_v10 }
 0x17d   :  { %v2289_v13 = vpop.f32.mrf.mxu0 }
 0x17f   :  { %3892 = vmatmul.mubr.msk.bf16.gmra.mxu1 %vm265_vm0, %v4077_v51  ;;  %v4919_v19 = vpop.f32.mrf.mxu0 }
 0x180   :  { %3895 = vmatprep.mubr.msk.bf16.mxu1 %vm265_vm0, %v4081_v26  ;;  %5743 = vst [vmem:[#allocation15_spill] sm:$0xff] %v4919_v19 }
 0x181   :  { %v2292_v1 = vpop.f32.mrf.mxu0 }
 0x182   :  { %v4112_v1 = vld [vmem:[%s5683_s0 + $0x260] ss:$12 sps:$4 sm:$0xff]  }
 0x183   :  { %v4933_v49 = vpop.f32.mrf.mxu0 }
 0x184   :  { %5744 = vst [vmem:[#allocation16_spill] sm:$0xff] %v4933_v49 }
 0x185   :  { %v2297_v30 = vpop.f32.mrf.mxu0 }
 0x187   :  { %3896 = vmatmul.mubr.msk.bf16.gmra.mxu1 %vm265_vm0, %v4082_v58  ;;  %v4947_v33 = vpop.f32.mrf.mxu0 }
 0x188   :  { %3899 = vmatprep.mubr.msk.bf16.mxu1 %vm265_vm0, %v4086_v61  ;;  %5745 = vst [vmem:[#allocation17_spill] sm:$0xff] %v4947_v33  ;;  %v4107_v61 = vld [vmem:[%s5683_s0 + $0x230] ss:$12 sps:$4 sm:$0xff]  }
 0x189   :  { %v2300_v34 = vpop.f32.mrf.mxu0 }
 0x18b   :  { %v4959_v8 = vpop.f32.mrf.mxu0 }
 0x18c   :  { %5746 = vst [vmem:[#allocation18_spill] sm:$0xff] %v4959_v8 }
 0x18d   :  { %v2305_v48 = vpop.f32.mrf.mxu0 }
 0x18f   :  { %3900 = vmatmul.mubr.msk.bf16.gmra.mxu1 %vm265_vm0, %v4087_v4  ;;  %v4973_v26 = vpop.f32.mrf.mxu0 }
 0x190   :  { %3903 = vmatprep.mubr.msk.bf16.mxu1 %vm265_vm0, %v4091_v45  ;;  %5747 = vst [vmem:[#allocation19_spill] sm:$0xff] %v4973_v26 }
 0x191   :  { %v2308_v56 = vpop.f32.mrf.mxu0 }
 0x193   :  { %v4987_v62 = vpop.f32.mrf.mxu0 }
 0x194   :  { %5748 = vst [vmem:[#allocation20_spill] sm:$0xff] %v4987_v62  ;;  %v4127_v62 = vld [vmem:[%s5683_s0 + $0x2f0] ss:$12 sps:$4 sm:$0xff]  }
 0x195   :  { %v2313_v45 = vpop.f32.mrf.mxu0 }
 0x197   :  { %v4916_v18 = vpop.f32.mrf.mxu1  ;;  %3904 = vmatmul.mubr.msk.bf16.gmra.mxu1 %vm265_vm0, %v4092_v9  ;;  %v5001_v36 = vpop.f32.mrf.mxu0 }
 0x198   :  { %2915 = vrot.lane.b32.xlu1 %v4916_v18, %s4151_s4  ;;  %3907 = vmatprep.mubr.msk.bf16.mxu1 %vm265_vm0, %v4096_v12  ;;  %5749 = vst [vmem:[#allocation21_spill] sm:$0xff] %v5001_v36 }
 0x199   :  { %v4924_v50 = vpop.f32.mrf.mxu1  ;;  %v2316_v12 = vpop.f32.mrf.mxu0 }
 0x19a   :  { %2911 = vrot.lane.b32.xlu0 %v4924_v50, %s4151_s4  ;;  %v4121_v12 = vld [vmem:[%s5683_s0 + $0x2a8] ss:$12 sps:$4 sm:$0xff]  }
 0x19b   :  { %v4928_v11 = vpop.f32.mrf.mxu1 }
 0x19c   :  { %2917 = vrot.lane.b32.xlu1 %v4928_v11, %s4151_s4 }
 0x19d   :  { %v4940_v28 = vpop.f32.mrf.mxu1 }
 0x19e   :  { %2913 = vrot.lane.b32.xlu0 %v4940_v28, %s4151_s4 }
 0x19f   :  { %v4944_v31 = vpop.f32.mrf.mxu1  ;;  %3908 = vmatmul.mubr.msk.bf16.gmra.mxu1 %vm265_vm0, %v4097_v24  ;;  %v5015_v24 = vpop.f32.mrf.mxu0 }
 0x1a0   :  { %3911 = vmatprep.mubr.msk.bf16.mxu1 %vm265_vm0, %v4101_v25  ;;  %5750 = vst [vmem:[#allocation22_spill] sm:$0xff] %v5015_v24  ;;  %v4116_v25 = vld [vmem:[%s5683_s0 + $0x278] ss:$12 sps:$4 sm:$0xff]  }
 0x1a1   :  { %v4950_v60 = vpop.f32.mrf.mxu1  ;;  %v2321_v34 = vpop.f32.mrf.mxu0 }
 0x1a2   :  { %2923 = vrot.lane.b32.xlu0 %v4944_v31, %s4151_s4 }
 0x1a3   :  { %v4954_v37 = vpop.f32.mrf.mxu1 }
 0x1a4   :  { %2925 = vrot.lane.b32.xlu1 %v4954_v37, %s4151_s4 }
 0x1a5   :  { %v4966_v42 = vpop.f32.mrf.mxu1 }
 0x1a6   :  { %2919 = vrot.lane.b32.xlu0 %v4950_v60, %s4151_s4 }
 0x1a7   :  { %v4970_v51 = vpop.f32.mrf.mxu1  ;;  %3912 = vmatmul.mubr.msk.bf16.gmra.mxu1 %vm265_vm0, %v4102_v40 }
 0x1a8   :  { %2921 = vrot.lane.b32.xlu1 %v4966_v42, %s4151_s4  ;;  %3915 = vmatprep.mubr.msk.bf16.mxu1 %vm265_vm0, %v4106_v22  ;;  %v5029_v22 = vpop.f32.mrf.mxu0 }
 0x1a9   :  { %v4978_v57 = vpop.f32.mrf.mxu1  ;;  %5751 = vst [vmem:[#allocation23_spill] sm:$0xff] %v5029_v22 }
 0x1aa   :  { %2931 = vrot.lane.b32.xlu0 %v4970_v51, %s4151_s4  ;;  %v2324_v56 = vpop.f32.mrf.mxu0 }
 0x1ab   :  { %v4982_v58 = vpop.f32.mrf.mxu1 }
 0x1ac   :  { %2933 = vrot.lane.b32.xlu1 %v4982_v58, %s4151_s4  ;;  %v5043_v45 = vpop.f32.mrf.mxu0 }
 0x1ad   :  { %v4994_v4 = vpop.f32.mrf.mxu1  ;;  %5752 = vst [vmem:[#allocation24_spill] sm:$0xff] %v5043_v45  ;;  %v4122_v45 = vld [vmem:[%s5683_s0 + $0x2c0] ss:$12 sps:$4 sm:$0xff]  }
 0x1ae   :  { %2927 = vrot.lane.b32.xlu0 %v4978_v57, %s4151_s4 }
 0x1af   :  { %v4998_v43 = vpop.f32.mrf.mxu1  ;;  %3916 = vmatmul.mubr.msk.bf16.gmra.mxu1 %vm265_vm0, %v4107_v61 }
 0x1b0   :  { %2929 = vrot.lane.b32.xlu1 %v4994_v4, %s4151_s4  ;;  %3919 = vmatprep.mubr.msk.bf16.mxu1 %vm265_vm0, %v4111_v0  ;;  %v4117_v0 = vld [vmem:[%s5683_s0 + $0x290] ss:$12 sps:$4 sm:$0xff]  }
 0x1b1   :  { %v5006_v9 = vpop.f32.mrf.mxu1 }
 0x1b2   :  { %2939 = vrot.lane.b32.xlu0 %v4998_v43, %s4151_s4 }
 0x1b3   :  { %v5010_v13 = vpop.f32.mrf.mxu1 }
 0x1b4   :  { %2941 = vrot.lane.b32.xlu1 %v5010_v13, %s4151_s4 }
 0x1b5   :  { %v5022_v30 = vpop.f32.mrf.mxu1 }
 0x1b6   :  { %2935 = vrot.lane.b32.xlu0 %v5006_v9, %s4151_s4 }
 0x1b7   :  { %v5026_v40 = vpop.f32.mrf.mxu1  ;;  %3920 = vmatmul.mubr.msk.bf16.gmra.mxu1 %vm265_vm0, %v4112_v1 }
 0x1b8   :  { %2937 = vrot.lane.b32.xlu1 %v5022_v30, %s4151_s4  ;;  %3923 = vmatprep.mubr.msk.bf16.mxu1 %vm265_vm0, %v4116_v25  ;;  %v2329_v25 = vpop.f32.mrf.mxu0 }
 0x1b9   :  { %v5034_v48 = vpop.f32.mrf.mxu1 }
 0x1ba   :  { %2947 = vrot.lane.b32.xlu0 %v5026_v40, %s4151_s4  ;;  %v5057_v56 = vpop.f32.mrf.mxu0 }
 0x1bb   :  { %v5038_v61 = vpop.f32.mrf.mxu1  ;;  %5753 = vst [vmem:[#allocation25_spill] sm:$0xff] %v5057_v56 }
 0x1bc   :  { %2949 = vrot.lane.b32.xlu1 %v5038_v61, %s4151_s4  ;;  %v2332_v24 = vpop.f32.mrf.mxu0 }
 0x1bd   :  { %v5050_v1 = vpop.f32.mrf.mxu1 }
 0x1be   :  { %2943 = vrot.lane.b32.xlu0 %v5034_v48, %s4151_s4 }
 0x1bf   :  { %v5054_v34 = vpop.f32.mrf.mxu1  ;;  %3924 = vmatmul.mubr.msk.bf16.gmra.mxu1 %vm265_vm0, %v4117_v0  ;;  %v5071_v0 = vpop.f32.mrf.mxu0 }
 0x1c0   :  { %2945 = vrot.lane.b32.xlu1 %v5050_v1, %s4151_s4  ;;  %3927 = vmatprep.mubr.msk.bf16.mxu1 %vm265_vm0, %v4121_v12  ;;  %5756 = vst [vmem:[#allocation28_spill] sm:$0xff] %v5071_v0  ;;  %v4126_v12 = vld [vmem:[%s5683_s0 + $0x2d8] ss:$12 sps:$4 sm:$0xff]  }
 0x1c1   :  { %v5062_v22 = vpop.f32.mrf.mxu1  ;;  %v2337_v24 = vpop.f32.mrf.mxu0 }
 0x1c2   :  { %5754 = vst [vmem:[#allocation26_spill] sm:$0xff] %v5062_v22  ;;  %2955 = vrot.lane.b32.xlu0 %v5054_v34, %s4151_s4 }
 0x1c3   :  { %v5066_v25 = vpop.f32.mrf.mxu1  ;;  %v5085_v36 = vpop.f32.mrf.mxu0 }
 0x1c4   :  { %5755 = vst [vmem:[#allocation27_spill] sm:$0xff] %v5066_v25  ;;  %2957 = vrot.lane.b32.xlu1 %v5066_v25, %s4151_s4  ;;  %5759 = vst [vmem:[#allocation31_spill] sm:$0xff] %v5085_v36  ;;  %v2725_v25 = vld [vmem:[%s5684_s1 + $0x30] sm:$0xff] }
 0x1c5   :  { %v5078_v56 = vpop.f32.mrf.mxu1  ;;  %v2340_v8 = vpop.f32.mrf.mxu0 }
 0x1c6   :  { %5757 = vst [vmem:[#allocation29_spill] sm:$0xff] %v5078_v56  ;;  %2951 = vrot.lane.b32.xlu0 %v5062_v22, %s4151_s4 }
 0x1c7   :  { %v5082_v26 = vpop.f32.mrf.mxu1  ;;  %3928 = vmatmul.mubr.msk.bf16.gmra.mxu1 %vm265_vm0, %v4122_v45  ;;  %v5099_v45 = vpop.f32.mrf.mxu0 }
 0x1c8   :  { %5758 = vst [vmem:[#allocation30_spill] sm:$0xff] %v5082_v26  ;;  %2953 = vrot.lane.b32.xlu1 %v5078_v56, %s4151_s4  ;;  %3931 = vmatprep.mubr.msk.bf16.mxu1 %vm265_vm0, %v4126_v12  ;;  %5762 = vst [vmem:[#allocation34_spill] sm:$0xff] %v5099_v45 }
 0x1c9   :  { %v5090_v0 = vpop.f32.mrf.mxu1  ;;  %v2345_v12 = vpop.f32.mrf.mxu0 }
 0x1ca   :  { %5760 = vst [vmem:[#allocation32_spill] sm:$0xff] %v5090_v0  ;;  %2963 = vrot.lane.b32.xlu0 %v5082_v26, %s4151_s4 }
 0x1cb   :  { %v5094_v24 = vpop.f32.mrf.mxu1  ;;  %v5110_v19 = vpop.f32.mrf.mxu0 }
 0x1cc   :  { %5761 = vst [vmem:[#allocation33_spill] sm:$0xff] %v5094_v24  ;;  %2965 = vrot.lane.b32.xlu1 %v5094_v24, %s4151_s4  ;;  %5765 = vst [vmem:[#allocation37_spill] sm:$0xff] %v5110_v19 }
 0x1cd   :  { %v5103_v36 = vpop.f32.mrf.mxu1  ;;  %v2348_v45 = vpop.f32.mrf.mxu0 }
 0x1ce   :  { %5763 = vst [vmem:[#allocation35_spill] sm:$0xff] %v5103_v36  ;;  %2959 = vrot.lane.b32.xlu0 %v5090_v0, %s4151_s4 }
 0x1cf   :  { %v5107_v8 = vpop.f32.mrf.mxu1  ;;  %3932 = vmatmul.mubr.msk.bf16.gmra.mxu1 %vm265_vm0, %v4127_v62  ;;  %v5120_v12 = vpop.f32.mrf.mxu0 }
 0x1d0   :  { %5764 = vst [vmem:[#allocation36_spill] sm:$0xff] %v5107_v8  ;;  %2961 = vrot.lane.b32.xlu1 %v5103_v36, %s4151_s4  ;;  %5768 = vst [vmem:[#allocation40_spill] sm:$0xff] %v5120_v12 }
 0x1d1   :  { %v5114_v33 = vpop.f32.mrf.mxu1  ;;  %v2353_v62 = vpop.f32.mrf.mxu0 }
 0x1d2   :  { %5766 = vst [vmem:[#allocation38_spill] sm:$0xff] %v5114_v33  ;;  %2971 = vrot.lane.b32.xlu0 %v5107_v8, %s4151_s4 }
 0x1d3   :  { %v5118_v10 = vpop.f32.mrf.mxu1  ;;  %v5130_v54 = vpop.f32.mrf.mxu0 }
 0x1d4   :  { %5767 = vst [vmem:[#allocation39_spill] sm:$0xff] %v5118_v10  ;;  %2973 = vrot.lane.b32.xlu1 %v5118_v10, %s4151_s4  ;;  %5771 = vst [vmem:[#allocation43_spill] sm:$0xff] %v5130_v54 }
 0x1d5   :  { %v5124_v49 = vpop.f32.mrf.mxu1  ;;  %v2356_v8 = vpop.f32.mrf.mxu0 }
 0x1d6   :  { %5769 = vst [vmem:[#allocation41_spill] sm:$0xff] %v5124_v49  ;;  %2967 = vrot.lane.b32.xlu0 %v5114_v33, %s4151_s4 }
 0x1d7   :  { %v5128_v19 = vpop.f32.mrf.mxu1  ;;  %v5140_v10 = vpop.f32.mrf.mxu0 }
 0x1d8   :  { %5770 = vst [vmem:[#allocation42_spill] sm:$0xff] %v5128_v19  ;;  %2969 = vrot.lane.b32.xlu1 %v5124_v49, %s4151_s4  ;;  %5774 = vst [vmem:[#allocation46_spill] sm:$0xff] %v5140_v10 }
 0x1d9   :  { %v5134_v45 = vpop.f32.mrf.mxu1  ;;  %v2361_v33 = vpop.f32.mrf.mxu0 }
 0x1da   :  { %5772 = vst [vmem:[#allocation44_spill] sm:$0xff] %v5134_v45  ;;  %2979 = vrot.lane.b32.xlu0 %v5128_v19, %s4151_s4 }
 0x1db   :  { %v5138_v12 = vpop.f32.mrf.mxu1  ;;  %v5150_v49 = vpop.f32.mrf.mxu0 }
 0x1dc   :  { %5773 = vst [vmem:[#allocation45_spill] sm:$0xff] %v5138_v12  ;;  %2981 = vrot.lane.b32.xlu1 %v5138_v12, %s4151_s4  ;;  %5777 = vst [vmem:[#allocation49_spill] sm:$0xff] %v5150_v49 }
 0x1dd   :  { %v5144_v62 = vpop.f32.mrf.mxu1  ;;  %v2364_v19 = vpop.f32.mrf.mxu0 }
 0x1de   :  { %5775 = vst [vmem:[#allocation47_spill] sm:$0xff] %v5144_v62  ;;  %2975 = vrot.lane.b32.xlu0 %v5134_v45, %s4151_s4 }
 0x1df   :  { %v5148_v54 = vpop.f32.mrf.mxu1  ;;  %v5160_v12 = vpop.f32.mrf.mxu0 }
 0x1e0   :  { %5776 = vst [vmem:[#allocation48_spill] sm:$0xff] %v5148_v54  ;;  %2977 = vrot.lane.b32.xlu1 %v5144_v62, %s4151_s4  ;;  %5780 = vst [vmem:[#allocation52_spill] sm:$0xff] %v5160_v12 }
 0x1e1   :  { %v5154_v8 = vpop.f32.mrf.mxu1  ;;  %v2369_v45 = vpop.f32.mrf.mxu0 }
 0x1e2   :  { %5778 = vst [vmem:[#allocation50_spill] sm:$0xff] %v5154_v8  ;;  %2987 = vrot.lane.b32.xlu0 %v5148_v54, %s4151_s4 }
 0x1e3   :  { %v5158_v10 = vpop.f32.mrf.mxu1  ;;  %v5170_v62 = vpop.f32.mrf.mxu0 }
 0x1e4   :  { %5779 = vst [vmem:[#allocation51_spill] sm:$0xff] %v5158_v10  ;;  %2989 = vrot.lane.b32.xlu1 %v5158_v10, %s4151_s4  ;;  %5783 = vst [vmem:[#allocation55_spill] sm:$0xff] %v5170_v62 }
 0x1e5   :  { %v5164_v33 = vpop.f32.mrf.mxu1  ;;  %v2372_v54 = vpop.f32.mrf.mxu0 }
 0x1e6   :  { %5781 = vst [vmem:[#allocation53_spill] sm:$0xff] %v5164_v33  ;;  %2983 = vrot.lane.b32.xlu0 %v5154_v8, %s4151_s4 }
 0x1e7   :  { %v5168_v49 = vpop.f32.mrf.mxu1  ;;  %v5180_v10 = vpop.f32.mrf.mxu0 }
 0x1e8   :  { %5782 = vst [vmem:[#allocation54_spill] sm:$0xff] %v5168_v49  ;;  %2985 = vrot.lane.b32.xlu1 %v5164_v33, %s4151_s4  ;;  %5786 = vst [vmem:[#allocation58_spill] sm:$0xff] %v5180_v10 }
 0x1e9   :  { %v5174_v19 = vpop.f32.mrf.mxu1  ;;  %v2377_v8 = vpop.f32.mrf.mxu0 }
 0x1ea   :  { %5784 = vst [vmem:[#allocation56_spill] sm:$0xff] %v5174_v19  ;;  %2995 = vrot.lane.b32.xlu0 %v5168_v49, %s4151_s4 }
 0x1eb   :  { %v5178_v12 = vpop.f32.mrf.mxu1  ;;  %v5190_v33 = vpop.f32.mrf.mxu0 }
 0x1ec   :  { %5785 = vst [vmem:[#allocation57_spill] sm:$0xff] %v5178_v12  ;;  %2997 = vrot.lane.b32.xlu1 %v5178_v12, %s4151_s4  ;;  %5789 = vst [vmem:[#allocation61_spill] sm:$0xff] %v5190_v33 }
 0x1ed   :  { %v5184_v45 = vpop.f32.mrf.mxu1  ;;  %v2380_v49 = vpop.f32.mrf.mxu0 }
 0x1ee   :  { %5787 = vst [vmem:[#allocation59_spill] sm:$0xff] %v5184_v45  ;;  %2991 = vrot.lane.b32.xlu0 %v5174_v19, %s4151_s4 }
 0x1ef   :  { %v5188_v62 = vpop.f32.mrf.mxu1  ;;  %v5200_v12 = vpop.f32.mrf.mxu0 }
 0x1f0   :  { %5788 = vst [vmem:[#allocation60_spill] sm:$0xff] %v5188_v62  ;;  %2993 = vrot.lane.b32.xlu1 %v5184_v45, %s4151_s4  ;;  %5792 = vst [vmem:[#allocation64_spill] sm:$0xff] %v5200_v12 }
 0x1f1   :  { %v5194_v54 = vpop.f32.mrf.mxu1  ;;  %v2385_v19 = vpop.f32.mrf.mxu0 }
 0x1f2   :  { %5790 = vst [vmem:[#allocation62_spill] sm:$0xff] %v5194_v54  ;;  %3003 = vrot.lane.b32.xlu0 %v5188_v62, %s4151_s4 }
 0x1f3   :  { %v5198_v10 = vpop.f32.mrf.mxu1  ;;  %v5210_v45 = vpop.f32.mrf.mxu0 }
 0x1f4   :  { %5791 = vst [vmem:[#allocation63_spill] sm:$0xff] %v5198_v10  ;;  %3005 = vrot.lane.b32.xlu1 %v5198_v10, %s4151_s4  ;;  %5795 = vst [vmem:[#allocation67_spill] sm:$0xff] %v5210_v45 }
 0x1f5   :  { %v5204_v8 = vpop.f32.mrf.mxu1  ;;  %v2388_v62 = vpop.f32.mrf.mxu0 }
 0x1f6   :  { %5793 = vst [vmem:[#allocation65_spill] sm:$0xff] %v5204_v8  ;;  %2999 = vrot.lane.b32.xlu0 %v5194_v54, %s4151_s4 }
 0x1f7   :  { %v5208_v33 = vpop.f32.mrf.mxu1  ;;  %v5220_v10 = vpop.f32.mrf.mxu0 }
 0x1f8   :  { %5794 = vst [vmem:[#allocation66_spill] sm:$0xff] %v5208_v33  ;;  %3001 = vrot.lane.b32.xlu1 %v5204_v8, %s4151_s4  ;;  %5798 = vst [vmem:[#allocation70_spill] sm:$0xff] %v5220_v10 }
 0x1f9   :  { %v5214_v49 = vpop.f32.mrf.mxu1  ;;  %v2393_v54 = vpop.f32.mrf.mxu0 }
 0x1fa   :  { %5796 = vst [vmem:[#allocation68_spill] sm:$0xff] %v5214_v49  ;;  %3011 = vrot.lane.b32.xlu0 %v5208_v33, %s4151_s4 }
 0x1fb   :  { %v5218_v12 = vpop.f32.mrf.mxu1  ;;  %v5230_v8 = vpop.f32.mrf.mxu0 }
 0x1fc   :  { %5797 = vst [vmem:[#allocation69_spill] sm:$0xff] %v5218_v12  ;;  %3013 = vrot.lane.b32.xlu1 %v5218_v12, %s4151_s4  ;;  %5801 = vst [vmem:[#allocation73_spill] sm:$0xff] %v5230_v8 }
 0x1fd   :  { %v5224_v19 = vpop.f32.mrf.mxu1  ;;  %v2396_v33 = vpop.f32.mrf.mxu0 }
 0x1fe   :  { %5799 = vst [vmem:[#allocation71_spill] sm:$0xff] %v5224_v19  ;;  %3007 = vrot.lane.b32.xlu0 %v5214_v49, %s4151_s4 }
 0x1ff   :  { %v5228_v45 = vpop.f32.mrf.mxu1  ;;  %v5240_v12 = vpop.f32.mrf.mxu0 }
 0x200   :  { %5800 = vst [vmem:[#allocation72_spill] sm:$0xff] %v5228_v45  ;;  %3009 = vrot.lane.b32.xlu1 %v5224_v19, %s4151_s4  ;;  %5804 = vst [vmem:[#allocation76_spill] sm:$0xff] %v5240_v12 }
 0x201   :  { %v5234_v62 = vpop.f32.mrf.mxu1  ;;  %v2401_v49 = vpop.f32.mrf.mxu0 }
 0x202   :  { %5802 = vst [vmem:[#allocation74_spill] sm:$0xff] %v5234_v62  ;;  %3019 = vrot.lane.b32.xlu0 %v5228_v45, %s4151_s4 }
 0x203   :  { %v5238_v10 = vpop.f32.mrf.mxu1  ;;  %v5250_v19 = vpop.f32.mrf.mxu0 }
 0x204   :  { %5803 = vst [vmem:[#allocation75_spill] sm:$0xff] %v5238_v10  ;;  %3021 = vrot.lane.b32.xlu1 %v5238_v10, %s4151_s4  ;;  %5807 = vst [vmem:[#allocation79_spill] sm:$0xff] %v5250_v19 }
 0x205   :  { %v5244_v54 = vpop.f32.mrf.mxu1  ;;  %v2404_v45 = vpop.f32.mrf.mxu0 }
 0x206   :  { %5805 = vst [vmem:[#allocation77_spill] sm:$0xff] %v5244_v54  ;;  %3015 = vrot.lane.b32.xlu0 %v5234_v62, %s4151_s4 }
 0x207   :  { %v5248_v8 = vpop.f32.mrf.mxu1  ;;  %v5260_v10 = vpop.f32.mrf.mxu0 }
 0x208   :  { %5806 = vst [vmem:[#allocation78_spill] sm:$0xff] %v5248_v8  ;;  %3017 = vrot.lane.b32.xlu1 %v5244_v54, %s4151_s4  ;;  %5810 = vst [vmem:[#allocation82_spill] sm:$0xff] %v5260_v10 }
 0x209   :  { %v5254_v33 = vpop.f32.mrf.mxu1  ;;  %v2409_v19 = vpop.f32.mrf.mxu0 }
 0x20a   :  { %5808 = vst [vmem:[#allocation80_spill] sm:$0xff] %v5254_v33  ;;  %3027 = vrot.lane.b32.xlu0 %v5248_v8, %s4151_s4  ;;  %v2916_v49 = vpop.permute.xlu1 %2915  ;;  %v2721_v19 = vld [vmem:[%s5684_s1 + $0x10] sm:$0xff] }
 0x20b   :  { %v5258_v12 = vpop.f32.mrf.mxu1  ;;  %v5270_v45 = vpop.f32.mrf.mxu0  ;;  %v2785_v5 = vmul.f32 %v4916_v18, %v2721_v19  ;;  %v2720_v18 = vld [vmem:[%s5684_s1 + $0x8] sm:$0xff] }
 0x20c   :  { %5809 = vst [vmem:[#allocation81_spill] sm:$0xff] %v5258_v12  ;;  %v2912_v2 = vpop.permute.xlu0 %2911  ;;  %3029 = vrot.lane.b32.xlu1 %v5258_v12, %s4151_s4  ;;  %5813 = vst [vmem:[#allocation85_spill] sm:$0xff] %v5270_v45 }
 0x20d   :  { %v5264_v62 = vpop.f32.mrf.mxu1  ;;  %v2412_v36 = vpop.f32.mrf.mxu0  ;;  %v3105_v14 = vadd.f32 %v2916_v49, %v2785_v5  ;;  %v2784_v49 = vmul.f32 %v2720_v18, %v4940_v28  ;;  %v2726_v28 = vld [vmem:[%s5684_s1 + $0x38] sm:$0xff] }
 0x20e   :  { %5811 = vst [vmem:[#allocation83_spill] sm:$0xff] %v5264_v62  ;;  %3023 = vrot.lane.b32.xlu0 %v5254_v33, %s4151_s4  ;;  %v2918_v59 = vpop.permute.xlu1 %2917 }
 0x20f   :  { %v5268_v54 = vpop.f32.mrf.mxu1  ;;  %v5283_v33 = vpop.f32.mrf.mxu0 }
 0x210   :  { %5812 = vst [vmem:[#allocation84_spill] sm:$0xff] %v5268_v54  ;;  %v2914_v8 = vpop.permute.xlu0 %2913  ;;  %3025 = vrot.lane.b32.xlu1 %v5264_v62, %s4151_s4  ;;  %5816 = vst [vmem:[#allocation88_spill] sm:$0xff] %v5283_v33  ;;  %v2719_v62 = vld [vmem:[%s5684_s1] sm:$0xff]  ;;  %v2722_v33 = vld [vmem:[%s5684_s1 + $0x18] sm:$0xff] }
 0x211   :  { %v5274_v10 = vpop.f32.mrf.mxu1  ;;  %v2417_v36 = vpop.f32.mrf.mxu0  ;;  %v2783_v26 = vmul.f32 %v2719_v62, %v4924_v50 }
 0x212   :  { %5814 = vst [vmem:[#allocation86_spill] sm:$0xff] %v5274_v10  ;;  %3031 = vrot.lane.b32.xlu0 %v5274_v10, %s4151_s4 }
 0x213   :  { %v5281_v12 = vpop.f32.mrf.mxu1  ;;  %v5298_v47 = vpop.f32.mrf.mxu0  ;;  %v3103_v16 = vadd.f32 %v2912_v2, %v2783_v26 }
 0x214   :  { %5815 = vst [vmem:[#allocation87_spill] sm:$0xff] %v5281_v12  ;;  %v2924_v45 = vpop.permute.xlu0 %2923  ;;  %5818 = vst [vmem:[#allocation90_spill] sm:$0xff] %v5298_v47 }
 0x215   :  { %v5288_v24 = vpop.f32.mrf.mxu1  ;;  %v2420_v41 = vpop.f32.mrf.mxu0 }
 0x216   :  { %5817 = vst [vmem:[#allocation89_spill] sm:$0xff] %v5288_v24  ;;  %v2926_v0 = vpop.permute.xlu1 %2925  ;;  %3035 = vrot.lane.b32.xlu0 %v5268_v54, %s4151_s4  ;;  %3033 = vrot.lane.b32.xlu1 %v5288_v24, %s4151_s4  ;;  %v2786_v24 = vmul.f32 %v4928_v11, %v2722_v33  ;;  %v2723_v41 = vld [vmem:[%s5684_s1 + $0x20] sm:$0xff] }
 0x217   :  { %v3873_v10 = vpop.f32.mrf.mxu1 }
 0x218   :  { %v2473_v36 = vadd.f32 %v3873_v10, %v4708_v3  ;;  %v2920_v54 = vpop.permute.xlu0 %2919  ;;  %v5313_v10 = vpop.f32.mrf.mxu0  ;;  %v3106_v11 = vadd.f32 %v2918_v59, %v2786_v24 }
 0x219   :  { %v2464_v56 = vpop.f32.mrf.mxu1  ;;  %5819 = vst [vmem:[#allocation91_spill] sm:$0xff] %v5313_v10 }
 0x21a   :  { %v3169_v47 = vadd.f32 %v3105_v14, %v2473_v36  ;;  %v2465_v50 = vadd.f32 %v2464_v56, %v4678_v44  ;;  %v2922_v5 = vpop.permute.xlu1 %2921  ;;  %3037 = vrot.lane.b32.xlu1 %v5281_v12, %s4151_s4  ;;  %v2789_v44 = vmul.f32 %v4944_v31, %v2725_v25  ;;  %v2425_v56 = vpop.f32.mrf.mxu0  ;;  %v3104_v36 = vadd.f32 %v2914_v8, %v2784_v49 }
 0x21b   :  { %v3874_v3 = vpop.f32.mrf.mxu1 }
 0x21c   :  { %v3233_v22 = vadd.f32 %v3169_v47, %v2721_v19  ;;  %v3167_v32 = vadd.f32 %v3103_v16, %v2465_v50  ;;  %v2476_v14 = vadd.f32 %v3874_v3, %v4717_v7  ;;  %v2932_v2 = vpop.permute.xlu0 %2931  ;;  %v2787_v16 = vmul.f32 %v2723_v41, %v4950_v60  ;;  %v5326_v24 = vpop.f32.mrf.mxu0  ;;  %v2724_v19 = vld [vmem:[%s5684_s1 + $0x28] sm:$0xff]  ;;  %v2729_v60 = vld [vmem:[%s5684_s1 + $0x50] sm:$0xff] }
 0x21d   :  { %v2467_v26 = vpop.f32.mrf.mxu1  ;;  %v3109_v31 = vadd.f32 %v2924_v45, %v2789_v44 }
 0x21e   :  { %3297 = vst.msk [vmem:[#allocation2 + $0x10] sm:$0xff] %vm265_vm0, %v3233_v22  ;;  %v3231_v12 = vadd.f32 %v3167_v32, %v2719_v62  ;;  %v3170_v10 = vadd.f32 %v3106_v11, %v2476_v14  ;;  %v2468_v59 = vadd.f32 %v2467_v26, %v4689_v52  ;;  %v2934_v47 = vpop.permute.xlu1 %2933  ;;  %v2790_v52 = vmul.f32 %v4954_v37, %v2726_v28  ;;  %v2428_v49 = vpop.f32.mrf.mxu0  ;;  %v2727_v37 = vld [vmem:[%s5684_s1 + $0x40] sm:$0xff] }
 0x21f   :  { %v3877_v7 = vpop.f32.mrf.mxu1  ;;  %v3107_v45 = vadd.f32 %v2920_v54, %v2787_v16 }
 0x220   :  { %3295 = vst.msk [vmem:[#allocation2] sm:$0xff] %vm265_vm0, %v3231_v12  ;;  %v3234_v8 = vadd.f32 %v3170_v10, %v2722_v33  ;;  %v3168_v50 = vadd.f32 %v3104_v36, %v2468_v59  ;;  %v2489_v32 = vadd.f32 %v3877_v7, %v4759_v21  ;;  %v2928_v22 = vpop.permute.xlu0 %2927  ;;  %v2788_v10 = vmul.f32 %v2724_v19, %v4966_v42 }
 0x221   :  { %v2480_v62 = vpop.f32.mrf.mxu1  ;;  %v3110_v14 = vadd.f32 %v2926_v0, %v2790_v52 }
 0x222   :  { %3298 = vst.msk [vmem:[#allocation2 + $0x18] sm:$0xff] %vm265_vm0, %v3234_v8  ;;  %v3232_v12 = vadd.f32 %v3168_v50, %v2720_v18  ;;  %v3173_v3 = vadd.f32 %v3109_v31, %v2489_v32  ;;  %v2481_v11 = vadd.f32 %v2480_v62, %v4736_v39  ;;  %v2930_v33 = vpop.permute.xlu1 %2929  ;;  %v2793_v18 = vmul.f32 %v4970_v51, %v2729_v60  ;;  %v2730_v39 = vld [vmem:[%s5684_s1 + $0x58] sm:$0xff]  ;;  %v2728_v51 = vld [vmem:[%s5684_s1 + $0x48] sm:$0xff] }
 0x223   :  { %v3878_v21 = vpop.f32.mrf.mxu1  ;;  %v3108_v42 = vadd.f32 %v2922_v5, %v2788_v10 }
 0x224   :  { %3296 = vst.msk [vmem:[#allocation2 + $0x8] sm:$0xff] %vm265_vm0, %v3232_v12  ;;  %v3237_v44 = vadd.f32 %v3173_v3, %v2725_v25  ;;  %v3171_v26 = vadd.f32 %v3107_v45, %v2481_v11  ;;  %v2492_v54 = vadd.f32 %v3878_v21, %v4766_v46  ;;  %v2940_v56 = vpop.permute.xlu0 %2939  ;;  %v2791_v25 = vmul.f32 %v2727_v37, %v4978_v57 }
 0x225   :  { %v2483_v36 = vpop.f32.mrf.mxu1  ;;  %v3113_v46 = vadd.f32 %v2932_v2, %v2793_v18 }
 0x226   :  { %3301 = vst.msk [vmem:[#allocation2 + $0x30] sm:$0xff] %vm265_vm0, %v3237_v44  ;;  %v3235_v59 = vadd.f32 %v3171_v26, %v2723_v41  ;;  %v3174_v16 = vadd.f32 %v3110_v14, %v2492_v54  ;;  %v2484_v0 = vadd.f32 %v2483_v36, %v4744_v27  ;;  %v2942_v7 = vpop.permute.xlu1 %2941  ;;  %v2794_v41 = vmul.f32 %v4982_v58, %v2730_v39  ;;  %v2733_v27 = vld [vmem:[%s5684_s1 + $0x70] sm:$0xff] }
 0x227   :  { %v3881_v31 = vpop.f32.mrf.mxu1  ;;  %v3111_v57 = vadd.f32 %v2928_v22, %v2791_v25 }
 0x228   :  { %3299 = vst.msk [vmem:[#allocation2 + $0x20] sm:$0xff] %vm265_vm0, %v3235_v59  ;;  %v3238_v8 = vadd.f32 %v3174_v16, %v2726_v28  ;;  %v3172_v50 = vadd.f32 %v3108_v42, %v2484_v0  ;;  %v2505_v5 = vadd.f32 %v3881_v31, %v4794_v55  ;;  %v2936_v32 = vpop.permute.xlu0 %2935  ;;  %v2792_v28 = vmul.f32 %v2728_v51, %v4994_v4  ;;  %v2731_v55 = vld [vmem:[%s5684_s1 + $0x60] sm:$0xff] }
 0x229   :  { %v2496_v52 = vpop.f32.mrf.mxu1  ;;  %v3114_v58 = vadd.f32 %v2934_v47, %v2794_v41 }
 0x22a   :  { %3302 = vst.msk [vmem:[#allocation2 + $0x38] sm:$0xff] %vm265_vm0, %v3238_v8  ;;  %v3236_v2 = vadd.f32 %v3172_v50, %v2724_v19  ;;  %v3177_v62 = vadd.f32 %v3113_v46, %v2505_v5  ;;  %v2497_v49 = vadd.f32 %v2496_v52, %v4779_v53  ;;  %v2938_v45 = vpop.permute.xlu1 %2937  ;;  %v2797_v19 = vmul.f32 %v4998_v43, %v2733_v27  ;;  %v2734_v53 = vld [vmem:[%s5684_s1 + $0x78] sm:$0xff]  ;;  %v2732_v43 = vld [vmem:[%s5684_s1 + $0x68] sm:$0xff] }
 0x22b   :  { %v3882_v12 = vpop.f32.mrf.mxu1  ;;  %v3112_v4 = vadd.f32 %v2930_v33, %v2792_v28 }
 0x22c   :  { %3300 = vst.msk [vmem:[#allocation2 + $0x28] sm:$0xff] %vm265_vm0, %v3236_v2  ;;  %v3241_v3 = vadd.f32 %v3177_v62, %v2729_v60  ;;  %v3175_v11 = vadd.f32 %v3111_v57, %v2497_v49  ;;  %v2508_v22 = vadd.f32 %v3882_v12, %v4800_v63  ;;  %v2948_v10 = vpop.permute.xlu0 %2947  ;;  %v2795_v60 = vmul.f32 %v2731_v55, %v5006_v9 }
 0x22d   :  { %v2499_v21 = vpop.f32.mrf.mxu1  ;;  %v3117_v63 = vadd.f32 %v2940_v56, %v2797_v19 }
 0x22e   :  { %3305 = vst.msk [vmem:[#allocation2 + $0x50] sm:$0xff] %vm265_vm0, %v3241_v3  ;;  %v3239_v14 = vadd.f32 %v3175_v11, %v2727_v37  ;;  %v3178_v44 = vadd.f32 %v3114_v58, %v2508_v22  ;;  %v2500_v47 = vadd.f32 %v2499_v21, %v4784_v35  ;;  %v2950_v26 = vpop.permute.xlu1 %2949  ;;  %v2798_v37 = vmul.f32 %v5010_v13, %v2734_v53  ;;  %v2737_v35 = vld [vmem:[%s5684_s1 + $0x90] sm:$0xff] }
 0x22f   :  { %v3885_v54 = vpop.f32.mrf.mxu1  ;;  %v3115_v9 = vadd.f32 %v2936_v32, %v2795_v60 }
 0x230   :  { %3303 = vst.msk [vmem:[#allocation2 + $0x40] sm:$0xff] %vm265_vm0, %v3239_v14  ;;  %v3242_v18 = vadd.f32 %v3178_v44, %v2730_v39  ;;  %v3176_v36 = vadd.f32 %v3112_v4, %v2500_v47  ;;  %v2521_v33 = vadd.f32 %v3885_v54, %v4827_v23  ;;  %v2944_v42 = vpop.permute.xlu0 %2943  ;;  %v2796_v39 = vmul.f32 %v2732_v43, %v5022_v30  ;;  %v2735_v23 = vld [vmem:[%s5684_s1 + $0x80] sm:$0xff] }
 0x231   :  { %v2512_v59 = vpop.f32.mrf.mxu1  ;;  %v3118_v13 = vadd.f32 %v2942_v7, %v2798_v37 }
 0x232   :  { %3306 = vst.msk [vmem:[#allocation2 + $0x58] sm:$0xff] %vm265_vm0, %v3242_v18  ;;  %v3240_v56 = vadd.f32 %v3176_v36, %v2728_v51  ;;  %v3181_v16 = vadd.f32 %v3117_v63, %v2521_v33  ;;  %v2513_v0 = vadd.f32 %v2512_v59, %v4812_v15  ;;  %v2946_v25 = vpop.permute.xlu1 %2945  ;;  %v2801_v51 = vmul.f32 %v5026_v40, %v2737_v35  ;;  %v2738_v15 = vld [vmem:[%s5684_s1 + $0x98] sm:$0xff]  ;;  %v5821_v18 = vld [vmem:[#allocation26_spill] sm:$0xff] }
 0x233   :  { %v3886_v31 = vpop.f32.mrf.mxu1  ;;  %v3116_v30 = vadd.f32 %v2938_v45, %v2796_v39  ;;  %v2802_v12 = vmul.f32 %v5038_v61, %v2738_v15  ;;  %v5822_v59 = vld [vmem:[#allocation8_spill] sm:$0xff] }
 0x234   :  { %3304 = vst.msk [vmem:[#allocation2 + $0x48] sm:$0xff] %vm265_vm0, %v3240_v56  ;;  %v3245_v46 = vadd.f32 %v3181_v16, %v2733_v27  ;;  %v3179_v8 = vadd.f32 %v3115_v9, %v2513_v0  ;;  %v2524_v50 = vadd.f32 %v3886_v31, %v4833_v17  ;;  %v2956_v5 = vpop.permute.xlu0 %2955  ;;  %v2799_v27 = vmul.f32 %v2735_v23, %v5034_v48  ;;  %v2736_v17 = vld [vmem:[%s5684_s1 + $0x88] sm:$0xff]  ;;  %v5823_v56 = vld [vmem:[#allocation27_spill] sm:$0xff] }
 0x235   :  { %v2515_v32 = vpop.f32.mrf.mxu1  ;;  %v3121_v40 = vadd.f32 %v2948_v10, %v2801_v51  ;;  %v2800_v10 = vmul.f32 %v2736_v17, %v5050_v1  ;;  %v3122_v61 = vadd.f32 %v2950_v26, %v2802_v12  ;;  %v5820_v26 = vld [vmem:[#allocation5_spill] sm:$0xff] }
 0x236   :  { %3309 = vst.msk [vmem:[#allocation2 + $0x70] sm:$0xff] %vm265_vm0, %v3245_v46  ;;  %v3243_v41 = vadd.f32 %v3179_v8, %v2731_v55  ;;  %v3182_v52 = vadd.f32 %v3118_v13, %v2524_v50  ;;  %v2516_v7 = vadd.f32 %v2515_v32, %v4818_v20  ;;  %v2958_v57 = vpop.permute.xlu1 %2957  ;;  %v2741_v20 = vld [vmem:[%s5684_s1 + $0xb0] sm:$0xff]  ;;  %v3119_v48 = vadd.f32 %v2944_v42, %v2799_v27  ;;  %v5824_v13 = vld [vmem:[#allocation6_spill] sm:$0xff]  ;;  %v5825_v50 = vld [vmem:[#allocation29_spill] sm:$0xff] }
 0x237   :  { %v3889_v2 = vpop.f32.mrf.mxu1  ;;  %v2805_v44 = vmul.f32 %v5054_v34, %v2741_v20  ;;  %v3120_v1 = vadd.f32 %v2946_v25, %v2800_v10  ;;  %v2745_v25 = vld [vmem:[%s5684_s1 + $0xd0] sm:$0xff]  ;;  %v2743_v32 = vld [vmem:[%s5684_s1 + $0xc0] sm:$0xff] }
 0x238   :  { %3307 = vst.msk [vmem:[#allocation2 + $0x60] sm:$0xff] %vm265_vm0, %v3243_v41  ;;  %v3246_v62 = vadd.f32 %v3182_v52, %v2734_v53  ;;  %v3180_v49 = vadd.f32 %v3116_v30, %v2516_v7  ;;  %v2537_v45 = vadd.f32 %v3889_v2, %v4851_v6  ;;  %v2952_v28 = vpop.permute.xlu0 %2951  ;;  %v2739_v6 = vld [vmem:[%s5684_s1 + $0xa0] sm:$0xff]  ;;  %v5827_v2 = vld [vmem:[#allocation30_spill] sm:$0xff] }
 0x239   :  { %v2528_v55 = vpop.f32.mrf.mxu1  ;;  %v2803_v36 = vmul.f32 %v2739_v6, %v5821_v18  ;;  %v3125_v34 = vadd.f32 %v2956_v5, %v2805_v44  ;;  %v5826_v52 = vld [vmem:[#allocation9_spill] sm:$0xff]  ;;  %v2749_v44 = vld [vmem:[%s5684_s1 + $0xf0] sm:$0xff] }
 0x23a   :  { %3310 = vst.msk [vmem:[#allocation2 + $0x78] sm:$0xff] %vm265_vm0, %v3246_v62  ;;  %v3244_v58 = vadd.f32 %v3180_v49, %v2732_v43  ;;  %v3185_v3 = vadd.f32 %v3121_v40, %v2537_v45  ;;  %v2529_v11 = vadd.f32 %v2528_v55, %v4839_v29  ;;  %v2954_v22 = vpop.permute.xlu1 %2953  ;;  %v2742_v29 = vld [vmem:[%s5684_s1 + $0xb8] sm:$0xff] }
 0x23b   :  { %v3890_v19 = vpop.f32.mrf.mxu1  ;;  %v2806_v16 = vmul.f32 %v5823_v56, %v2742_v29  ;;  %v3123_v39 = vadd.f32 %v2952_v28, %v2803_v36  ;;  %v2746_v62 = vld [vmem:[%s5684_s1 + $0xd8] sm:$0xff]  ;;  %v2747_v36 = vld [vmem:[%s5684_s1 + $0xe0] sm:$0xff] }
 0x23c   :  { %3308 = vst.msk [vmem:[#allocation2 + $0x68] sm:$0xff] %vm265_vm0, %v3244_v58  ;;  %v3249_v21 = vadd.f32 %v3185_v3, %v2737_v35  ;;  %v3183_v53 = vadd.f32 %v3119_v48, %v2529_v11  ;;  %v2540_v4 = vadd.f32 %v3890_v19, %v4857_v38  ;;  %v2964_v14 = vpop.permute.xlu0 %2963  ;;  %v2740_v38 = vld [vmem:[%s5684_s1 + $0xa8] sm:$0xff] }
 0x23d   :  { %v2531_v47 = vpop.f32.mrf.mxu1  ;;  %v2804_v5 = vmul.f32 %v2740_v38, %v5825_v50  ;;  %v2744_v3 = vld [vmem:[%s5684_s1 + $0xc8] sm:$0xff] }
 0x23e   :  { %3313 = vst.msk [vmem:[#allocation2 + $0x90] sm:$0xff] %vm265_vm0, %v3249_v21  ;;  %v3247_v60 = vadd.f32 %v3183_v53, %v2735_v23  ;;  %v3186_v54 = vadd.f32 %v3122_v61, %v2540_v4  ;;  %v2532_v63 = vadd.f32 %v2531_v47, %v5820_v26  ;;  %v2966_v43 = vpop.permute.xlu1 %2965 }
 0x23f   :  { %v3893_v33 = vpop.f32.mrf.mxu1  ;;  %v3124_v49 = vadd.f32 %v2954_v22, %v2804_v5  ;;  %v5830_v22 = vld [vmem:[#allocation12_spill] sm:$0xff]  ;;  %v2748_v5 = vld [vmem:[%s5684_s1 + $0xe8] sm:$0xff] }
 0x240   :  { %3311 = vst.msk [vmem:[#allocation2 + $0x80] sm:$0xff] %vm265_vm0, %v3247_v60  ;;  %v3250_v42 = vadd.f32 %v3186_v54, %v2738_v15  ;;  %v3184_v37 = vadd.f32 %v3120_v1, %v2532_v63  ;;  %v2553_v35 = vadd.f32 %v3893_v33, %v5822_v59  ;;  %v2960_v9 = vpop.permute.xlu0 %2959  ;;  %v3126_v15 = vadd.f32 %v2958_v57, %v2806_v16  ;;  %v5828_v57 = vld [vmem:[#allocation7_spill] sm:$0xff]  ;;  %v2750_v16 = vld [vmem:[%s5684_s1 + $0xf8] sm:$0xff] }
 0x241   :  { %v2544_v0 = vpop.f32.mrf.mxu1 }
 0x242   :  { %3314 = vst.msk [vmem:[#allocation2 + $0x98] sm:$0xff] %vm265_vm0, %v3250_v42  ;;  %v3248_v31 = vadd.f32 %v3184_v37, %v2736_v17  ;;  %v3189_v23 = vadd.f32 %v3125_v34, %v2553_v35  ;;  %v2545_v46 = vadd.f32 %v2544_v0, %v5824_v13  ;;  %v2962_v8 = vpop.permute.xlu1 %2961  ;;  %v2809_v17 = vmul.f32 %v5827_v2, %v2745_v25  ;;  %v5834_v37 = vld [vmem:[#allocation13_spill] sm:$0xff] }
 0x243   :  { %v3894_v51 = vpop.f32.mrf.mxu1 }
 0x244   :  { %3312 = vst.msk [vmem:[#allocation2 + $0x88] sm:$0xff] %vm265_vm0, %v3248_v31  ;;  %v3253_v30 = vadd.f32 %v3189_v23, %v2741_v20  ;;  %v3187_v41 = vadd.f32 %v3123_v39, %v2545_v46  ;;  %v2556_v7 = vadd.f32 %v3894_v51, %v5826_v52  ;;  %v2972_v27 = vpop.permute.xlu0 %2971  ;;  %v5829_v20 = vld [vmem:[#allocation32_spill] sm:$0xff]  ;;  %v3129_v11 = vadd.f32 %v2964_v14, %v2809_v17  ;;  %v5832_v14 = vld [vmem:[#allocation10_spill] sm:$0xff]  ;;  %v2753_v17 = vld [vmem:[%s5684_s1 + $0x110] sm:$0xff] }
 0x245   :  { %v2547_v40 = vpop.f32.mrf.mxu1  ;;  %v2807_v48 = vmul.f32 %v2743_v32, %v5829_v20 }
 0x246   :  { %3317 = vst.msk [vmem:[#allocation2 + $0xb0] sm:$0xff] %vm265_vm0, %v3253_v30  ;;  %v3251_v45 = vadd.f32 %v3187_v41, %v2739_v6  ;;  %v3190_v28 = vadd.f32 %v3126_v15, %v2556_v7  ;;  %v2548_v12 = vadd.f32 %v2547_v40, %v5828_v57  ;;  %v2974_v55 = vpop.permute.xlu1 %2973  ;;  %v5831_v6 = vld [vmem:[#allocation33_spill] sm:$0xff] }
 0x247   :  { %v3897_v58 = vpop.f32.mrf.mxu1  ;;  %v2810_v53 = vmul.f32 %v5831_v6, %v2746_v62  ;;  %v3127_v47 = vadd.f32 %v2960_v9, %v2807_v48  ;;  %v2751_v48 = vld [vmem:[%s5684_s1 + $0x100] sm:$0xff] }
 0x248   :  { %3315 = vst.msk [vmem:[#allocation2 + $0xa0] sm:$0xff] %vm265_vm0, %v3251_v45  ;;  %v3254_v10 = vadd.f32 %v3190_v28, %v2742_v29  ;;  %v3188_v19 = vadd.f32 %v3124_v49, %v2548_v12  ;;  %v2569_v61 = vadd.f32 %v3897_v58, %v5830_v22  ;;  %v2968_v21 = vpop.permute.xlu0 %2967  ;;  %v5833_v29 = vld [vmem:[#allocation35_spill] sm:$0xff] }
 0x249   :  { %v2560_v4 = vpop.f32.mrf.mxu1  ;;  %v2808_v63 = vmul.f32 %v2744_v3, %v5833_v29  ;;  %v3130_v33 = vadd.f32 %v2966_v43, %v2810_v53  ;;  %v5836_v43 = vld [vmem:[#allocation11_spill] sm:$0xff]  ;;  %v2754_v53 = vld [vmem:[%s5684_s1 + $0x118] sm:$0xff] }
 0x24a   :  { %3318 = vst.msk [vmem:[#allocation2 + $0xb8] sm:$0xff] %vm265_vm0, %v3254_v10  ;;  %v3252_v1 = vadd.f32 %v3188_v19, %v2740_v38  ;;  %v3193_v60 = vadd.f32 %v3129_v11, %v2569_v61  ;;  %v2561_v54 = vadd.f32 %v2560_v4, %v5832_v14  ;;  %v2970_v26 = vpop.permute.xlu1 %2969  ;;  %v5835_v38 = vld [vmem:[#allocation36_spill] sm:$0xff]  ;;  %v5842_v19 = vld [vmem:[#allocation17_spill] sm:$0xff] }
 0x24b   :  { %v3898_v18 = vpop.f32.mrf.mxu1  ;;  %v2813_v9 = vmul.f32 %v5835_v38, %v2749_v44  ;;  %v3128_v0 = vadd.f32 %v2962_v8, %v2808_v63  ;;  %v5838_v8 = vld [vmem:[#allocation16_spill] sm:$0xff]  ;;  %v2752_v63 = vld [vmem:[%s5684_s1 + $0x108] sm:$0xff] }
 0x24c   :  { %3316 = vst.msk [vmem:[#allocation2 + $0xa8] sm:$0xff] %vm265_vm0, %v3252_v1  ;;  %v3257_v34 = vadd.f32 %v3193_v60, %v2745_v25  ;;  %v3191_v42 = vadd.f32 %v3127_v47, %v2561_v54  ;;  %v2572_v59 = vadd.f32 %v3898_v18, %v5834_v37  ;;  %v2980_v35 = vpop.permute.xlu0 %2979  ;;  %v5837_v25 = vld [vmem:[#allocation38_spill] sm:$0xff] }
 0x24d   :  { %v2563_v56 = vpop.f32.mrf.mxu1  ;;  %v2811_v46 = vmul.f32 %v2747_v36, %v5837_v25  ;;  %v3133_v51 = vadd.f32 %v2972_v27, %v2813_v9  ;;  %v5840_v27 = vld [vmem:[#allocation14_spill] sm:$0xff]  ;;  %v2757_v9 = vld [vmem:[%s5684_s1 + $0x130] sm:$0xff] }
 0x24e   :  { %3321 = vst.msk [vmem:[#allocation2 + $0xd0] sm:$0xff] %vm265_vm0, %v3257_v34  ;;  %v3255_v39 = vadd.f32 %v3191_v42, %v2743_v32  ;;  %v3194_v31 = vadd.f32 %v3130_v33, %v2572_v59  ;;  %v2564_v23 = vadd.f32 %v2563_v56, %v5836_v43  ;;  %v2982_v13 = vpop.permute.xlu1 %2981  ;;  %v5839_v32 = vld [vmem:[#allocation39_spill] sm:$0xff] }
 0x24f   :  { %v3901_v50 = vpop.f32.mrf.mxu1  ;;  %v2814_v7 = vmul.f32 %v5839_v32, %v2750_v16  ;;  %v3131_v40 = vadd.f32 %v2968_v21, %v2811_v46  ;;  %v2755_v46 = vld [vmem:[%s5684_s1 + $0x120] sm:$0xff] }
 0x250   :  { %3319 = vst.msk [vmem:[#allocation2 + $0xc0] sm:$0xff] %vm265_vm0, %v3255_v39  ;;  %v3258_v15 = vadd.f32 %v3194_v31, %v2746_v62  ;;  %v3192_v30 = vadd.f32 %v3128_v0, %v2564_v23  ;;  %v2585_v41 = vadd.f32 %v3901_v50, %v5838_v8  ;;  %v2976_v52 = vpop.permute.xlu0 %2975  ;;  %v5841_v62 = vld [vmem:[#allocation41_spill] sm:$0xff] }
 0x251   :  { %v2576_v2 = vpop.f32.mrf.mxu1  ;;  %v2812_v12 = vmul.f32 %v2748_v5, %v5841_v62  ;;  %v3134_v58 = vadd.f32 %v2974_v55, %v2814_v7  ;;  %v5844_v55 = vld [vmem:[#allocation15_spill] sm:$0xff]  ;;  %v2758_v7 = vld [vmem:[%s5684_s1 + $0x138] sm:$0xff] }
 0x252   :  { %3322 = vst.msk [vmem:[#allocation2 + $0xd8] sm:$0xff] %vm265_vm0, %v3258_v15  ;;  %v3256_v49 = vadd.f32 %v3192_v30, %v2744_v3  ;;  %v3197_v45 = vadd.f32 %v3133_v51, %v2585_v41  ;;  %v2577_v28 = vadd.f32 %v2576_v2, %v5840_v27  ;;  %v2978_v57 = vpop.permute.xlu1 %2977  ;;  %v5843_v3 = vld [vmem:[#allocation42_spill] sm:$0xff]  ;;  %v5850_v30 = vld [vmem:[#allocation21_spill] sm:$0xff] }
 0x253   :  { %v3902_v20 = vpop.f32.mrf.mxu1  ;;  %v2817_v21 = vmul.f32 %v5843_v3, %v2753_v17  ;;  %v3132_v4 = vadd.f32 %v2970_v26, %v2812_v12  ;;  %v5846_v26 = vld [vmem:[#allocation20_spill] sm:$0xff]  ;;  %v2756_v12 = vld [vmem:[%s5684_s1 + $0x128] sm:$0xff] }
 0x254   :  { %3320 = vst.msk [vmem:[#allocation2 + $0xc8] sm:$0xff] %vm265_vm0, %v3256_v49  ;;  %v3261_v11 = vadd.f32 %v3197_v45, %v2749_v44  ;;  %v3195_v10 = vadd.f32 %v3131_v40, %v2577_v28  ;;  %v2588_v22 = vadd.f32 %v3902_v20, %v5842_v19  ;;  %v2988_v61 = vpop.permute.xlu0 %2987  ;;  %v5845_v44 = vld [vmem:[#allocation44_spill] sm:$0xff] }
 0x255   :  { %v2579_v6 = vpop.f32.mrf.mxu1  ;;  %v2815_v54 = vmul.f32 %v2751_v48, %v5845_v44  ;;  %v3137_v18 = vadd.f32 %v2980_v35, %v2817_v21  ;;  %v5848_v35 = vld [vmem:[#allocation18_spill] sm:$0xff]  ;;  %v2761_v21 = vld [vmem:[%s5684_s1 + $0x150] sm:$0xff] }
 0x256   :  { %3325 = vst.msk [vmem:[#allocation2 + $0xf0] sm:$0xff] %vm265_vm0, %v3261_v11  ;;  %v3259_v47 = vadd.f32 %v3195_v10, %v2747_v36  ;;  %v3198_v1 = vadd.f32 %v3134_v58, %v2588_v22  ;;  %v2580_v60 = vadd.f32 %v2579_v6, %v5844_v55  ;;  %v2990_v14 = vpop.permute.xlu1 %2989  ;;  %v5847_v36 = vld [vmem:[#allocation45_spill] sm:$0xff] }
 0x257   :  { %v3905_v29 = vpop.f32.mrf.mxu1  ;;  %v2818_v59 = vmul.f32 %v5847_v36, %v2754_v53  ;;  %v3135_v56 = vadd.f32 %v2976_v52, %v2815_v54  ;;  %v2759_v54 = vld [vmem:[%s5684_s1 + $0x140] sm:$0xff] }
 0x258   :  { %3323 = vst.msk [vmem:[#allocation2 + $0xe0] sm:$0xff] %vm265_vm0, %v3259_v47  ;;  %v3262_v33 = vadd.f32 %v3198_v1, %v2750_v16  ;;  %v3196_v34 = vadd.f32 %v3132_v4, %v2580_v60  ;;  %v2601_v42 = vadd.f32 %v3905_v29, %v5846_v26  ;;  %v2984_v37 = vpop.permute.xlu0 %2983  ;;  %v5849_v16 = vld [vmem:[#allocation47_spill] sm:$0xff] }
 0x259   :  { %v2592_v38 = vpop.f32.mrf.mxu1  ;;  %v2816_v23 = vmul.f32 %v2752_v63, %v5849_v16  ;;  %v3138_v50 = vadd.f32 %v2982_v13, %v2818_v59  ;;  %v5852_v13 = vld [vmem:[#allocation19_spill] sm:$0xff]  ;;  %v2762_v59 = vld [vmem:[%s5684_s1 + $0x158] sm:$0xff] }
 0x25a   :  { %3326 = vst.msk [vmem:[#allocation2 + $0xf8] sm:$0xff] %vm265_vm0, %v3262_v33  ;;  %v3260_v0 = vadd.f32 %v3196_v34, %v2748_v5  ;;  %v3201_v39 = vadd.f32 %v3137_v18, %v2601_v42  ;;  %v2593_v31 = vadd.f32 %v2592_v38, %v5848_v35  ;;  %v2986_v43 = vpop.permute.xlu1 %2985  ;;  %v5851_v5 = vld [vmem:[#allocation48_spill] sm:$0xff]  ;;  %v5858_v34 = vld [vmem:[#allocation25_spill] sm:$0xff] }
 0x25b   :  { %v3906_v25 = vpop.f32.mrf.mxu1  ;;  %v2821_v52 = vmul.f32 %v5851_v5, %v2757_v9  ;;  %v3136_v2 = vadd.f32 %v2978_v57, %v2816_v23  ;;  %v5854_v57 = vld [vmem:[#allocation24_spill] sm:$0xff]  ;;  %v2760_v23 = vld [vmem:[%s5684_s1 + $0x148] sm:$0xff] }
 0x25c   :  { %3324 = vst.msk [vmem:[#allocation2 + $0xe8] sm:$0xff] %vm265_vm0, %v3260_v0  ;;  %v3265_v51 = vadd.f32 %v3201_v39, %v2753_v17  ;;  %v3199_v15 = vadd.f32 %v3135_v56, %v2593_v31  ;;  %v2604_v8 = vadd.f32 %v3906_v25, %v5850_v30  ;;  %v2996_v41 = vpop.permute.xlu0 %2995  ;;  %v5853_v17 = vld [vmem:[#allocation50_spill] sm:$0xff] }
 0x25d   :  { %v2595_v32 = vpop.f32.mrf.mxu1  ;;  %v2819_v28 = vmul.f32 %v2755_v46, %v5853_v17  ;;  %v3141_v20 = vadd.f32 %v2988_v61, %v2821_v52  ;;  %v5856_v61 = vld [vmem:[#allocation22_spill] sm:$0xff]  ;;  %v2765_v52 = vld [vmem:[%s5684_s1 + $0x170] sm:$0xff] }
 0x25e   :  { %3329 = vst.msk [vmem:[#allocation2 + $0x110] sm:$0xff] %vm265_vm0, %v3265_v51  ;;  %v3263_v40 = vadd.f32 %v3199_v15, %v2751_v48  ;;  %v3202_v49 = vadd.f32 %v3138_v50, %v2604_v8  ;;  %v2596_v45 = vadd.f32 %v2595_v32, %v5852_v13  ;;  %v2998_v27 = vpop.permute.xlu1 %2997  ;;  %v5855_v48 = vld [vmem:[#allocation51_spill] sm:$0xff] }
 0x25f   :  { %v3909_v62 = vpop.f32.mrf.mxu1  ;;  %v2822_v22 = vmul.f32 %v5855_v48, %v2758_v7  ;;  %v3139_v6 = vadd.f32 %v2984_v37, %v2819_v28  ;;  %v2763_v28 = vld [vmem:[%s5684_s1 + $0x160] sm:$0xff] }
 0x260   :  { %3327 = vst.msk [vmem:[#allocation2 + $0x100] sm:$0xff] %vm265_vm0, %v3263_v40  ;;  %v3266_v58 = vadd.f32 %v3202_v49, %v2754_v53  ;;  %v3200_v11 = vadd.f32 %v3136_v2, %v2596_v45  ;;  %v2617_v10 = vadd.f32 %v3909_v62, %v5854_v57  ;;  %v2992_v19 = vpop.permute.xlu0 %2991  ;;  %v5857_v53 = vld [vmem:[#allocation53_spill] sm:$0xff] }
 0x261   :  { %v2608_v3 = vpop.f32.mrf.mxu1  ;;  %v2820_v60 = vmul.f32 %v2756_v12, %v5857_v53  ;;  %v3142_v29 = vadd.f32 %v2990_v14, %v2822_v22  ;;  %v5860_v14 = vld [vmem:[#allocation23_spill] sm:$0xff]  ;;  %v2766_v22 = vld [vmem:[%s5684_s1 + $0x178] sm:$0xff] }
 0x262   :  { %3330 = vst.msk [vmem:[#allocation2 + $0x118] sm:$0xff] %vm265_vm0, %v3266_v58  ;;  %v3264_v4 = vadd.f32 %v3200_v11, %v2752_v63  ;;  %v3205_v47 = vadd.f32 %v3141_v20, %v2617_v10  ;;  %v2609_v1 = vadd.f32 %v2608_v3, %v5856_v61  ;;  %v2994_v55 = vpop.permute.xlu1 %2993  ;;  %v5859_v63 = vld [vmem:[#allocation54_spill] sm:$0xff]  ;;  %v5866_v11 = vld [vmem:[#allocation37_spill] sm:$0xff] }
 0x263   :  { %v3910_v44 = vpop.f32.mrf.mxu1  ;;  %v2825_v37 = vmul.f32 %v5859_v63, %v2761_v21  ;;  %v3140_v38 = vadd.f32 %v2986_v43, %v2820_v60  ;;  %v5862_v43 = vld [vmem:[#allocation34_spill] sm:$0xff] }
 0x264   :  { %3328 = vst.msk [vmem:[#allocation2 + $0x108] sm:$0xff] %vm265_vm0, %v3264_v4  ;;  %v3269_v18 = vadd.f32 %v3205_v47, %v2757_v9  ;;  %v3203_v33 = vadd.f32 %v3139_v6, %v2609_v1  ;;  %v2620_v26 = vadd.f32 %v3910_v44, %v5858_v34  ;;  %v3004_v42 = vpop.permute.xlu0 %3003  ;;  %v5861_v9 = vld [vmem:[#allocation56_spill] sm:$0xff]  ;;  %v2764_v60 = vld [vmem:[%s5684_s1 + $0x168] sm:$0xff] }
 0x265   :  { %v2611_v36 = vpop.f32.mrf.mxu1  ;;  %v2823_v31 = vmul.f32 %v2759_v54, %v5861_v9  ;;  %v3145_v25 = vadd.f32 %v2996_v41, %v2825_v37  ;;  %v5864_v41 = vld [vmem:[#allocation28_spill] sm:$0xff]  ;;  %v2769_v37 = vld [vmem:[%s5684_s1 + $0x190] sm:$0xff] }
 0x266   :  { %3333 = vst.msk [vmem:[#allocation2 + $0x130] sm:$0xff] %vm265_vm0, %v3269_v18  ;;  %v3267_v56 = vadd.f32 %v3203_v33, %v2755_v46  ;;  %v3206_v0 = vadd.f32 %v3142_v29, %v2620_v26  ;;  %v2612_v39 = vadd.f32 %v2611_v36, %v5860_v14  ;;  %v3006_v35 = vpop.permute.xlu1 %3005  ;;  %v5863_v46 = vld [vmem:[#allocation57_spill] sm:$0xff] }
 0x267   :  { %v3913_v16 = vpop.f32.mrf.mxu1  ;;  %v2826_v8 = vmul.f32 %v5863_v46, %v2762_v59  ;;  %v3143_v32 = vadd.f32 %v2992_v19, %v2823_v31  ;;  %v2767_v31 = vld [vmem:[%s5684_s1 + $0x180] sm:$0xff] }
 0x268   :  { %3331 = vst.msk [vmem:[#allocation2 + $0x120] sm:$0xff] %vm265_vm0, %v3267_v56  ;;  %v3270_v50 = vadd.f32 %v3206_v0, %v2758_v7  ;;  %v3204_v51 = vadd.f32 %v3140_v38, %v2612_v39  ;;  %v2633_v15 = vadd.f32 %v3913_v16, %v5862_v43  ;;  %v3000_v30 = vpop.permute.xlu0 %2999  ;;  %v5865_v7 = vld [vmem:[#allocation59_spill] sm:$0xff] }
 0x269   :  { %v2624_v5 = vpop.f32.mrf.mxu1  ;;  %v2824_v45 = vmul.f32 %v2760_v23, %v5865_v7  ;;  %v3146_v62 = vadd.f32 %v2998_v27, %v2826_v8  ;;  %v5868_v27 = vld [vmem:[#allocation31_spill] sm:$0xff]  ;;  %v2770_v8 = vld [vmem:[%s5684_s1 + $0x198] sm:$0xff] }
 0x26a   :  { %3334 = vst.msk [vmem:[#allocation2 + $0x138] sm:$0xff] %vm265_vm0, %v3270_v50  ;;  %v3268_v2 = vadd.f32 %v3204_v51, %v2756_v12  ;;  %v3209_v40 = vadd.f32 %v3145_v25, %v2633_v15  ;;  %v2625_v49 = vadd.f32 %v2624_v5, %v5864_v41  ;;  %v3002_v13 = vpop.permute.xlu1 %3001  ;;  %v5867_v12 = vld [vmem:[#allocation60_spill] sm:$0xff]  ;;  %v5874_v51 = vld [vmem:[#allocation49_spill] sm:$0xff] }
 0x26b   :  { %v3914_v17 = vpop.f32.mrf.mxu1  ;;  %v2829_v19 = vmul.f32 %v5867_v12, %v2765_v52  ;;  %v3144_v3 = vadd.f32 %v2994_v55, %v2824_v45  ;;  %v5870_v55 = vld [vmem:[#allocation46_spill] sm:$0xff] }
 0x26c   :  { %3332 = vst.msk [vmem:[#allocation2 + $0x128] sm:$0xff] %vm265_vm0, %v3268_v2  ;;  %v3273_v20 = vadd.f32 %v3209_v40, %v2761_v21  ;;  %v3207_v58 = vadd.f32 %v3143_v32, %v2625_v49  ;;  %v2636_v57 = vadd.f32 %v3914_v17, %v5866_v11  ;;  %v3012_v10 = vpop.permute.xlu0 %3011  ;;  %v5869_v21 = vld [vmem:[#allocation62_spill] sm:$0xff] }
 0x26d   :  { %v2627_v48 = vpop.f32.mrf.mxu1  ;;  %v2827_v1 = vmul.f32 %v2763_v28, %v5869_v21  ;;  %v3149_v44 = vadd.f32 %v3004_v42, %v2829_v19  ;;  %v5872_v42 = vld [vmem:[#allocation40_spill] sm:$0xff]  ;;  %v2768_v45 = vld [vmem:[%s5684_s1 + $0x188] sm:$0xff]  ;;  %v2773_v19 = vld [vmem:[%s5684_s1 + $0x1b0] sm:$0xff] }
 0x26e   :  { %3337 = vst.msk [vmem:[#allocation2 + $0x150] sm:$0xff] %vm265_vm0, %v3273_v20  ;;  %v3271_v6 = vadd.f32 %v3207_v58, %v2759_v54  ;;  %v3210_v4 = vadd.f32 %v3146_v62, %v2636_v57  ;;  %v2628_v47 = vadd.f32 %v2627_v48, %v5868_v27  ;;  %v3014_v61 = vpop.permute.xlu1 %3013  ;;  %v5871_v54 = vld [vmem:[#allocation63_spill] sm:$0xff] }
 0x26f   :  { %v3917_v53 = vpop.f32.mrf.mxu1  ;;  %v2830_v26 = vmul.f32 %v5871_v54, %v2766_v22  ;;  %v3147_v36 = vadd.f32 %v3000_v30, %v2827_v1  ;;  %v2771_v1 = vld [vmem:[%s5684_s1 + $0x1a0] sm:$0xff] }
 0x270   :  { %3335 = vst.msk [vmem:[#allocation2 + $0x140] sm:$0xff] %vm265_vm0, %v3271_v6  ;;  %v3274_v29 = vadd.f32 %v3210_v4, %v2762_v59  ;;  %v3208_v18 = vadd.f32 %v3144_v3, %v2628_v47  ;;  %v2649_v33 = vadd.f32 %v3917_v53, %v5870_v55  ;;  %v3008_v34 = vpop.permute.xlu0 %3007  ;;  %v5873_v59 = vld [vmem:[#allocation65_spill] sm:$0xff] }
 0x271   :  { %v2640_v63 = vpop.f32.mrf.mxu1  ;;  %v2828_v39 = vmul.f32 %v2764_v60, %v5873_v59  ;;  %v3150_v16 = vadd.f32 %v3006_v35, %v2830_v26  ;;  %v5876_v35 = vld [vmem:[#allocation43_spill] sm:$0xff]  ;;  %v2774_v26 = vld [vmem:[%s5684_s1 + $0x1b8] sm:$0xff]  ;;  %v2772_v59 = vld [vmem:[%s5684_s1 + $0x1a8] sm:$0xff] }
 0x272   :  { %3338 = vst.msk [vmem:[#allocation2 + $0x158] sm:$0xff] %vm265_vm0, %v3274_v29  ;;  %v3272_v38 = vadd.f32 %v3208_v18, %v2760_v23  ;;  %v3213_v56 = vadd.f32 %v3149_v44, %v2649_v33  ;;  %v2641_v0 = vadd.f32 %v2640_v63, %v5872_v42  ;;  %v3010_v14 = vpop.permute.xlu1 %3009  ;;  %v5875_v23 = vld [vmem:[#allocation66_spill] sm:$0xff]  ;;  %v5882_v18 = vld [vmem:[#allocation61_spill] sm:$0xff] }
 0x273   :  { %v3918_v9 = vpop.f32.mrf.mxu1  ;;  %v2833_v30 = vmul.f32 %v5875_v23, %v2769_v37  ;;  %v3148_v5 = vadd.f32 %v3002_v13, %v2828_v39  ;;  %v5878_v13 = vld [vmem:[#allocation58_spill] sm:$0xff] }
 0x274   :  { %3336 = vst.msk [vmem:[#allocation2 + $0x148] sm:$0xff] %vm265_vm0, %v3272_v38  ;;  %v3277_v25 = vadd.f32 %v3213_v56, %v2765_v52  ;;  %v3211_v50 = vadd.f32 %v3147_v36, %v2641_v0  ;;  %v2652_v43 = vadd.f32 %v3918_v9, %v5874_v51  ;;  %v3020_v15 = vpop.permute.xlu0 %3019  ;;  %v5877_v52 = vld [vmem:[#allocation68_spill] sm:$0xff]  ;;  %v5885_v42 = vld [vmem:[#allocation74_spill] sm:$0xff]  ;;  %v5887_v51 = vld [vmem:[#allocation75_spill] sm:$0xff] }
 0x275   :  { %v2643_v46 = vpop.f32.mrf.mxu1  ;;  %v2831_v49 = vmul.f32 %v2767_v31, %v5877_v52  ;;  %v3153_v17 = vadd.f32 %v3012_v10, %v2833_v30  ;;  %v5880_v10 = vld [vmem:[#allocation52_spill] sm:$0xff]  ;;  %v2777_v30 = vld [vmem:[%s5684_s1 + $0x1d0] sm:$0xff]  ;;  %v2775_v52 = vld [vmem:[%s5684_s1 + $0x1c0] sm:$0xff] }
 0x276   :  { %3341 = vst.msk [vmem:[#allocation2 + $0x170] sm:$0xff] %vm265_vm0, %v3277_v25  ;;  %v3275_v32 = vadd.f32 %v3211_v50, %v2763_v28  ;;  %v3214_v2 = vadd.f32 %v3150_v16, %v2652_v43  ;;  %v2644_v40 = vadd.f32 %v2643_v46, %v5876_v35  ;;  %v3022_v41 = vpop.permute.xlu1 %3021  ;;  %v5879_v28 = vld [vmem:[#allocation69_spill] sm:$0xff] }
 0x277   :  { %v3921_v7 = vpop.f32.mrf.mxu1  ;;  %v2834_v57 = vmul.f32 %v5879_v28, %v2770_v8  ;;  %v3151_v48 = vadd.f32 %v3008_v34, %v2831_v49 }
 0x278   :  { %3339 = vst.msk [vmem:[#allocation2 + $0x160] sm:$0xff] %vm265_vm0, %v3275_v32  ;;  %v3278_v62 = vadd.f32 %v3214_v2, %v2766_v22  ;;  %v3212_v20 = vadd.f32 %v3148_v5, %v2644_v40  ;;  %v2665_v58 = vadd.f32 %v3921_v7, %v5878_v13  ;;  %v3016_v11 = vpop.permute.xlu0 %3015  ;;  %v5881_v22 = vld [vmem:[#allocation71_spill] sm:$0xff]  ;;  %v5888_v32 = vld [vmem:[#allocation64_spill] sm:$0xff]  ;;  %v5891_v13 = vld [vmem:[#allocation78_spill] sm:$0xff] }
 0x279   :  { %v2656_v12 = vpop.f32.mrf.mxu1  ;;  %v2832_v47 = vmul.f32 %v2768_v45, %v5881_v22  ;;  %v3154_v53 = vadd.f32 %v3014_v61, %v2834_v57  ;;  %v5884_v61 = vld [vmem:[#allocation55_spill] sm:$0xff]  ;;  %v2776_v22 = vld [vmem:[%s5684_s1 + $0x1c8] sm:$0xff] }
 0x27a   :  { %3342 = vst.msk [vmem:[#allocation2 + $0x178] sm:$0xff] %vm265_vm0, %v3278_v62  ;;  %v3276_v3 = vadd.f32 %v3212_v20, %v2764_v60  ;;  %v3217_v6 = vadd.f32 %v3153_v17, %v2665_v58  ;;  %v2657_v4 = vadd.f32 %v2656_v12, %v5880_v10  ;;  %v3018_v27 = vpop.permute.xlu1 %3017  ;;  %v5883_v60 = vld [vmem:[#allocation72_spill] sm:$0xff]  ;;  %v5890_v62 = vld [vmem:[#allocation73_spill] sm:$0xff]  ;;  %v2841_v58 = vmul.f32 %v5891_v13, %v2777_v30 }
 0x27b   :  { %v3922_v21 = vpop.f32.mrf.mxu1  ;;  %v2837_v34 = vmul.f32 %v5883_v60, %v2773_v19  ;;  %v3152_v63 = vadd.f32 %v3010_v14, %v2832_v47  ;;  %v5886_v14 = vld [vmem:[#allocation70_spill] sm:$0xff] }
 0x27c   :  { %3340 = vst.msk [vmem:[#allocation2 + $0x168] sm:$0xff] %vm265_vm0, %v3276_v3  ;;  %v3281_v44 = vadd.f32 %v3217_v6, %v2769_v37  ;;  %v3215_v29 = vadd.f32 %v3151_v48, %v2657_v4  ;;  %v2668_v55 = vadd.f32 %v3922_v21, %v5882_v18  ;;  %v3028_v33 = vpop.permute.xlu0 %3027  ;;  %v2835_v37 = vmul.f32 %v2771_v1, %v5885_v42  ;;  %v5893_v6 = vld [vmem:[#allocation80_spill] sm:$0xff] }
 0x27d   :  { %v2659_v54 = vpop.f32.mrf.mxu1  ;;  %v3157_v39 = vadd.f32 %v3020_v15, %v2837_v34  ;;  %v3161_v47 = vadd.f32 %v3028_v33, %v2841_v58 }
 0x27e   :  { %3345 = vst.msk [vmem:[#allocation2 + $0x190] sm:$0xff] %vm265_vm0, %v3281_v44  ;;  %v3279_v36 = vadd.f32 %v3215_v29, %v2767_v31  ;;  %v3218_v38 = vadd.f32 %v3154_v53, %v2668_v55  ;;  %v2660_v56 = vadd.f32 %v2659_v54, %v5884_v61  ;;  %v3030_v25 = vpop.permute.xlu1 %3029  ;;  %v2838_v31 = vmul.f32 %v5887_v51, %v2774_v26  ;;  %v5894_v53 = vld [vmem:[#allocation82_spill] sm:$0xff]  ;;  %v2781_v55 = vld [vmem:[%s5684_s1 + $0x1f0] sm:$0xff]  ;;  %v2782_v51 = vld [vmem:[%s5684_s1 + $0x1f8] sm:$0xff] }
 0x27f   :  { %v3925_v0 = vpop.f32.mrf.mxu1  ;;  %v3155_v46 = vadd.f32 %v3016_v11, %v2835_v37  ;;  %v2778_v11 = vld [vmem:[%s5684_s1 + $0x1d8] sm:$0xff] }
 0x280   :  { %3343 = vst.msk [vmem:[#allocation2 + $0x180] sm:$0xff] %vm265_vm0, %v3279_v36  ;;  %v3282_v9 = vadd.f32 %v3218_v38, %v2770_v8  ;;  %v3216_v16 = vadd.f32 %v3152_v63, %v2660_v56  ;;  %v2681_v50 = vadd.f32 %v3925_v0, %v5886_v14  ;;  %v3024_v43 = vpop.permute.xlu0 %3023  ;;  %v5889_v8 = vld [vmem:[#allocation77_spill] sm:$0xff]  ;;  %v3158_v49 = vadd.f32 %v3022_v41, %v2838_v31  ;;  %v5892_v41 = vld [vmem:[#allocation67_spill] sm:$0xff]  ;;  %v5896_v63 = vld [vmem:[#allocation76_spill] sm:$0xff] }
 0x281   :  { %v2672_v23 = vpop.f32.mrf.mxu1  ;;  %v2836_v35 = vmul.f32 %v2772_v59, %v5889_v8  ;;  %v5897_v36 = vld [vmem:[#allocation83_spill] sm:$0xff]  ;;  %v2779_v56 = vld [vmem:[%s5684_s1 + $0x1e0] sm:$0xff] }
 0x282   :  { %3346 = vst.msk [vmem:[#allocation2 + $0x198] sm:$0xff] %vm265_vm0, %v3282_v9  ;;  %v3280_v5 = vadd.f32 %v3216_v16, %v2768_v45  ;;  %v3221_v15 = vadd.f32 %v3157_v39, %v2681_v50  ;;  %v2673_v2 = vadd.f32 %v2672_v23, %v5888_v32  ;;  %v3026_v12 = vpop.permute.xlu1 %3025  ;;  %v2840_v38 = vmul.f32 %v2776_v22, %v5897_v36  ;;  %v5898_v39 = vld [vmem:[#allocation85_spill] sm:$0xff]  ;;  %v5899_v16 = vld [vmem:[#allocation84_spill] sm:$0xff]  ;;  %v2780_v32 = vld [vmem:[%s5684_s1 + $0x1e8] sm:$0xff]  ;;  %s4152_s1 = smov [#allocation2]  }
 0x283   :  { %v3926_v40 = vpop.f32.mrf.mxu1  ;;  %v3156_v28 = vadd.f32 %v3018_v27, %v2836_v35  ;;  %s3364_s4 = sshll.u32 %s4152_s1, 4  ;;  %s3365_s4 = int_to_ptr.vmem [resolvable:$true] %s3364_s4 }
 0x284   :  { %3344 = vst.msk [vmem:[#allocation2 + $0x188] sm:$0xff] %vm265_vm0, %v3280_v5  ;;  %v3285_v7 = vadd.f32 %v3221_v15, %v2773_v19  ;;  %v3219_v17 = vadd.f32 %v3155_v46, %v2673_v2  ;;  %v2684_v20 = vadd.f32 %v3926_v40, %v5890_v62  ;;  %v2839_v19 = vmul.f32 %v2775_v52, %v5893_v6  ;;  %v3032_v10 = vpop.permute.xlu0 %3031  ;;  %v5901_v5 = vld [vmem:[#allocation86_spill] sm:$0xff]  ;;  %v5902_v40 = vld [vmem:[#allocation91_spill] sm:$0xff]  ;;  %s4128_s15 = scalar_lea.vmem %s3365_s4, 8192  ;;  %p4133_p1 = scmp.lt.s32.totalorder %s3365_s4, %s3365_s4 }
 0x285   :  { %v2675_v45 = vpop.f32.mrf.mxu1  ;;  %v3160_v31 = vadd.f32 %v3026_v12, %v2840_v38  ;;  %p4129_p0 = scmp.ne.s32.totalorder %s3365_s4, %s4128_s15  ;;  %p4134_p2 = scmp.lt.s32.totalorder %s4128_s15, %s4128_s15 }
 0x286   :  { %3349 = vst.msk [vmem:[#allocation2 + $0x1b0] sm:$0xff] %vm265_vm0, %v3285_v7  ;;  %v3283_v57 = vadd.f32 %v3219_v17, %v2771_v1  ;;  %v3222_v48 = vadd.f32 %v3158_v49, %v2684_v20  ;;  %v2676_v3 = vadd.f32 %v2675_v45, %v5892_v41  ;;  %v5895_v1 = vld [vmem:[#allocation81_spill] sm:$0xff]  ;;  %v3159_v60 = vadd.f32 %v3024_v43, %v2839_v19  ;;  %v5903_v7 = vld [vmem:[#allocation87_spill] sm:$0xff]  ;;  %v5904_v45 = vld [vmem:[#allocation88_spill] sm:$0xff] }
 0x287   :  { %v3929_v4 = vpop.f32.mrf.mxu1  ;;  %v2842_v29 = vmul.f32 %v5895_v1, %v2778_v11  ;;  %v2846_v17 = vmul.f32 %v5903_v7, %v2782_v51  ;;  %p4135_p3 = por %p4134_p2, %p4133_p1 }
 0x288   :  { %3347 = vst.msk [vmem:[#allocation2 + $0x1a0] sm:$0xff] %vm265_vm0, %v3283_v57  ;;  %v3286_v21 = vadd.f32 %v3222_v48, %v2774_v26  ;;  %v3220_v27 = vadd.f32 %v3156_v28, %v2676_v3  ;;  %v2697_v44 = vadd.f32 %v3929_v4, %v5894_v53  ;;  %v3034_v26 = vpop.permute.xlu1 %3033  ;;  %v3036_v14 = vpop.permute.xlu0 %3035  ;;  %v5905_v57 = vld [vmem:[#allocation89_spill] sm:$0xff] }
 0x289   :  { %v2688_v18 = vpop.f32.mrf.mxu1  ;;  %v3162_v42 = vadd.f32 %v3030_v25, %v2842_v29  ;;  %v5900_v25 = vld [vmem:[#allocation79_spill] sm:$0xff]  ;;  %v2844_v12 = vmul.f32 %v2780_v32, %v5905_v57  ;;  %p4136_p4 = pnand %p4135_p3, %p4129_p0 }
 0x28a   :  { %3350 = vst.msk [vmem:[#allocation2 + $0x1b8] sm:$0xff] %vm265_vm0, %v3286_v21  ;;  %v3284_v34 = vadd.f32 %v3220_v27, %v2772_v59  ;;  %v3225_v54 = vadd.f32 %v3161_v47, %v2697_v44  ;;  %v2689_v33 = vadd.f32 %v2688_v18, %v5896_v63  ;;  %v2845_v59 = vmul.f32 %v5899_v16, %v2781_v55 }
 0x28b   :  { %v3930_v61 = vpop.f32.mrf.mxu1  ;;  %v3164_v4 = vadd.f32 %v3034_v26, %v2844_v12 }
 0x28c   :  { %3348 = vst.msk [vmem:[#allocation2 + $0x1a8] sm:$0xff] %vm265_vm0, %v3284_v34  ;;  %v3289_v37 = vadd.f32 %v3225_v54, %v2777_v30  ;;  %v3223_v0 = vadd.f32 %v3159_v60, %v2689_v33  ;;  %v2700_v9 = vadd.f32 %v3930_v61, %v5898_v39  ;;  %v2843_v30 = vmul.f32 %v2779_v56, %v5901_v5 }
 0x28d   :  { %v2691_v50 = vpop.f32.mrf.mxu1  ;;  %v3165_v2 = vadd.f32 %v3036_v14, %v2845_v59 }
 0x28e   :  { %3353 = vst.msk [vmem:[#allocation2 + $0x1d0] sm:$0xff] %vm265_vm0, %v3289_v37  ;;  %v3287_v43 = vadd.f32 %v3223_v0, %v2775_v52  ;;  %v3226_v23 = vadd.f32 %v3162_v42, %v2700_v9  ;;  %v2692_v46 = vadd.f32 %v2691_v50, %v5900_v25  ;;  %v3038_v52 = vpop.permute.xlu1 %3037  ;;  %v3163_v20 = vadd.f32 %v3032_v10, %v2843_v30 }
 0x28f   :  { %v3933_v15 = vpop.f32.mrf.mxu1  ;;  %v3166_v41 = vadd.f32 %v3038_v52, %v2846_v17 }
 0x290   :  { %3351 = vst.msk [vmem:[#allocation2 + $0x1c0] sm:$0xff] %vm265_vm0, %v3287_v43  ;;  %v3290_v8 = vadd.f32 %v3226_v23, %v2778_v11  ;;  %v3224_v35 = vadd.f32 %v3160_v31, %v2692_v46  ;;  %v2713_v49 = vadd.f32 %v3933_v15, %v5902_v40 }
 0x291   :  { %v2704_v62 = vpop.f32.mrf.mxu1 }
 0x292   :  { %3354 = vst.msk [vmem:[#allocation2 + $0x1d8] sm:$0xff] %vm265_vm0, %v3290_v8  ;;  %v3288_v13 = vadd.f32 %v3224_v35, %v2776_v22  ;;  %v3229_v58 = vadd.f32 %v3165_v2, %v2713_v49  ;;  %v2705_v28 = vadd.f32 %v2704_v62, %v5904_v45  ;;  %v5906_v22 = vld [vmem:[#allocation90_spill] sm:$0xff] }
 0x293   :  { %v3934_v48 = vpop.f32.mrf.mxu1 }
 0x294   :  { %3352 = vst.msk [vmem:[#allocation2 + $0x1c8] sm:$0xff] %vm265_vm0, %v3288_v13  ;;  %v3293_v11 = vadd.f32 %v3229_v58, %v2781_v55  ;;  %v3227_v3 = vadd.f32 %v3163_v20, %v2705_v28  ;;  %v2716_v6 = vadd.f32 %v3934_v48, %v5326_v24 }
 0x295   :  { %v2707_v19 = vpop.f32.mrf.mxu1 }
 0x296   :  { %3357 = vst.msk [vmem:[#allocation2 + $0x1f0] sm:$0xff] %vm265_vm0, %v3293_v11  ;;  %v3291_v10 = vadd.f32 %v3227_v3, %v2779_v56  ;;  %v3230_v47 = vadd.f32 %v3166_v41, %v2716_v6  ;;  %v2708_v21 = vadd.f32 %v2707_v19, %v5906_v22 }
 0x298   :  { %3355 = vst.msk [vmem:[#allocation2 + $0x1e0] sm:$0xff] %vm265_vm0, %v3291_v10  ;;  %v3294_v27 = vadd.f32 %v3230_v47, %v2782_v51  ;;  %v3228_v53 = vadd.f32 %v3164_v4, %v2708_v21 }
 0x29a   :  { %3358 = vst.msk [vmem:[#allocation2 + $0x1f8] sm:$0xff] %vm265_vm0, %v3294_v27  ;;  %v3292_v44 = vadd.f32 %v3228_v53, %v2780_v32 }
 0x29c   :  { %3356 = vst.msk [vmem:[#allocation2 + $0x1e8] sm:$0xff] %vm265_vm0, %v3292_v44 }
 0x29d   :  { %4139 = shalt.err (!%p4136_p4)
}
 0x29e   :  { %s4153_s16 = smov 128   ;;  %s4154_s17 = smov 8  }
 0x29f   :  { %3370 = dma.vmem_to_hbm [thread:$0]  %s3365_s4, 8192, %s5689_s6, [#allocation3], %s4153_s16, %s4153_s16, %s4154_s17  }
 0x2a0   :  { %4148 = dma.done.wait [#allocation3], 8192  }
 0x2a1   :  { %4149 = vsyncadd [#allocation3], 4294959104 }
 0x2a2   :  { %3374 = vsyncpa [#allocation3], 1 }

</bundles_post_ra>
